<compile_context>
chip_gen: v7x
topology: tpu7x:2x2x1
jax: 0.10.0
libtpu: 0.0.40
codegen_flags: <defaults>
</compile_context>

<pallas_src>
import jax
import jax.numpy as jnp
from jax import lax
from jax.experimental import pallas as pl
from jax.experimental.pallas import tpu as pltpu


def _round_up(x, m):
    return (x + m - 1) // m * m


def _make_block_kernel(H, W, Wp, Cin, Cout, has_proj):
    """Fused BasicBlock kernel factory (one batch element per grid step).

    Flat layout: padded activations are (rows, channels) with rows = (h_pad*Wp
    + w_pad); data lives at pad-rows [2, H+2) and pad-cols [1, W+1). With that,
    the conv tap (kh, kw) operand for the whole output grid is the contiguous
    row slice starting at (kh+1)*Wp + kw - 1.
    """
    K = 3
    HWp = H * Wp

    def kernel(*refs):
        if has_proj:
            (x_ref, w1_ref, w2_ref, b1_ref, b2_ref, m_ref,
             ws_ref, bs_ref, out_ref, y1p_ref) = refs
        else:
            (x_ref, w1_ref, w2_ref, b1_ref, b2_ref, m_ref,
             out_ref, y1p_ref) = refs

        # --- (re)zero y1_pad's top/bottom halo strips (aligned static stores).
        zstrip = jnp.zeros((2 * Wp, Cout), jnp.bfloat16)
        y1p_ref[0:2 * Wp, :] = zstrip
        y1p_ref[(H + 2) * Wp:(H + 4) * Wp, :] = zstrip

        # --- conv1: 9 taps, contiguous flat slices, local f32 accumulation ---
        acc1 = None
        for kh in range(K):
            for kw in range(K):
                off = (kh + 1) * Wp + kw - 1
                lhs = x_ref[0, off:off + HWp, :]
                d = jnp.dot(lhs, w1_ref[kh * K + kw],
                            preferred_element_type=jnp.float32)
                acc1 = d if acc1 is None else acc1 + d

        # bn1 bias (scale already folded into w1) + relu; the column mask zeroes
        # the scratch/wrap columns so they double as conv2's horizontal zero pad.
        y1 = jnp.maximum(acc1 + b1_ref[...], 0.0) * m_ref[...]
        y1p_ref[2 * Wp:2 * Wp + HWp, :] = y1.astype(jnp.bfloat16)

        # --- conv2: 9 taps read from the VMEM-resident y1_pad ---
        acc2 = None
        for kh in range(K):
            for kw in range(K):
                off = (kh + 1) * Wp + kw - 1
                lhs = y1p_ref[off:off + HWp, :]
                d = jnp.dot(lhs, w2_ref[kh * K + kw],
                            preferred_element_type=jnp.float32)
                acc2 = d if acc2 is None else acc2 + d
        y2 = acc2 + b2_ref[...]

        # --- shortcut (1x1 conv + folded BN, or identity) ---
        xc = x_ref[0, 2 * Wp:2 * Wp + HWp, :]
        if has_proj:
            sc = jnp.dot(xc, ws_ref[...], preferred_element_type=jnp.float32)
            sc = sc + bs_ref[...]
        else:
            # TODO(synk): residual is bf16-rounded (x was cast for the MXU path).
            sc = xc.astype(jnp.float32)

        # residual + final relu; transpose so the HBM store is lane-dense
        # (H*Wp on lanes) and already channel-major — the wrapper then only
        # reshapes/slices, no NHWC->NCHW transpose pass.
        res = jnp.maximum(y2 + sc, 0.0)              # (H*Wp, Cout) f32
        out_ref[0] = res.T.astype(out_ref.dtype)     # (Cout, H*Wp) bf16

    return kernel


def _fold_bn(gamma, beta, rmean, rvar, eps):
    scale = gamma / jnp.sqrt(rvar + eps)
    bias = beta - rmean * scale
    return scale, bias


def basic_block_forward(x_nchw, params, eps=1e-5):
    """BasicBlock forward (eval mode, stride=1). NCHW in / NCHW (f32) out."""
    x = jnp.transpose(x_nchw, (0, 2, 3, 1))          # NCHW -> NHWC
    N, H, W, Cin = x.shape
    w1, w2 = params["w1"], params["w2"]
    Cout = w1.shape[-1]
    has_proj = params.get("ws") is not None
    if not has_proj:
        assert Cin == Cout, "identity shortcut requires in_channels == out_channels"

    s1, b1 = _fold_bn(*params["bn1"], eps)
    s2, b2 = _fold_bn(*params["bn2"], eps)

    # Width padded to a multiple of 8 so all flat tap slices are layout
    # preserving; 2 zero rows top/bottom + 1 zero col left give the conv zero
    # padding, remaining right columns are scratch columns masked in-kernel.
    Wp = _round_up(W + 2, 8)
    HWp = H * Wp
    NROWS = (H + 4) * Wp

    xp = jnp.pad(x, ((0, 0), (2, 2), (1, Wp - W - 1), (0, 0)))
    xp = xp.astype(jnp.bfloat16).reshape(N, NROWS, Cin)

    # Fold BN scale into the conv weights (f32 fold, then bf16 cast for MXU).
    w1f = (w1 * s1).reshape(9, Cin, Cout).astype(jnp.bfloat16)
    w2f = (w2 * s2).reshape(9, Cout, Cout).astype(jnp.bfloat16)
    b1v = b1.reshape(1, Cout).astype(jnp.float32)
    b2v = b2.reshape(1, Cout).astype(jnp.float32)

    # Precomputed column-validity mask (1 on data columns, 0 on pad/scratch).
    col = jnp.arange(Wp, dtype=jnp.int32)
    cmask = ((col >= 1) & (col <= W)).astype(jnp.float32)
    cmask = jnp.tile(cmask, H).reshape(HWp, 1)

    args = [xp, w1f, w2f, b1v, b2v, cmask]
    in_specs = [
        pl.BlockSpec((1, NROWS, Cin), lambda n: (n, 0, 0)),
        pl.BlockSpec((9, Cin, Cout), lambda n: (0, 0, 0)),
        pl.BlockSpec((9, Cout, Cout), lambda n: (0, 0, 0)),
        pl.BlockSpec((1, Cout), lambda n: (0, 0)),
        pl.BlockSpec((1, Cout), lambda n: (0, 0)),
        pl.BlockSpec((HWp, 1), lambda n: (0, 0)),
    ]
    if has_proj:
        ss, bs = _fold_bn(*params["bns"], eps)
        wsf = (params["ws"].reshape(Cin, Cout) * ss).astype(jnp.bfloat16)
        args += [wsf, bs.reshape(1, Cout).astype(jnp.float32)]
        in_specs += [
            pl.BlockSpec((Cin, Cout), lambda n: (0, 0)),
            pl.BlockSpec((1, Cout), lambda n: (0, 0)),
        ]

    kernel = _make_block_kernel(H, W, Wp, Cin, Cout, has_proj)

    # Explicit scoped-VMEM budget (v5e defaults to only 16 MiB): rough sum of
    # double-buffered blocks + scratch + f32 accumulator temporaries, with
    # margin, capped well under v7x's 64 MiB physical VMEM.
    est = (2 * ((NROWS * Cin + 9 * Cin * Cout + 9 * Cout * Cout
                 + (Cin * Cout if has_proj else 0)) * 2
                + HWp * 4 + 6 * Cout * 4)
           + 2 * Cout * HWp * 2
           + NROWS * Cout * 2
           + 3 * HWp * Cout * 4)
    vmem_limit = int(min(max(2 * est, 32 * 1024 * 1024), 48 * 1024 * 1024))

    out = pl.pallas_call(
        kernel,
        out_shape=jax.ShapeDtypeStruct((N, Cout, HWp), jnp.bfloat16),
        grid_spec=pltpu.PrefetchScalarGridSpec(
            num_scalar_prefetch=0,
            grid=(N,),
            in_specs=in_specs,
            out_specs=pl.BlockSpec((1, Cout, HWp), lambda n: (n, 0, 0)),
            scratch_shapes=[
                pltpu.VMEM((NROWS, Cout), jnp.bfloat16),  # y1 (+ zero halo)
            ],
        ),
        compiler_params=pltpu.CompilerParams(
            dimension_semantics=("parallel",),
            vmem_limit_bytes=vmem_limit,
        ),
    )(*args)

    # (N, Cout, H*Wp) -> (N, Cout, H, W): free reshape + narrow slice (already
    # NCHW, no transpose pass), then back to the module's f32.
    out = out.reshape(N, Cout, H, Wp)[:, :, :, 1:W + 1]
    return out.astype(jnp.float32)


# ----------------------------- reference (pure JAX, f32) ---------------------
def _ref_forward(x, params):
    eps = 1e-5

    def conv(x, w_hwio, pad):
        return lax.conv_general_dilated(
            x, w_hwio, window_strides=(1, 1),
            padding=[(pad, pad), (pad, pad)],
            dimension_numbers=("NCHW", "HWIO", "NCHW"),
        )

    def bn(x, g, b, m, v):
        g, b, m, v = (t[None, :, None, None] for t in (g, b, m, v))
        return (x - m) / jnp.sqrt(v + eps) * g + b

    y = jax.nn.relu(bn(conv(x, params["w1"], 1), *params["bn1"]))
    y = bn(conv(y, params["w2"], 1), *params["bn2"])
    if params.get("ws") is not None:
        sc = bn(conv(x, params["ws"], 0), *params["bns"])
    else:
        sc = x
    return jax.nn.relu(y + sc)


# ----------------------------- main -------------------------------------------
if __name__ == "__main__":
    key = jax.random.PRNGKey(0)
    keys = jax.random.split(key, 16)

    def conv_w(k, kh, kw, cin, cout):
        fan_out = kh * kw * cout
        std = (2.0 / fan_out) ** 0.5
        return std * jax.random.normal(k, (kh, kw, cin, cout), jnp.float32)

    def bn_params(k, c):
        k1, k2, k3, k4 = jax.random.split(k, 4)
        gamma = 1.0 + 0.1 * jax.random.normal(k1, (c,), jnp.float32)
        beta = 0.1 * jax.random.normal(k2, (c,), jnp.float32)
        rmean = 0.1 * jax.random.normal(k3, (c,), jnp.float32)
        rvar = 1.0 + 0.1 * jax.random.uniform(k4, (c,), jnp.float32)
        return (gamma, beta, rmean, rvar)

    # --- projection-shortcut BasicBlock (in_channels != out_channels) ---
    N, Cin, Cout, H, W = 2, 4, 8, 16, 16
    params = {
        "w1": conv_w(keys[0], 3, 3, Cin, Cout),
        "bn1": bn_params(keys[1], Cout),
        "w2": conv_w(keys[2], 3, 3, Cout, Cout),
        "bn2": bn_params(keys[3], Cout),
        "ws": conv_w(keys[4], 1, 1, Cin, Cout),
        "bns": bn_params(keys[5], Cout),
    }
    x = jax.random.normal(keys[6], (N, Cin, H, W), jnp.float32)

    out = jax.block_until_ready(basic_block_forward(x, params))
    ref = jax.block_until_ready(_ref_forward(x, params))
    assert out.shape == (N, Cout, H, W), out.shape
    # bf16 MXU operands + bf16 output store -> tolerance loosened vs f32 ref.
    assert jnp.allclose(out, ref, atol=5e-2, rtol=5e-2), float(
        jnp.max(jnp.abs(out - ref)))

    # --- identity-shortcut BasicBlock (in_channels == out_channels) ---
    C = 8
    params_id = {
        "w1": conv_w(keys[7], 3, 3, C, C),
        "bn1": bn_params(keys[8], C),
        "w2": conv_w(keys[9], 3, 3, C, C),
        "bn2": bn_params(keys[10], C),
        "ws": None,
        "bns": None,
    }
    x_id = jax.random.normal(keys[11], (N, C, H, W), jnp.float32)
    out_id = jax.block_until_ready(basic_block_forward(x_id, params_id))
    ref_id = jax.block_until_ready(_ref_forward(x_id, params_id))
    assert out_id.shape == (N, C, H, W), out_id.shape
    assert jnp.allclose(out_id, ref_id, atol=5e-2, rtol=5e-2), float(
        jnp.max(jnp.abs(out_id - ref_id)))

    print("KERNEL_OK")
</pallas_src>

<mosaic_0001>
module attributes {stable_mosaic.version = 11 : i64} {
  func.func @kernel(%arg0: i32, %arg1: memref<1x480x4xbf16, #tpu.memory_space<vmem>>, %arg2: memref<9x4x8xbf16, #tpu.memory_space<vmem>>, %arg3: memref<9x8x8xbf16, #tpu.memory_space<vmem>>, %arg4: memref<1x8xf32, #tpu.memory_space<vmem>>, %arg5: memref<1x8xf32, #tpu.memory_space<vmem>>, %arg6: memref<384x1xf32, #tpu.memory_space<vmem>>, %arg7: memref<4x8xbf16, #tpu.memory_space<vmem>>, %arg8: memref<1x8xf32, #tpu.memory_space<vmem>>, %arg9: memref<1x8x384xbf16, #tpu.memory_space<vmem>>, %arg10: memref<480x8xbf16, #tpu.memory_space<vmem>>) attributes {dimension_semantics = [#tpu.dimension_semantics<parallel>], iteration_bounds = array<i64: 2>, scalar_prefetch = 0 : i64, scratch_operands = 1 : i64, tpu.core_type = #tpu.core_type<tc>, window_params = [{transform_indices = @transform_0, window_bounds = array<i64: 1, 480, 4>}, {pipeline_mode = #tpu.pipeline_mode<synchronous>, transform_indices = @transform_1, window_bounds = array<i64: 9, 4, 8>}, {pipeline_mode = #tpu.pipeline_mode<synchronous>, transform_indices = @transform_2, window_bounds = array<i64: 9, 8, 8>}, {pipeline_mode = #tpu.pipeline_mode<synchronous>, transform_indices = @transform_3, window_bounds = array<i64: 1, 8>}, {pipeline_mode = #tpu.pipeline_mode<synchronous>, transform_indices = @transform_4, window_bounds = array<i64: 1, 8>}, {pipeline_mode = #tpu.pipeline_mode<synchronous>, transform_indices = @transform_5, window_bounds = array<i64: 384, 1>}, {pipeline_mode = #tpu.pipeline_mode<synchronous>, transform_indices = @transform_6, window_bounds = array<i64: 4, 8>}, {pipeline_mode = #tpu.pipeline_mode<synchronous>, transform_indices = @transform_7, window_bounds = array<i64: 1, 8>}, {transform_indices = @transform_8, window_bounds = array<i64: 1, 8, 384>}]} {
    %cst = arith.constant 0.000000e+00 : bf16
    %0 = vector.broadcast %cst : bf16 to vector<48x8xbf16>
    %c0 = arith.constant 0 : index
    %c0_0 = arith.constant 0 : index
    %1 = vector.load %arg10[%c0, %c0_0] : memref<480x8xbf16, #tpu.memory_space<vmem>>, vector<48x8xbf16>
    tpu.vector_store %arg10[%c0, %c0_0], %0 {strides = array<i32>} : memref<480x8xbf16, #tpu.memory_space<vmem>>, vector<48x8xbf16>,
    %c432 = arith.constant 432 : index
    %c0_1 = arith.constant 0 : index
    %2 = vector.load %arg10[%c432, %c0_1] : memref<480x8xbf16, #tpu.memory_space<vmem>>, vector<48x8xbf16>
    tpu.vector_store %arg10[%c432, %c0_1], %0 {strides = array<i32>} : memref<480x8xbf16, #tpu.memory_space<vmem>>, vector<48x8xbf16>,
    %c0_2 = arith.constant 0 : index
    %c23 = arith.constant 23 : index
    %c0_3 = arith.constant 0 : index
    %3 = vector.load %arg1[%c0_2, %c23, %c0_3] : memref<1x480x4xbf16, #tpu.memory_space<vmem>>, vector<1x384x4xbf16>
    %4 = vector.shape_cast %3 : vector<1x384x4xbf16> to vector<384x4xbf16>
    %c0_4 = arith.constant 0 : index
    %c0_5 = arith.constant 0 : index
    %c0_6 = arith.constant 0 : index
    %5 = vector.load %arg2[%c0_4, %c0_5, %c0_6] : memref<9x4x8xbf16, #tpu.memory_space<vmem>>, vector<1x4x8xbf16>
    %6 = vector.shape_cast %5 : vector<1x4x8xbf16> to vector<4x8xbf16>
    %cst_7 = arith.constant dense<0.000000e+00> : vector<384x8xf32>
    %7 = tpu.matmul %4, %6, %cst_7 {dimension_numbers = #tpu.dot_dimension_numbers<[1], [0], [0], [1], [0, 0, 1, 1], [], []>} : vector<384x4xbf16>, vector<4x8xbf16>, vector<384x8xf32> -> vector<384x8xf32>
    %c0_8 = arith.constant 0 : index
    %c24 = arith.constant 24 : index
    %c0_9 = arith.constant 0 : index
    %8 = vector.load %arg1[%c0_8, %c24, %c0_9] : memref<1x480x4xbf16, #tpu.memory_space<vmem>>, vector<1x384x4xbf16>
    %9 = vector.shape_cast %8 : vector<1x384x4xbf16> to vector<384x4xbf16>
    %c1 = arith.constant 1 : index
    %c0_10 = arith.constant 0 : index
    %c0_11 = arith.constant 0 : index
    %10 = vector.load %arg2[%c1, %c0_10, %c0_11] : memref<9x4x8xbf16, #tpu.memory_space<vmem>>, vector<1x4x8xbf16>
    %11 = vector.shape_cast %10 : vector<1x4x8xbf16> to vector<4x8xbf16>
    %cst_12 = arith.constant dense<0.000000e+00> : vector<384x8xf32>
    %12 = tpu.matmul %9, %11, %cst_12 {dimension_numbers = #tpu.dot_dimension_numbers<[1], [0], [0], [1], [0, 0, 1, 1], [], []>} : vector<384x4xbf16>, vector<4x8xbf16>, vector<384x8xf32> -> vector<384x8xf32>
    %13 = arith.addf %7, %12 : vector<384x8xf32>
    %c0_13 = arith.constant 0 : index
    %c25 = arith.constant 25 : index
    %c0_14 = arith.constant 0 : index
    %14 = vector.load %arg1[%c0_13, %c25, %c0_14] : memref<1x480x4xbf16, #tpu.memory_space<vmem>>, vector<1x384x4xbf16>
    %15 = vector.shape_cast %14 : vector<1x384x4xbf16> to vector<384x4xbf16>
    %c2 = arith.constant 2 : index
    %c0_15 = arith.constant 0 : index
    %c0_16 = arith.constant 0 : index
    %16 = vector.load %arg2[%c2, %c0_15, %c0_16] : memref<9x4x8xbf16, #tpu.memory_space<vmem>>, vector<1x4x8xbf16>
    %17 = vector.shape_cast %16 : vector<1x4x8xbf16> to vector<4x8xbf16>
    %cst_17 = arith.constant dense<0.000000e+00> : vector<384x8xf32>
    %18 = tpu.matmul %15, %17, %cst_17 {dimension_numbers = #tpu.dot_dimension_numbers<[1], [0], [0], [1], [0, 0, 1, 1], [], []>} : vector<384x4xbf16>, vector<4x8xbf16>, vector<384x8xf32> -> vector<384x8xf32>
    %19 = arith.addf %13, %18 : vector<384x8xf32>
    %c0_18 = arith.constant 0 : index
    %c47 = arith.constant 47 : index
    %c0_19 = arith.constant 0 : index
    %20 = vector.load %arg1[%c0_18, %c47, %c0_19] : memref<1x480x4xbf16, #tpu.memory_space<vmem>>, vector<1x384x4xbf16>
    %21 = vector.shape_cast %20 : vector<1x384x4xbf16> to vector<384x4xbf16>
    %c3 = arith.constant 3 : index
    %c0_20 = arith.constant 0 : index
    %c0_21 = arith.constant 0 : index
    %22 = vector.load %arg2[%c3, %c0_20, %c0_21] : memref<9x4x8xbf16, #tpu.memory_space<vmem>>, vector<1x4x8xbf16>
    %23 = vector.shape_cast %22 : vector<1x4x8xbf16> to vector<4x8xbf16>
    %cst_22 = arith.constant dense<0.000000e+00> : vector<384x8xf32>
    %24 = tpu.matmul %21, %23, %cst_22 {dimension_numbers = #tpu.dot_dimension_numbers<[1], [0], [0], [1], [0, 0, 1, 1], [], []>} : vector<384x4xbf16>, vector<4x8xbf16>, vector<384x8xf32> -> vector<384x8xf32>
    %25 = arith.addf %19, %24 : vector<384x8xf32>
    %c0_23 = arith.constant 0 : index
    %c48 = arith.constant 48 : index
    %c0_24 = arith.constant 0 : index
    %26 = vector.load %arg1[%c0_23, %c48, %c0_24] : memref<1x480x4xbf16, #tpu.memory_space<vmem>>, vector<1x384x4xbf16>
    %27 = vector.shape_cast %26 : vector<1x384x4xbf16> to vector<384x4xbf16>
    %c4 = arith.constant 4 : index
    %c0_25 = arith.constant 0 : index
    %c0_26 = arith.constant 0 : index
    %28 = vector.load %arg2[%c4, %c0_25, %c0_26] : memref<9x4x8xbf16, #tpu.memory_space<vmem>>, vector<1x4x8xbf16>
    %29 = vector.shape_cast %28 : vector<1x4x8xbf16> to vector<4x8xbf16>
    %cst_27 = arith.constant dense<0.000000e+00> : vector<384x8xf32>
    %30 = tpu.matmul %27, %29, %cst_27 {dimension_numbers = #tpu.dot_dimension_numbers<[1], [0], [0], [1], [0, 0, 1, 1], [], []>} : vector<384x4xbf16>, vector<4x8xbf16>, vector<384x8xf32> -> vector<384x8xf32>
    %31 = arith.addf %25, %30 : vector<384x8xf32>
    %c0_28 = arith.constant 0 : index
    %c49 = arith.constant 49 : index
    %c0_29 = arith.constant 0 : index
    %32 = vector.load %arg1[%c0_28, %c49, %c0_29] : memref<1x480x4xbf16, #tpu.memory_space<vmem>>, vector<1x384x4xbf16>
    %33 = vector.shape_cast %32 : vector<1x384x4xbf16> to vector<384x4xbf16>
    %c5 = arith.constant 5 : index
    %c0_30 = arith.constant 0 : index
    %c0_31 = arith.constant 0 : index
    %34 = vector.load %arg2[%c5, %c0_30, %c0_31] : memref<9x4x8xbf16, #tpu.memory_space<vmem>>, vector<1x4x8xbf16>
    %35 = vector.shape_cast %34 : vector<1x4x8xbf16> to vector<4x8xbf16>
    %cst_32 = arith.constant dense<0.000000e+00> : vector<384x8xf32>
    %36 = tpu.matmul %33, %35, %cst_32 {dimension_numbers = #tpu.dot_dimension_numbers<[1], [0], [0], [1], [0, 0, 1, 1], [], []>} : vector<384x4xbf16>, vector<4x8xbf16>, vector<384x8xf32> -> vector<384x8xf32>
    %37 = arith.addf %31, %36 : vector<384x8xf32>
    %c0_33 = arith.constant 0 : index
    %c71 = arith.constant 71 : index
    %c0_34 = arith.constant 0 : index
    %38 = vector.load %arg1[%c0_33, %c71, %c0_34] : memref<1x480x4xbf16, #tpu.memory_space<vmem>>, vector<1x384x4xbf16>
    %39 = vector.shape_cast %38 : vector<1x384x4xbf16> to vector<384x4xbf16>
    %c6 = arith.constant 6 : index
    %c0_35 = arith.constant 0 : index
    %c0_36 = arith.constant 0 : index
    %40 = vector.load %arg2[%c6, %c0_35, %c0_36] : memref<9x4x8xbf16, #tpu.memory_space<vmem>>, vector<1x4x8xbf16>
    %41 = vector.shape_cast %40 : vector<1x4x8xbf16> to vector<4x8xbf16>
    %cst_37 = arith.constant dense<0.000000e+00> : vector<384x8xf32>
    %42 = tpu.matmul %39, %41, %cst_37 {dimension_numbers = #tpu.dot_dimension_numbers<[1], [0], [0], [1], [0, 0, 1, 1], [], []>} : vector<384x4xbf16>, vector<4x8xbf16>, vector<384x8xf32> -> vector<384x8xf32>
    %43 = arith.addf %37, %42 : vector<384x8xf32>
    %c0_38 = arith.constant 0 : index
    %c72 = arith.constant 72 : index
    %c0_39 = arith.constant 0 : index
    %44 = vector.load %arg1[%c0_38, %c72, %c0_39] : memref<1x480x4xbf16, #tpu.memory_space<vmem>>, vector<1x384x4xbf16>
    %45 = vector.shape_cast %44 : vector<1x384x4xbf16> to vector<384x4xbf16>
    %c7 = arith.constant 7 : index
    %c0_40 = arith.constant 0 : index
    %c0_41 = arith.constant 0 : index
    %46 = vector.load %arg2[%c7, %c0_40, %c0_41] : memref<9x4x8xbf16, #tpu.memory_space<vmem>>, vector<1x4x8xbf16>
    %47 = vector.shape_cast %46 : vector<1x4x8xbf16> to vector<4x8xbf16>
    %cst_42 = arith.constant dense<0.000000e+00> : vector<384x8xf32>
    %48 = tpu.matmul %45, %47, %cst_42 {dimension_numbers = #tpu.dot_dimension_numbers<[1], [0], [0], [1], [0, 0, 1, 1], [], []>} : vector<384x4xbf16>, vector<4x8xbf16>, vector<384x8xf32> -> vector<384x8xf32>
    %49 = arith.addf %43, %48 : vector<384x8xf32>
    %c0_43 = arith.constant 0 : index
    %c73 = arith.constant 73 : index
    %c0_44 = arith.constant 0 : index
    %50 = vector.load %arg1[%c0_43, %c73, %c0_44] : memref<1x480x4xbf16, #tpu.memory_space<vmem>>, vector<1x384x4xbf16>
    %51 = vector.shape_cast %50 : vector<1x384x4xbf16> to vector<384x4xbf16>
    %c8 = arith.constant 8 : index
    %c0_45 = arith.constant 0 : index
    %c0_46 = arith.constant 0 : index
    %52 = vector.load %arg2[%c8, %c0_45, %c0_46] : memref<9x4x8xbf16, #tpu.memory_space<vmem>>, vector<1x4x8xbf16>
    %53 = vector.shape_cast %52 : vector<1x4x8xbf16> to vector<4x8xbf16>
    %cst_47 = arith.constant dense<0.000000e+00> : vector<384x8xf32>
    %54 = tpu.matmul %51, %53, %cst_47 {dimension_numbers = #tpu.dot_dimension_numbers<[1], [0], [0], [1], [0, 0, 1, 1], [], []>} : vector<384x4xbf16>, vector<4x8xbf16>, vector<384x8xf32> -> vector<384x8xf32>
    %55 = arith.addf %49, %54 : vector<384x8xf32>
    %c0_48 = arith.constant 0 : index
    %c0_49 = arith.constant 0 : index
    %56 = vector.load %arg4[%c0_48, %c0_49] : memref<1x8xf32, #tpu.memory_space<vmem>>, vector<1x8xf32>
    %57 = vector.broadcast %56 : vector<1x8xf32> to vector<384x8xf32>
    %58 = arith.addf %55, %57 : vector<384x8xf32>
    %cst_50 = arith.constant 0.000000e+00 : f32
    %59 = vector.broadcast %cst_50 : f32 to vector<384x8xf32>
    %60 = arith.maximumf %58, %59 : vector<384x8xf32>
    %c0_51 = arith.constant 0 : index
    %c0_52 = arith.constant 0 : index
    %61 = vector.load %arg6[%c0_51, %c0_52] : memref<384x1xf32, #tpu.memory_space<vmem>>, vector<384x1xf32>
    %62 = vector.broadcast %61 : vector<384x1xf32> to vector<384x8xf32>
    %63 = arith.mulf %60, %62 : vector<384x8xf32>
    %64 = arith.truncf %63 : vector<384x8xf32> to vector<384x8xbf16>
    %c48_53 = arith.constant 48 : index
    %c0_54 = arith.constant 0 : index
    %65 = vector.load %arg10[%c48_53, %c0_54] : memref<480x8xbf16, #tpu.memory_space<vmem>>, vector<384x8xbf16>
    tpu.vector_store %arg10[%c48_53, %c0_54], %64 {strides = array<i32>} : memref<480x8xbf16, #tpu.memory_space<vmem>>, vector<384x8xbf16>,
    %c23_55 = arith.constant 23 : index
    %c0_56 = arith.constant 0 : index
    %66 = vector.load %arg10[%c23_55, %c0_56] : memref<480x8xbf16, #tpu.memory_space<vmem>>, vector<384x8xbf16>
    %c0_57 = arith.constant 0 : index
    %c0_58 = arith.constant 0 : index
    %c0_59 = arith.constant 0 : index
    %67 = vector.load %arg3[%c0_57, %c0_58, %c0_59] : memref<9x8x8xbf16, #tpu.memory_space<vmem>>, vector<1x8x8xbf16>
    %68 = vector.shape_cast %67 : vector<1x8x8xbf16> to vector<8x8xbf16>
    %cst_60 = arith.constant dense<0.000000e+00> : vector<384x8xf32>
    %69 = tpu.matmul %66, %68, %cst_60 {dimension_numbers = #tpu.dot_dimension_numbers<[1], [0], [0], [1], [0, 0, 1, 1], [], []>} : vector<384x8xbf16>, vector<8x8xbf16>, vector<384x8xf32> -> vector<384x8xf32>
    %c24_61 = arith.constant 24 : index
    %c0_62 = arith.constant 0 : index
    %70 = vector.load %arg10[%c24_61, %c0_62] : memref<480x8xbf16, #tpu.memory_space<vmem>>, vector<384x8xbf16>
    %c1_63 = arith.constant 1 : index
    %c0_64 = arith.constant 0 : index
    %c0_65 = arith.constant 0 : index
    %71 = vector.load %arg3[%c1_63, %c0_64, %c0_65] : memref<9x8x8xbf16, #tpu.memory_space<vmem>>, vector<1x8x8xbf16>
    %72 = vector.shape_cast %71 : vector<1x8x8xbf16> to vector<8x8xbf16>
    %cst_66 = arith.constant dense<0.000000e+00> : vector<384x8xf32>
    %73 = tpu.matmul %70, %72, %cst_66 {dimension_numbers = #tpu.dot_dimension_numbers<[1], [0], [0], [1], [0, 0, 1, 1], [], []>} : vector<384x8xbf16>, vector<8x8xbf16>, vector<384x8xf32> -> vector<384x8xf32>
    %74 = arith.addf %69, %73 : vector<384x8xf32>
    %c25_67 = arith.constant 25 : index
    %c0_68 = arith.constant 0 : index
    %75 = vector.load %arg10[%c25_67, %c0_68] : memref<480x8xbf16, #tpu.memory_space<vmem>>, vector<384x8xbf16>
    %c2_69 = arith.constant 2 : index
    %c0_70 = arith.constant 0 : index
    %c0_71 = arith.constant 0 : index
    %76 = vector.load %arg3[%c2_69, %c0_70, %c0_71] : memref<9x8x8xbf16, #tpu.memory_space<vmem>>, vector<1x8x8xbf16>
    %77 = vector.shape_cast %76 : vector<1x8x8xbf16> to vector<8x8xbf16>
    %cst_72 = arith.constant dense<0.000000e+00> : vector<384x8xf32>
    %78 = tpu.matmul %75, %77, %cst_72 {dimension_numbers = #tpu.dot_dimension_numbers<[1], [0], [0], [1], [0, 0, 1, 1], [], []>} : vector<384x8xbf16>, vector<8x8xbf16>, vector<384x8xf32> -> vector<384x8xf32>
    %79 = arith.addf %74, %78 : vector<384x8xf32>
    %c47_73 = arith.constant 47 : index
    %c0_74 = arith.constant 0 : index
    %80 = vector.load %arg10[%c47_73, %c0_74] : memref<480x8xbf16, #tpu.memory_space<vmem>>, vector<384x8xbf16>
    %c3_75 = arith.constant 3 : index
    %c0_76 = arith.constant 0 : index
    %c0_77 = arith.constant 0 : index
    %81 = vector.load %arg3[%c3_75, %c0_76, %c0_77] : memref<9x8x8xbf16, #tpu.memory_space<vmem>>, vector<1x8x8xbf16>
    %82 = vector.shape_cast %81 : vector<1x8x8xbf16> to vector<8x8xbf16>
    %cst_78 = arith.constant dense<0.000000e+00> : vector<384x8xf32>
    %83 = tpu.matmul %80, %82, %cst_78 {dimension_numbers = #tpu.dot_dimension_numbers<[1], [0], [0], [1], [0, 0, 1, 1], [], []>} : vector<384x8xbf16>, vector<8x8xbf16>, vector<384x8xf32> -> vector<384x8xf32>
    %84 = arith.addf %79, %83 : vector<384x8xf32>
    %c48_79 = arith.constant 48 : index
    %c0_80 = arith.constant 0 : index
    %85 = vector.load %arg10[%c48_79, %c0_80] : memref<480x8xbf16, #tpu.memory_space<vmem>>, vector<384x8xbf16>
    %c4_81 = arith.constant 4 : index
    %c0_82 = arith.constant 0 : index
    %c0_83 = arith.constant 0 : index
    %86 = vector.load %arg3[%c4_81, %c0_82, %c0_83] : memref<9x8x8xbf16, #tpu.memory_space<vmem>>, vector<1x8x8xbf16>
    %87 = vector.shape_cast %86 : vector<1x8x8xbf16> to vector<8x8xbf16>
    %cst_84 = arith.constant dense<0.000000e+00> : vector<384x8xf32>
    %88 = tpu.matmul %85, %87, %cst_84 {dimension_numbers = #tpu.dot_dimension_numbers<[1], [0], [0], [1], [0, 0, 1, 1], [], []>} : vector<384x8xbf16>, vector<8x8xbf16>, vector<384x8xf32> -> vector<384x8xf32>
    %89 = arith.addf %84, %88 : vector<384x8xf32>
    %c49_85 = arith.constant 49 : index
    %c0_86 = arith.constant 0 : index
    %90 = vector.load %arg10[%c49_85, %c0_86] : memref<480x8xbf16, #tpu.memory_space<vmem>>, vector<384x8xbf16>
    %c5_87 = arith.constant 5 : index
    %c0_88 = arith.constant 0 : index
    %c0_89 = arith.constant 0 : index
    %91 = vector.load %arg3[%c5_87, %c0_88, %c0_89] : memref<9x8x8xbf16, #tpu.memory_space<vmem>>, vector<1x8x8xbf16>
    %92 = vector.shape_cast %91 : vector<1x8x8xbf16> to vector<8x8xbf16>
    %cst_90 = arith.constant dense<0.000000e+00> : vector<384x8xf32>
    %93 = tpu.matmul %90, %92, %cst_90 {dimension_numbers = #tpu.dot_dimension_numbers<[1], [0], [0], [1], [0, 0, 1, 1], [], []>} : vector<384x8xbf16>, vector<8x8xbf16>, vector<384x8xf32> -> vector<384x8xf32>
    %94 = arith.addf %89, %93 : vector<384x8xf32>
    %c71_91 = arith.constant 71 : index
    %c0_92 = arith.constant 0 : index
    %95 = vector.load %arg10[%c71_91, %c0_92] : memref<480x8xbf16, #tpu.memory_space<vmem>>, vector<384x8xbf16>
    %c6_93 = arith.constant 6 : index
    %c0_94 = arith.constant 0 : index
    %c0_95 = arith.constant 0 : index
    %96 = vector.load %arg3[%c6_93, %c0_94, %c0_95] : memref<9x8x8xbf16, #tpu.memory_space<vmem>>, vector<1x8x8xbf16>
    %97 = vector.shape_cast %96 : vector<1x8x8xbf16> to vector<8x8xbf16>
    %cst_96 = arith.constant dense<0.000000e+00> : vector<384x8xf32>
    %98 = tpu.matmul %95, %97, %cst_96 {dimension_numbers = #tpu.dot_dimension_numbers<[1], [0], [0], [1], [0, 0, 1, 1], [], []>} : vector<384x8xbf16>, vector<8x8xbf16>, vector<384x8xf32> -> vector<384x8xf32>
    %99 = arith.addf %94, %98 : vector<384x8xf32>
    %c72_97 = arith.constant 72 : index
    %c0_98 = arith.constant 0 : index
    %100 = vector.load %arg10[%c72_97, %c0_98] : memref<480x8xbf16, #tpu.memory_space<vmem>>, vector<384x8xbf16>
    %c7_99 = arith.constant 7 : index
    %c0_100 = arith.constant 0 : index
    %c0_101 = arith.constant 0 : index
    %101 = vector.load %arg3[%c7_99, %c0_100, %c0_101] : memref<9x8x8xbf16, #tpu.memory_space<vmem>>, vector<1x8x8xbf16>
    %102 = vector.shape_cast %101 : vector<1x8x8xbf16> to vector<8x8xbf16>
    %cst_102 = arith.constant dense<0.000000e+00> : vector<384x8xf32>
    %103 = tpu.matmul %100, %102, %cst_102 {dimension_numbers = #tpu.dot_dimension_numbers<[1], [0], [0], [1], [0, 0, 1, 1], [], []>} : vector<384x8xbf16>, vector<8x8xbf16>, vector<384x8xf32> -> vector<384x8xf32>
    %104 = arith.addf %99, %103 : vector<384x8xf32>
    %c73_103 = arith.constant 73 : index
    %c0_104 = arith.constant 0 : index
    %105 = vector.load %arg10[%c73_103, %c0_104] : memref<480x8xbf16, #tpu.memory_space<vmem>>, vector<384x8xbf16>
    %c8_105 = arith.constant 8 : index
    %c0_106 = arith.constant 0 : index
    %c0_107 = arith.constant 0 : index
    %106 = vector.load %arg3[%c8_105, %c0_106, %c0_107] : memref<9x8x8xbf16, #tpu.memory_space<vmem>>, vector<1x8x8xbf16>
    %107 = vector.shape_cast %106 : vector<1x8x8xbf16> to vector<8x8xbf16>
    %cst_108 = arith.constant dense<0.000000e+00> : vector<384x8xf32>
    %108 = tpu.matmul %105, %107, %cst_108 {dimension_numbers = #tpu.dot_dimension_numbers<[1], [0], [0], [1], [0, 0, 1, 1], [], []>} : vector<384x8xbf16>, vector<8x8xbf16>, vector<384x8xf32> -> vector<384x8xf32>
    %109 = arith.addf %104, %108 : vector<384x8xf32>
    %c0_109 = arith.constant 0 : index
    %c0_110 = arith.constant 0 : index
    %110 = vector.load %arg5[%c0_109, %c0_110] : memref<1x8xf32, #tpu.memory_space<vmem>>, vector<1x8xf32>
    %111 = vector.broadcast %110 : vector<1x8xf32> to vector<384x8xf32>
    %112 = arith.addf %109, %111 : vector<384x8xf32>
    %c0_111 = arith.constant 0 : index
    %c48_112 = arith.constant 48 : index
    %c0_113 = arith.constant 0 : index
    %113 = vector.load %arg1[%c0_111, %c48_112, %c0_113] : memref<1x480x4xbf16, #tpu.memory_space<vmem>>, vector<1x384x4xbf16>
    %114 = vector.shape_cast %113 : vector<1x384x4xbf16> to vector<384x4xbf16>
    %c0_114 = arith.constant 0 : index
    %c0_115 = arith.constant 0 : index
    %115 = vector.load %arg7[%c0_114, %c0_115] : memref<4x8xbf16, #tpu.memory_space<vmem>>, vector<4x8xbf16>
    %cst_116 = arith.constant dense<0.000000e+00> : vector<384x8xf32>
    %116 = tpu.matmul %114, %115, %cst_116 {dimension_numbers = #tpu.dot_dimension_numbers<[1], [0], [0], [1], [0, 0, 1, 1], [], []>} : vector<384x4xbf16>, vector<4x8xbf16>, vector<384x8xf32> -> vector<384x8xf32>
    %c0_117 = arith.constant 0 : index
    %c0_118 = arith.constant 0 : index
    %117 = vector.load %arg8[%c0_117, %c0_118] : memref<1x8xf32, #tpu.memory_space<vmem>>, vector<1x8xf32>
    %118 = vector.broadcast %117 : vector<1x8xf32> to vector<384x8xf32>
    %119 = arith.addf %116, %118 : vector<384x8xf32>
    %120 = arith.addf %112, %119 : vector<384x8xf32>
    %cst_119 = arith.constant 0.000000e+00 : f32
    %121 = vector.broadcast %cst_119 : f32 to vector<384x8xf32>
    %122 = arith.maximumf %120, %121 : vector<384x8xf32>
    %123 = tpu.transpose %122, [1, 0] : vector<384x8xf32> -> vector<8x384xf32>
    %124 = arith.truncf %123 : vector<8x384xf32> to vector<8x384xbf16>
    %c0_120 = arith.constant 0 : index
    %c0_121 = arith.constant 0 : index
    %c0_122 = arith.constant 0 : index
    %125 = vector.load %arg9[%c0_120, %c0_121, %c0_122] : memref<1x8x384xbf16, #tpu.memory_space<vmem>>, vector<1x8x384xbf16>
    %126 = vector.shape_cast %125 : vector<1x8x384xbf16> to vector<8x384xbf16>
    %127 = vector.shape_cast %124 : vector<8x384xbf16> to vector<1x8x384xbf16>
    tpu.vector_store %arg9[%c0_120, %c0_121, %c0_122], %127 {strides = array<i32>} : memref<1x8x384xbf16, #tpu.memory_space<vmem>>, vector<1x8x384xbf16>,
    return
  }
  func.func @transform_0(%arg0: i32) -> (i32, i32, i32) {
    %c0_i32 = arith.constant 0 : i32
    %c0_i32_0 = arith.constant 0 : i32
    %c0_i32_1 = arith.constant 0 : i32
    return %arg0, %c0_i32, %c0_i32_0 : i32, i32, i32
  }
  func.func @transform_1(%arg0: i32) -> (i32, i32, i32) {
    %c0_i32 = arith.constant 0 : i32
    %c0_i32_0 = arith.constant 0 : i32
    %c0_i32_1 = arith.constant 0 : i32
    %c0_i32_2 = arith.constant 0 : i32
    return %c0_i32, %c0_i32_0, %c0_i32_1 : i32, i32, i32
  }
  func.func @transform_2(%arg0: i32) -> (i32, i32, i32) {
    %c0_i32 = arith.constant 0 : i32
    %c0_i32_0 = arith.constant 0 : i32
    %c0_i32_1 = arith.constant 0 : i32
    %c0_i32_2 = arith.constant 0 : i32
    return %c0_i32, %c0_i32_0, %c0_i32_1 : i32, i32, i32
  }
  func.func @transform_3(%arg0: i32) -> (i32, i32) {
    %c0_i32 = arith.constant 0 : i32
    %c0_i32_0 = arith.constant 0 : i32
    %c0_i32_1 = arith.constant 0 : i32
    return %c0_i32, %c0_i32_0 : i32, i32
  }
  func.func @transform_4(%arg0: i32) -> (i32, i32) {
    %c0_i32 = arith.constant 0 : i32
    %c0_i32_0 = arith.constant 0 : i32
    %c0_i32_1 = arith.constant 0 : i32
    return %c0_i32, %c0_i32_0 : i32, i32
  }
  func.func @transform_5(%arg0: i32) -> (i32, i32) {
    %c0_i32 = arith.constant 0 : i32
    %c0_i32_0 = arith.constant 0 : i32
    %c0_i32_1 = arith.constant 0 : i32
    return %c0_i32, %c0_i32_0 : i32, i32
  }
  func.func @transform_6(%arg0: i32) -> (i32, i32) {
    %c0_i32 = arith.constant 0 : i32
    %c0_i32_0 = arith.constant 0 : i32
    %c0_i32_1 = arith.constant 0 : i32
    return %c0_i32, %c0_i32_0 : i32, i32
  }
  func.func @transform_7(%arg0: i32) -> (i32, i32) {
    %c0_i32 = arith.constant 0 : i32
    %c0_i32_0 = arith.constant 0 : i32
    %c0_i32_1 = arith.constant 0 : i32
    return %c0_i32, %c0_i32_0 : i32, i32
  }
  func.func @transform_8(%arg0: i32) -> (i32, i32, i32) {
    %c0_i32 = arith.constant 0 : i32
    %c0_i32_0 = arith.constant 0 : i32
    %c0_i32_1 = arith.constant 0 : i32
    return %arg0, %c0_i32, %c0_i32_0 : i32, i32, i32
  }
}

</mosaic_0001>

<bundles_post_ra>
// kernel: tpu_custom_call.1
= control target key start
LH: loop header
LB: loop body
LE: loop exit
PB: predicated region body
PF: predicated region fallthrough
CT: control target
= control target key end

     0   :  { %13 = vsyncpa [#allocation4], 0  ;;  %s18356_s0 = inlined_call_operand.vmem [shape: bf16[2,480,4], index: 0, kind: input, shape index: {}]   ;;  %s18357_s1 = inlined_call_operand.vmem [shape: bf16[9,4,8], index: 1, kind: input, shape index: {}]   ;;  %s18358_s2 = inlined_call_operand.vmem [shape: bf16[9,8,8], index: 2, kind: input, shape index: {}]   ;;  %s18359_s3 = inlined_call_operand.vmem [shape: f32[1,8], index: 3, kind: input, shape index: {}]   ;;  %s18360_s4 = inlined_call_operand.vmem [shape: f32[1,8], index: 4, kind: input, shape index: {}]   ;;  %s18361_s5 = inlined_call_operand.vmem [shape: f32[384,1], index: 5, kind: input, shape index: {}]   ;;  %s18362_s6 = inlined_call_operand.vmem [shape: bf16[4,8], index: 6, kind: input, shape index: {}]   ;;  %s18363_s7 = inlined_call_operand.vmem [shape: f32[1,8], index: 7, kind: input, shape index: {}]   ;;  %s18364_s8 = inlined_call_operand.hbm [shape: bf16[2,8,384], index: 8, kind: output, shape index: {}]  }
   0x1   :  { %15 = vsyncpa [#allocation4 + $0x1], 0  ;;  %s14911_s27 = smov 0   ;;  %s14913_s28 = smov 0  }
   0x2   :  { %s14915_s29 = smov 0   ;;  %s14917_s30 = smov 0  }
   0x3 LB: > { %s14932_s9 = sadd.s32 4294967295, %s14862_s30   ;;  %s11375_s10 = sadd.s32 4294967294, %s14862_s30   ;;  %s14862_s30 = sphi %s14917_s30, %s18712_s30   ;;  %s14858_s29 = sphi %s14915_s29, %s18711_s29   ;;  %s14854_s28 = sphi %s14913_s28, %s18710_s28   ;;  %s14850_s27 = sphi %s14911_s27, %s18709_s27  }
   0x4   : > { %s14936_s11 = sadd.s32 1, %s14862_s30   ;;  %s201_s12 = sadd.s32 1, %s14858_s29 }
   0x5   : > { %s198_s13 = ssub.s32 %s14862_s30, %s14936_s11  ;;  %p211_p0 = scmp.ne.s32.totalorder %s14858_s29, %s14854_s28 }
   0x6   : > { %p199_p1 = scmp.eq.s32.totalorder %s198_s13, 0  ;;  %p212_p2 = scmp.eq.s32.totalorder %s14932_s9, 1 }
   0x7   : > { %p217_p3 = scmp.ne.s32.totalorder %s14854_s28, %s14850_s27  ;;  %p218_p4 = scmp.eq.s32.totalorder %s11375_s10, 1 }
   0x8   : > { %s14947_s14 = scalar_select %p199_p1, %s14858_s29, %s201_s12  }
   0x9   : > { %p14949_p5 = por %p212_p2, %p211_p0  ;;  %p14953_p6 = por %p218_p4, %p217_p3 }
   0xa   : > { %p11378_p7 = scmp.ge.s32.totalorder %s14862_s30, 1  ;;  %p265_p8 = scmp.lt.s32.totalorder %s14862_s30, 3 }
   0xc   : > { %p266_p9 = pnand %p11378_p7, %p265_p8 }
   0xe   : > { %269 = sbr.rel (%p266_p9) target bundleno = 2329 (0x919), region = 52 }
  0x15   : > { %v11380_v0 = vld [vmem:[%s18357_s1 + $0x2] sm:$0x3]  ;;  %vm557_vm0 = vcmask 1041408   ;;  %p299_p10 = scmp.lt.s32.totalorder %s14932_s9, 1  ;;  %v361_v2 = vld [vmem:[%s18357_s1] sm:$0x3] }
  0x16   : > { %14447 = vmatprep.subr.msk.bf16.mxu0 %vm557_vm0, %v11380_v0  ;;  %v559_v1 = vsel %vm557_vm0, %v11380_v0, 0  ;;  %vm484_vm1 = vcmask 31744   ;;  %v1111_v14 = vsel %vm557_vm0, %v361_v2, 0  ;;  %vm813_vm2 = vsmask.f32 4352  ;;  %s14469_s19 = smul.u32 192, %s14932_s9 }
  0x17   : > { %12584 = vmatpush3.bf16.msra.mxu0 %v559_v1  ;;  %s300_s21 = scalar_select %p299_p10, %s14932_s9, 1  ;;  %v14986_v16 = vld [vmem:[%s18357_s1 + $0x4] sm:$0x3]  ;;  %vm1512_vm3 = vsmask.f32 7424  ;;  %vm305_vm4 = vcmask 64512  }
  0x18   : > { %14448 = vmatprep.subr.msk.bf16.mxu0 %vm557_vm0, %v361_v2  ;;  %18483 = vst [vmem:[#allocation6_spill] sm:$0xff] %v14986_v16  ;;  %vm6274_vm5 = vcmask 1043456   ;;  %vm7152_vm6 = vsmask.f32 3328  ;;  %vm7637_vm7 = vsmask.f32 256  ;;  %s18314_s23 = scalar_lea.hbm %s18364_s8, %s14469_s19 }
  0x19   : > { %s14468_s22 = smul.u32 240, %s300_s21  ;;  %s14865_s9 = smov [#allocation3]  }
  0x1a   : > { %s14804_s10 = sshll.u32 %s14865_s9, 4  ;;  %s14805_s10 = int_to_ptr.vmem [resolvable:$false] %s14804_s10 }
  0x1b   : > { %s14973_s25 = scalar_lea.vmem %s18356_s0, %s14468_s22  ;;  %s14806_s12 = scalar_lea.vmem %s14805_s10, 384 }
  0x1c   : > { %v312_v3 = vld [vmem:[%s14973_s25 + $0x8] sm:$0x8]  ;;  %v313_v4 = vld [vmem:[%s14973_s25 + $0xc] sm:$0xf]  ;;  %v314_v5 = vld [vmem:[%s14973_s25 + $0x10] sm:$0xf] }
  0x1d   : > { %v315_v6 = vld [vmem:[%s14973_s25 + $0x14] sm:$0xf]  ;;  %v316_v7 = vld [vmem:[%s14973_s25 + $0x18] sm:$0xf]  ;;  %v317_v8 = vld [vmem:[%s14973_s25 + $0x1c] sm:$0xf]  ;;  %v11381_v9 = vcombine.low %v313_v4, %v314_v5  ;;  %v11429_v10 = vcombine.low %v312_v3, %v313_v4 }
  0x1e   : > { %v11382_v11 = vcombine.low %v315_v6, %v316_v7  ;;  %v11430_v12 = vcombine.low %v314_v5, %v315_v6  ;;  %v11431_v13 = vcombine.low %v316_v7, %v317_v8  ;;  %v318_v15 = vld [vmem:[%s14973_s25 + $0x20] sm:$0xf]  ;;  %v319_v20 = vld [vmem:[%s14973_s25 + $0x24] sm:$0xf]  ;;  %v320_v21 = vld [vmem:[%s14973_s25 + $0x28] sm:$0xf] }
  0x1f   : > { %12585 = vmatprep.mubr.msk.bf16.mxu0 %vm484_vm1, %v11381_v9  ;;  %v815_v17 = vshrl.u32 %v11429_v10, 16  ;;  %v818_v18 = vshll.u32 %v11429_v10, 16  ;;  %v11383_v19 = vcombine.low %v317_v8, %v318_v15  ;;  %v321_v26 = vld [vmem:[%s14973_s25 + $0x2c] sm:$0xf]  ;;  %v322_v27 = vld [vmem:[%s14973_s25 + $0x30] sm:$0xf]  ;;  %v14998_v31 = vcombine.low %v318_v15, %v319_v20 }
  0x20   : > { %v823_v22 = vshrl.u32 %v11430_v12, 16  ;;  %v826_v23 = vshll.u32 %v11430_v12, 16  ;;  %v832_v24 = vshrl.u32 %v11431_v13, 16  ;;  %v835_v25 = vshll.u32 %v11431_v13, 16  ;;  %12586 = vmatmul.mubr.msk.bf16.vlgmr.msra.gmra.mrb[0].mxu0 %vm484_vm1, %v11382_v11  ;;  %v14995_v28 = vld [vmem:[%s14973_s25 + $0x34] sm:$0xf] }
  0x21   : > { %v817_v29 = vrot.slane %v815_v17, 3  ;;  %v820_v30 = vrot.slane %v818_v18, 4  ;;  %12634 = vmatpush3.bf16.msra.mxu0 %v1111_v14  ;;  %12589 = vmatprep.mubr.msk.bf16.mxu0 %vm484_vm1, %v11383_v19  ;;  %v15001_v32 = vld [vmem:[%s14973_s25 + $0x38] sm:$0xf]  ;;  %v15004_v33 = vld [vmem:[%s14973_s25 + $0x3c] sm:$0xf]  ;;  %v15011_v39 = vcombine.low %v320_v21, %v321_v26  ;;  %v15014_v40 = vcombine.low %v322_v27, %v14995_v28 }
  0x22   : > { %v825_v34 = vrot.slane %v823_v22, 3  ;;  %v828_v35 = vrot.slane %v826_v23, 4  ;;  %v834_v36 = vrot.slane %v832_v24, 3  ;;  %v837_v37 = vrot.slane %v835_v25, 4  ;;  %v15007_v38 = vld [vmem:[%s14973_s25 + $0x40] sm:$0xf]  ;;  %14449 = vmatprep.subr.msk.bf16.mxu0 %vm557_vm0, %v14986_v16 }
  0x23   : > { %v15017_v41 = vld [vmem:[%s14973_s25 + $0x44] sm:$0xf]  ;;  %v15020_v42 = vld [vmem:[%s14973_s25 + $0x48] sm:$0xf]  ;;  %v15023_v43 = vld [vmem:[%s14973_s25 + $0x4c] sm:$0xf]  ;;  %v11384_v44 = vcombine.low %v319_v20, %v320_v21  ;;  %v15027_v45 = vcombine.low %v15001_v32, %v15004_v33  ;;  %v11385_v50 = vcombine.low %v321_v26, %v322_v27  ;;  %v821_v62 = vor.u32 %v820_v30, %v817_v29 }
  0x24   : > { %v15031_v46 = vcombine.low %v15007_v38, %v15017_v41  ;;  %v15034_v47 = vld [vmem:[%s14973_s25 + $0x50] sm:$0xf]  ;;  %v15037_v48 = vld [vmem:[%s14973_s25 + $0x54] sm:$0xf]  ;;  %v15040_v49 = vld [vmem:[%s14973_s25 + $0x58] sm:$0xf]  ;;  %v15044_v51 = vcombine.low %v15020_v42, %v15023_v43  ;;  %v15059_v56 = vor.u32 %v837_v37, %v834_v36  ;;  %v829_v3 = vor.u32 %v828_v35, %v825_v34 }
  0x25   : > { %v15048_v52 = vcombine.low %v15034_v47, %v15037_v48  ;;  %v15051_v53 = vld [vmem:[%s14973_s25 + $0x5c] sm:$0xf]  ;;  %v15054_v54 = vld [vmem:[%s14973_s25 + $0x60] sm:$0xf]  ;;  %v15057_v55 = vld [vmem:[%s14973_s25 + $0x64] sm:$0xf]  ;;  %v11386_v25 = vcombine.low %v14995_v28, %v15001_v32  ;;  %v11387_v26 = vcombine.low %v15004_v33, %v15007_v38  ;;  %v11388_v28 = vcombine.low %v15017_v41, %v15020_v42 }
  0x26   : > { %v15063_v57 = vcombine.low %v15040_v49, %v15051_v53  ;;  %v15066_v58 = vld [vmem:[%s14973_s25 + $0x68] sm:$0xf]  ;;  %v15070_v59 = vcombine.low %v15054_v54, %v15057_v55  ;;  %v15073_v60 = vld [vmem:[%s14973_s25 + $0x6c] sm:$0xf]  ;;  %v15076_v61 = vld [vmem:[%s14973_s25 + $0x70] sm:$0xf]  ;;  %v15124_v13 = vsel %vm813_vm2, %v821_v62, %v829_v3  ;;  %v15145_v20 = vsel %vm813_vm2, %v829_v3, %v15059_v56 }
  0x27   : > { %v15080_v63 = vcombine.low %v15066_v58, %v15073_v60  ;;  %v15083_v0 = vld [vmem:[%s14973_s25 + $0x74] sm:$0xf]  ;;  %v15086_v1 = vld [vmem:[%s14973_s25 + $0x78] sm:$0xf]  ;;  %v15089_v2 = vld [vmem:[%s14973_s25 + $0x7c] sm:$0xf]  ;;  %v11389_v32 = vcombine.low %v15023_v43, %v15034_v47 }
  0x28   : > { %12590 = vmatmul.mubr.msk.bf16.gmra.mrb[4].mxu0 %vm484_vm1, %v11384_v44  ;;  %v15094_v4 = vcombine.low %v15076_v61, %v15083_v0  ;;  %v15097_v5 = vld [vmem:[%s14973_s25 + $0x80] sm:$0xf]  ;;  %v15101_v6 = vcombine.low %v15086_v1, %v15089_v2  ;;  %v15104_v7 = vld [vmem:[%s14973_s25 + $0x84] sm:$0xf]  ;;  %v15107_v8 = vld [vmem:[%s14973_s25 + $0x88] sm:$0xf] }
  0x29   : > { %12593 = vmatprep.mubr.msk.bf16.mxu0 %vm484_vm1, %v11385_v50  ;;  %v15112_v9 = vcombine.low %v15097_v5, %v15104_v7  ;;  %v15115_v10 = vld [vmem:[%s14973_s25 + $0x8c] sm:$0xf]  ;;  %v15118_v11 = vld [vmem:[%s14973_s25 + $0x90] sm:$0xf]  ;;  %v15121_v12 = vld [vmem:[%s14973_s25 + $0x94] sm:$0xf] }
  0x2a   : > { %18484 = vst [vmem:[#allocation7_spill] sm:$0xff] %v15124_v13  ;;  %v15128_v14 = vcombine.low %v15107_v8, %v15115_v10  ;;  %v15131_v15 = vld [vmem:[%s14973_s25 + $0x98] sm:$0xf]  ;;  %v15135_v17 = vcombine.low %v15118_v11, %v15121_v12  ;;  %v15138_v18 = vld [vmem:[%s14973_s25 + $0x9c] sm:$0xf]  ;;  %18485 = vst [vmem:[#allocation8_spill] sm:$0xff] %v15145_v20 }
  0x2b   : > { %v15141_v19 = vld [vmem:[%s14973_s25 + $0xa0] sm:$0xf]  ;;  %v15149_v21 = vcombine.low %v15131_v15, %v15138_v18  ;;  %v15152_v22 = vld [vmem:[%s14973_s25 + $0xa4] sm:$0xf]  ;;  %v15155_v23 = vld [vmem:[%s14973_s25 + $0xa8] sm:$0xf] }
  0x2c   : > { %18486 = vst [vmem:[#allocation9_spill] sm:$0xff] %v15152_v22  ;;  %v15158_v24 = vld [vmem:[%s14973_s25 + $0xac] sm:$0xf]  ;;  %v15166_v27 = vcombine.low %v15141_v19, %v15152_v22  ;;  %v15169_v29 = vld [vmem:[%s14973_s25 + $0xb0] sm:$0xf]  ;;  %v841_v43 = vshrl.u32 %v14998_v31, 16 }
  0x2d   : > { %18487 = vst [vmem:[#allocation10_spill] sm:$0xff] %v15158_v24  ;;  %18488 = vst [vmem:[#allocation11_spill] sm:$0xff] %v15169_v29  ;;  %v15173_v30 = vcombine.low %v15155_v23, %v15158_v24  ;;  %v15176_v34 = vld [vmem:[%s14973_s25 + $0xb4] sm:$0xf]  ;;  %v15179_v35 = vld [vmem:[%s14973_s25 + $0xb8] sm:$0xf] }
  0x2e   : > { %18489 = vst [vmem:[#allocation12_spill] sm:$0xff] %v15176_v34  ;;  %18490 = vst [vmem:[#allocation13_spill] sm:$0xff] %v15179_v35  ;;  %v15189_v36 = vcombine.low %v15169_v29, %v15176_v34  ;;  %v15192_v37 = vld [vmem:[%s14973_s25 + $0xbc] sm:$0xf]  ;;  %v15195_v38 = vld [vmem:[%s14973_s25 + $0xc0] sm:$0xf] }
  0x2f   : > { %18491 = vst [vmem:[#allocation14_spill] sm:$0xff] %v15192_v37  ;;  %18492 = vst [vmem:[#allocation15_spill] sm:$0xff] %v15195_v38  ;;  %v15198_v44 = vld [vmem:[%s14973_s25 + $0xc4] sm:$0xf]  ;;  %v15204_v41 = vcombine.low %v15179_v35, %v15192_v37  ;;  %v844_v3 = vshll.u32 %v14998_v31, 16  ;;  %v850_v50 = vshrl.u32 %v15011_v39, 16 }
  0x30   : > { %18493 = vst [vmem:[#allocation16_spill] sm:$0xff] %v15198_v44  ;;  %v15208_v42 = vcombine.low %v15195_v38, %v15198_v44  ;;  %12594 = vmatmul.mubr.msk.bf16.gmra.mrb[8].mxu0 %vm484_vm1, %v11386_v25  ;;  %v843_v33 = vrot.slane %v841_v43, 3  ;;  %v853_v20 = vshll.u32 %v15011_v39, 16  ;;  %v859_v16 = vshrl.u32 %v15014_v40, 16 }
  0x31   : > { %v862_v13 = vshll.u32 %v15014_v40, 16  ;;  %12597 = vmatprep.mubr.msk.bf16.mxu0 %vm484_vm1, %v11387_v26  ;;  %v846_v44 = vrot.slane %v844_v3, 4  ;;  %v852_v47 = vrot.slane %v850_v50, 3  ;;  %v868_v37 = vshrl.u32 %v15027_v45, 16 }
  0x32   : > { %v871_v62 = vshll.u32 %v15027_v45, 16  ;;  %v855_v31 = vrot.slane %v853_v20, 4  ;;  %v861_v38 = vrot.slane %v859_v16, 3  ;;  %v877_v25 = vshrl.u32 %v15031_v46, 16 }
  0x33   : > { %v864_v34 = vrot.slane %v862_v13, 4  ;;  %v847_v43 = vor.u32 %v846_v44, %v843_v33  ;;  %v870_v35 = vrot.slane %v868_v37, 3  ;;  %v880_v24 = vshll.u32 %v15031_v46, 16 }
  0x34   : > { %v873_v39 = vrot.slane %v871_v62, 4  ;;  %v856_v29 = vor.u32 %v855_v31, %v852_v47  ;;  %v879_v22 = vrot.slane %v877_v25, 3  ;;  %v886_v26 = vshrl.u32 %v15044_v51, 16 }
  0x35   : > { %v865_v40 = vor.u32 %v864_v34, %v861_v38  ;;  %v15229_v50 = vsel %vm813_vm2, %v15059_v56, %v847_v43  ;;  %v882_v20 = vrot.slane %v880_v24, 4  ;;  %v889_v16 = vshll.u32 %v15044_v51, 16 }
  0x36   : > { %v874_v45 = vor.u32 %v873_v39, %v870_v35  ;;  %v15233_v13 = vsel %vm813_vm2, %v847_v43, %v856_v29  ;;  %v888_v46 = vrot.slane %v886_v26, 3  ;;  %v895_v34 = vshrl.u32 %v15048_v52, 16 }
  0x37   : > { %v15236_v33 = vsel %vm813_vm2, %v856_v29, %v865_v40  ;;  %v883_v38 = vor.u32 %v882_v20, %v879_v22  ;;  %v891_v44 = vrot.slane %v889_v16, 4  ;;  %v898_v56 = vshll.u32 %v15048_v52, 16 }
  0x38   : > { %v15240_v37 = vsel %vm813_vm2, %v865_v40, %v874_v45  ;;  %12598 = vmatmul.mubr.msk.bf16.gmra.mrb[12].mxu0 %vm484_vm1, %v11388_v28  ;;  %v897_v24 = vrot.slane %v895_v34, 3  ;;  %v904_v51 = vshrl.u32 %v15063_v57, 16  ;;  %v907_v35 = vshll.u32 %v15063_v57, 16 }
  0x39   : > { %v913_v29 = vshrl.u32 %v15070_v59, 16  ;;  %12601 = vmatprep.mubr.msk.bf16.mxu0 %vm484_vm1, %v11389_v32  ;;  %v15249_v47 = vsel %vm813_vm2, %v874_v45, %v883_v38  ;;  %v892_v62 = vor.u32 %v891_v44, %v888_v46  ;;  %v900_v3 = vrot.slane %v898_v56, 4 }
  0x3a   : > { %v916_v22 = vshll.u32 %v15070_v59, 16  ;;  %v906_v31 = vrot.slane %v904_v51, 3  ;;  %v909_v52 = vrot.slane %v907_v35, 4  ;;  %v922_v28 = vshrl.u32 %v15080_v63, 16 }
  0x3b   : > { %v915_v25 = vrot.slane %v913_v29, 3  ;;  %v15254_v43 = vsel %vm813_vm2, %v883_v38, %v892_v62  ;;  %v901_v57 = vor.u32 %v900_v3, %v897_v24  ;;  %v925_v40 = vshll.u32 %v15080_v63, 16 }
  0x3c   : > { %v918_v39 = vrot.slane %v916_v22, 4  ;;  %v910_v32 = vor.u32 %v909_v52, %v906_v31  ;;  %v924_v26 = vrot.slane %v922_v28, 3  ;;  %v931_v45 = vshrl.u32 %v15094_v4, 16 }
  0x3d   : > { %v934_v20 = vshll.u32 %v15094_v4, 16  ;;  %v15260_v59 = vsel %vm813_vm2, %v892_v62, %v901_v57  ;;  %v927_v46 = vrot.slane %v925_v40, 4  ;;  %v940_v34 = vshrl.u32 %v15101_v6, 16 }
  0x3e   : > { %v919_v16 = vor.u32 %v918_v39, %v915_v25  ;;  %v15264_v38 = vsel %vm813_vm2, %v901_v57, %v910_v32  ;;  %v933_v44 = vrot.slane %v931_v45, 3  ;;  %v943_v63 = vshll.u32 %v15101_v6, 16 }
  0x3f   : > { %v936_v56 = vrot.slane %v934_v20, 4  ;;  %v928_v51 = vor.u32 %v927_v46, %v924_v26  ;;  %v942_v35 = vrot.slane %v940_v34, 3  ;;  %v949_v4 = vshrl.u32 %v15112_v9, 16 }
  0x40   : > { %v15268_v24 = vsel %vm813_vm2, %v910_v32, %v919_v16  ;;  %v18494_v29 = vcombine.low %v15037_v48, %v15040_v49  ;;  %v945_v3 = vrot.slane %v943_v63, 4  ;;  %v952_v22 = vshll.u32 %v15112_v9, 16 }
  0x41   : > { %v937_v62 = vor.u32 %v936_v56, %v933_v44  ;;  %v958_v31 = vshrl.u32 %v15128_v14, 16  ;;  %v18495_v6 = vcombine.low %v15051_v53, %v15054_v54  ;;  %v15282_v52 = vsel %vm813_vm2, %v919_v16, %v928_v51 }
  0x42   : > { %12602 = vmatmul.mubr.msk.bf16.gmra.mrb[16].mxu0 %vm484_vm1, %v18494_v29  ;;  %v951_v25 = vrot.slane %v949_v4, 3  ;;  %v961_v28 = vshll.u32 %v15128_v14, 16  ;;  %v967_v48 = vshrl.u32 %v15135_v17, 16  ;;  %v946_v57 = vor.u32 %v945_v3, %v942_v35 }
  0x43   : > { %12605 = vmatprep.mubr.msk.bf16.mxu0 %vm484_vm1, %v18495_v6  ;;  %v15287_v49 = vsel %vm813_vm2, %v928_v51, %v937_v62  ;;  %v954_v9 = vrot.slane %v952_v22, 4  ;;  %v960_v39 = vrot.slane %v958_v31, 3  ;;  %v970_v53 = vshll.u32 %v15135_v17, 16 }
  0x44   : > { %v963_v40 = vrot.slane %v961_v28, 4  ;;  %v969_v32 = vrot.slane %v967_v48, 3  ;;  %v976_v54 = vshrl.u32 %v15149_v21, 16  ;;  %v15292_v26 = vsel %vm813_vm2, %v937_v62, %v946_v57 }
  0x45   : > { %v955_v45 = vor.u32 %v954_v9, %v951_v25  ;;  %v979_v14 = vshll.u32 %v15149_v21, 16  ;;  %v985_v20 = vshrl.u32 %v15166_v27, 16  ;;  %v972_v46 = vrot.slane %v970_v53, 4 }
  0x46   : > { %v964_v16 = vor.u32 %v963_v40, %v960_v39  ;;  %v978_v34 = vrot.slane %v976_v54, 3  ;;  %v988_v44 = vshll.u32 %v15166_v27, 16  ;;  %v994_v51 = vshrl.u32 %v15173_v30, 16 }
  0x47   : > { %v15298_v56 = vsel %vm813_vm2, %v946_v57, %v955_v45  ;;  %v981_v63 = vrot.slane %v979_v14, 4  ;;  %v987_v17 = vrot.slane %v985_v20, 3  ;;  %v973_v4 = vor.u32 %v972_v46, %v969_v32 }
  0x48   : > { %v15302_v35 = vsel %vm813_vm2, %v955_v45, %v964_v16  ;;  %v990_v21 = vrot.slane %v988_v44, 4  ;;  %v997_v29 = vshll.u32 %v15173_v30, 16  ;;  %v18496_v62 = vcombine.low %v15057_v55, %v15066_v58  ;;  %v360_v58 = vld [vmem:[%s14973_s25 + $0xc8] sm:$0xf] }
  0x49   : > { %v982_v27 = vor.u32 %v981_v63, %v978_v34  ;;  %v996_v3 = vrot.slane %v994_v51, 3  ;;  %v1003_v22 = vshrl.u32 %v15189_v36, 16  ;;  %v1006_v31 = vshll.u32 %v15189_v36, 16 }
  0x4a   : > { %12606 = vmatmul.mubr.msk.bf16.gmra.mrb[20].mxu0 %vm484_vm1, %v18496_v62  ;;  %v18497_v6 = vcombine.low %v15073_v60, %v15076_v61  ;;  %v15316_v25 = vsel %vm813_vm2, %v964_v16, %v973_v4  ;;  %v991_v30 = vor.u32 %v990_v21, %v987_v17  ;;  %v999_v28 = vrot.slane %v997_v29, 4 }
  0x4b   : > { %v1012_v55 = vshrl.u32 %v15204_v41, 16  ;;  %v15321_v48 = vsel %vm813_vm2, %v973_v4, %v982_v27  ;;  %v1005_v57 = vrot.slane %v1003_v22, 3  ;;  %v1008_v9 = vrot.slane %v1006_v31, 4  ;;  %v18501_v22 = vld [vmem:[#allocation13_spill] sm:$0xff]  ;;  %v18502_v31 = vld [vmem:[#allocation12_spill] sm:$0xff] }
  0x4c   : > { %12609 = vmatprep.mubr.msk.bf16.mxu0 %vm484_vm1, %v18497_v6  ;;  %v1015_v36 = vshll.u32 %v15204_v41, 16  ;;  %v15325_v39 = vsel %vm813_vm2, %v982_v27, %v991_v30  ;;  %v1000_v60 = vor.u32 %v999_v28, %v996_v3  ;;  %v11394_v40 = vcombine.low %v15083_v0, %v15086_v1  ;;  %v18500_v27 = vld [vmem:[#allocation10_spill] sm:$0xff] }
  0x4d   : > { %v1014_v61 = vrot.slane %v1012_v55, 3  ;;  %v1009_v32 = vor.u32 %v1008_v9, %v1005_v57  ;;  %v11395_v54 = vcombine.low %v15089_v2, %v15097_v5  ;;  %v11453_v45 = vcombine.low %v360_v58, %v360_v58  ;;  %v18504_v6 = vld [vmem:[#allocation14_spill] sm:$0xff]  ;;  %v11528_v57 = vld [vmem:[%s18357_s1 + $0x6] sm:$0x3]  ;;  %v18508_v9 = vld [vmem:[#allocation8_spill] sm:$0xff] }
  0x4e   : > { %v1017_v53 = vrot.slane %v1015_v36, 4  ;;  %v15332_v14 = vsel %vm813_vm2, %v991_v30, %v1000_v60  ;;  %v1021_v0 = vshrl.u32 %v15208_v42, 16  ;;  %v1024_v1 = vshll.u32 %v15208_v42, 16  ;;  %v18507_v28 = vld [vmem:[#allocation6_spill] sm:$0xff] }
  0x4f   : > { %v15335_v20 = vsel %vm813_vm2, %v1000_v60, %v1009_v32  ;;  %v1030_v2 = vshrl.u32 %v11453_v45, 16  ;;  %v1033_v5 = vshll.u32 %v11453_v45, 16  ;;  %v11396_v17 = vcombine.low %v15104_v7, %v15107_v8  ;;  %v18498_v8 = vld [vmem:[#allocation9_spill] sm:$0xff]  ;;  %v14602_v60 = vld [vmem:[%s14973_s25 + $0x2c] sm:$0xff]  }
  0x50   : > { %v1018_v41 = vor.u32 %v1017_v53, %v1014_v61  ;;  %v1023_v46 = vrot.slane %v1021_v0, 3  ;;  %v1026_v34 = vrot.slane %v1024_v1, 4  ;;  %v11397_v4 = vcombine.low %v15115_v10, %v15118_v11  ;;  %v18499_v11 = vld [vmem:[#allocation11_spill] sm:$0xff]  ;;  %v15449_v1 = vld [vmem:[%s18357_s1 + $0x8] sm:$0x3] }
  0x51   : > { %v1032_v44 = vrot.slane %v1030_v2, 3  ;;  %v1035_v63 = vrot.slane %v1033_v5, 4  ;;  %v11398_v62 = vcombine.low %v15121_v12, %v15131_v15  ;;  %v11399_v7 = vcombine.low %v15138_v18, %v15141_v19  ;;  %v18503_v15 = vld [vmem:[#allocation15_spill] sm:$0xff]  ;;  %v18505_v19 = vld [vmem:[#allocation16_spill] sm:$0xff] }
  0x52   : > { %12610 = vmatmul.mubr.msk.bf16.gmra.mrb[24].mxu0 %vm484_vm1, %v11394_v40  ;;  %v15339_v16 = vsel %vm813_vm2, %v1009_v32, %v1018_v41  ;;  %v1027_v51 = vor.u32 %v1026_v34, %v1023_v46  ;;  %v11400_v10 = vcombine.low %v18498_v8, %v15155_v23  ;;  %v11401_v3 = vcombine.low %v18500_v27, %v18499_v11  ;;  %v18506_v23 = vld [vmem:[#allocation7_spill] sm:$0xff]  ;;  %v14604_v5 = vld [vmem:[%s14973_s25 + $0x3c] sm:$0xff]  }
  0x53   : > { %12613 = vmatprep.mubr.msk.bf16.mxu0 %vm484_vm1, %v11395_v54  ;;  %v1036_v21 = vor.u32 %v1035_v63, %v1032_v44  ;;  %v11402_v12 = vcombine.low %v18502_v31, %v18501_v22  ;;  %v11403_v18 = vcombine.low %v18504_v6, %v18503_v15  ;;  %v11404_v30 = vcombine.low %v18505_v19, %v360_v58  ;;  %v14603_v53 = vld [vmem:[%s14973_s25 + $0x34] sm:$0xff]   ;;  %v14605_v63 = vld [vmem:[%s14973_s25 + $0x44] sm:$0xff]   ;;  %v14608_v19 = vld [vmem:[%s14973_s25 + $0x5c] sm:$0xff]  }
  0x54   : > { %v1028_v29 = vsel %vm813_vm2, %v1018_v41, %v1027_v51  ;;  %v1782_v55 = vsel %vm557_vm0, %v18507_v28, 0  ;;  %v1545_v54 = vshll.u32 %v14602_v60, 16  ;;  %v1553_v0 = vshll.u32 %v14603_v53, 16  ;;  %v14607_v27 = vld [vmem:[%s14973_s25 + $0x54] sm:$0xff]  }
  0x55   : > { %v15350_v42 = vsel %vm813_vm2, %v1027_v51, %v1036_v21  ;;  %v1573_v31 = vshrl.u32 %v14605_v63, 16  ;;  %v1585_v6 = vshll.u32 %v14607_v27, 16 }
  0x56   : > { %v1547_v2 = vrot.slane %v1545_v54, 1  ;;  %v1555_v44 = vrot.slane %v1553_v0, 1  ;;  %v14613_v54 = vld [vmem:[%s14973_s25 + $0x84] sm:$0xff]  }
  0x57   : > { %v1587_v28 = vrot.slane %v1585_v6, 1  ;;  %v1633_v0 = vshll.u32 %v14613_v54, 16 }
  0x5a   : > { %12614 = vmatmul.mubr.msk.bf16.gmra.mrb[28].mxu0 %vm484_vm1, %v11396_v17  ;;  %v1561_v17 = vshll.u32 %v14604_v5, 16 }
  0x5b   : > { %12617 = vmatprep.mubr.msk.bf16.mxu0 %vm484_vm1, %v11397_v4  ;;  %v1557_v4 = vshrl.u32 %v14603_v53, 16 }
  0x5d   : > { %v1559_v8 = vor.u32 %v1557_v4, %v1555_v44  ;;  %v1637_v4 = vshrl.u32 %v14613_v54, 16 }
  0x62   : > { %12618 = vmatmul.mubr.msk.bf16.gmra.mrb[32].mxu0 %vm484_vm1, %v11398_v62  ;;  %v1563_v62 = vrot.slane %v1561_v17, 1 }
  0x63   : > { %12621 = vmatprep.mubr.msk.bf16.mxu0 %vm484_vm1, %v11399_v7  ;;  %v14606_v7 = vld [vmem:[%s14973_s25 + $0x4c] sm:$0xff]  }
  0x64   : > { %v1564_v22 = vsel %vm1512_vm3, %v1559_v8, %v1563_v62  ;;  %v1581_v15 = vshrl.u32 %v14606_v7, 16 }
  0x6a   : > { %12622 = vmatmul.mubr.msk.bf16.gmra.mrb[36].mxu0 %vm484_vm1, %v11400_v10 }
  0x6b   : > { %12625 = vmatprep.mubr.msk.bf16.mxu0 %vm484_vm1, %v11401_v3  ;;  %v1577_v3 = vshll.u32 %v14606_v7, 16  ;;  %v14616_v7 = vld [vmem:[%s14973_s25 + $0x9c] sm:$0xff]  }
  0x72   : > { %12626 = vmatmul.mubr.msk.bf16.gmra.mrb[40].mxu0 %vm484_vm1, %v11402_v12 }
  0x73   : > { %12629 = vmatprep.mubr.msk.bf16.mxu0 %vm484_vm1, %v11403_v18  ;;  %v1579_v18 = vrot.slane %v1577_v3, 1  ;;  %v1657_v3 = vshll.u32 %v14616_v7, 16 }
  0x7a   : > { %12630 = vmatmul.mubr.msk.bf16.gmra.mrb[44].mxu0 %vm484_vm1, %v11404_v30 }
  0x7b   : > { %12635 = vmatprep.mubr.msk.bf16.mxu0 %vm484_vm1, %v18506_v23  ;;  %v1583_v23 = vor.u32 %v1581_v15, %v1579_v18  ;;  %v1661_v15 = vshrl.u32 %v14616_v7, 16 }
  0x82   : > { %12636 = vmatmul.mubr.msk.bf16.vlgmr.msra.gmra.mrb[0].mxu0 %vm484_vm1, %v18508_v9 }
  0x83   : > { %12684 = vmatpush3.bf16.msra.mxu0 %v1782_v55  ;;  %12639 = vmatprep.mubr.msk.bf16.mxu0 %vm484_vm1, %v15229_v50  ;;  %v15413_v50 = vld [vmem:[%s14973_s25 + $0x20] sm:$0xf]  ;;  %v14609_v55 = vld [vmem:[%s14973_s25 + $0x64] sm:$0xff]  }
  0x84   : > { %14450 = vmatprep.subr.msk.bf16.mxu0 %vm557_vm0, %v11528_v57 }
  0x8a   : > { %12640 = vmatmul.mubr.msk.bf16.gmra.mrb[4].mxu0 %vm484_vm1, %v15233_v13  ;;  %v15416_v13 = vld [vmem:[%s14973_s25 + $0x24] sm:$0xf] }
  0x8b   : > { %12643 = vmatprep.mubr.msk.bf16.mxu0 %vm484_vm1, %v15236_v33  ;;  %v15730_v33 = vld [vmem:[%s14973_s25 + $0xc8] sm:$0xf] }
  0x8c   : > { %18512 = vst [vmem:[#allocation13_spill] sm:$0xff] %v15730_v33 }
  0x92   : > { %12644 = vmatmul.mubr.msk.bf16.gmra.mrb[8].mxu0 %vm484_vm1, %v15240_v37  ;;  %v14598_v37 = vld [vmem:[%s14973_s25 + $0xc] sm:$0xff]  }
  0x93   : > { %12647 = vmatprep.mubr.msk.bf16.mxu0 %vm484_vm1, %v15249_v47  ;;  %v14599_v47 = vld [vmem:[%s14973_s25 + $0x14] sm:$0xff]  }
  0x9a   : > { %12648 = vmatmul.mubr.msk.bf16.gmra.mrb[12].mxu0 %vm484_vm1, %v15254_v43  ;;  %v1516_v43 = vshll.u32 %v14598_v37, 16 }
  0x9b   : > { %12651 = vmatprep.mubr.msk.bf16.mxu0 %vm484_vm1, %v15260_v59  ;;  %v1514_v59 = vshrl.u32 %v14598_v37, 16  ;;  %v1589_v37 = vshrl.u32 %v14607_v27, 16  ;;  %v14617_v27 = vld [vmem:[%s14973_s25 + $0xa4] sm:$0xff]  }
  0x9c   : > { %v1665_v6 = vshll.u32 %v14617_v27, 16 }
  0xa2   : > { %12652 = vmatmul.mubr.msk.bf16.gmra.mrb[16].mxu0 %vm484_vm1, %v15264_v38  ;;  %v1518_v38 = vrot.slane %v1516_v43, 1  ;;  %v1597_v43 = vshrl.u32 %v14608_v19, 16 }
  0xa3   : > { %12655 = vmatprep.mubr.msk.bf16.mxu0 %vm484_vm1, %v15268_v24  ;;  %v1521_v24 = vshll.u32 %v14599_v47, 16 }
  0xaa   : > { %12656 = vmatmul.mubr.msk.bf16.gmra.mrb[20].mxu0 %vm484_vm1, %v15282_v52  ;;  %v14600_v52 = vld [vmem:[%s14973_s25 + $0x1c] sm:$0xff]  }
  0xab   : > { %12659 = vmatprep.mubr.msk.bf16.mxu0 %vm484_vm1, %v15287_v49  ;;  %v1519_v49 = vor.u32 %v1518_v38, %v1514_v59  ;;  %v1601_v59 = vshll.u32 %v14609_v55, 16 }
  0xb2   : > { %12660 = vmatmul.mubr.msk.bf16.gmra.mrb[24].mxu0 %vm484_vm1, %v15292_v26  ;;  %v1523_v26 = vrot.slane %v1521_v24, 1  ;;  %v14610_v24 = vld [vmem:[%s14973_s25 + $0x6c] sm:$0xff]  }
  0xb3   : > { %12663 = vmatprep.mubr.msk.bf16.mxu0 %vm484_vm1, %v15298_v56  ;;  %v14601_v56 = vld [vmem:[%s14973_s25 + $0x24] sm:$0xff]  }
  0xb4   : > { %v1524_v58 = vsel %vm1512_vm3, %v1519_v49, %v1523_v26  ;;  %v1537_v36 = vshll.u32 %v14601_v56, 16 }
  0xb6   : > { %v1539_v32 = vrot.slane %v1537_v36, 1  ;;  %v1613_v36 = vshrl.u32 %v14610_v24, 16 }
  0xba   : > { %12664 = vmatmul.mubr.msk.bf16.gmra.mrb[28].mxu0 %vm484_vm1, %v15302_v35  ;;  %v1529_v35 = vshll.u32 %v14600_v52, 16 }
  0xbb   : > { %12667 = vmatprep.mubr.msk.bf16.mxu0 %vm484_vm1, %v15316_v25  ;;  %v1525_v25 = vshrl.u32 %v14599_v47, 16  ;;  %v1588_v47 = vsel %vm1512_vm3, %v1583_v23, %v1587_v28 }
  0xbd   : > { %v1527_v61 = vor.u32 %v1525_v25, %v1523_v26  ;;  %v1603_v26 = vrot.slane %v1601_v59, 1 }
  0xc2   : > { %12668 = vmatmul.mubr.msk.bf16.gmra.mrb[32].mxu0 %vm484_vm1, %v15321_v48  ;;  %v1533_v48 = vshrl.u32 %v14600_v52, 16  ;;  %v1591_v52 = vor.u32 %v1589_v37, %v1587_v28  ;;  %v1667_v28 = vrot.slane %v1665_v6, 1  ;;  %v1669_v37 = vshrl.u32 %v14617_v27, 16  ;;  %v15538_v6 = vld [vmem:[%s14973_s25 + $0x34] sm:$0xf] }
  0xc3   : > { %12671 = vmatprep.mubr.msk.bf16.mxu0 %vm484_vm1, %v15325_v39  ;;  %v1531_v39 = vrot.slane %v1529_v35, 1  ;;  %v1609_v35 = vshll.u32 %v14610_v24, 16 }
  0xc5   : > { %v1535_v40 = vor.u32 %v1533_v48, %v1531_v39  ;;  %v1532_v45 = vsel %vm1512_vm3, %v1527_v61, %v1531_v39  ;;  %v14612_v61 = vld [vmem:[%s14973_s25 + $0x7c] sm:$0xff]  }
  0xc7   : > { %v1540_v41 = vsel %vm1512_vm3, %v1535_v40, %v1539_v32 }
  0xca   : > { %12672 = vmatmul.mubr.msk.bf16.gmra.mrb[36].mxu0 %vm484_vm1, %v15332_v14  ;;  %v1541_v14 = vshrl.u32 %v14601_v56, 16  ;;  %v14611_v56 = vld [vmem:[%s14973_s25 + $0x74] sm:$0xff]  }
  0xcb   : > { %12675 = vmatprep.mubr.msk.bf16.mxu0 %vm484_vm1, %v15335_v20  ;;  %v2528_v20 = vsel %vm557_vm0, %v11528_v57, 0  ;;  %v1593_v57 = vshll.u32 %v14608_v19, 16  ;;  %v1617_v39 = vshll.u32 %v14611_v56, 16  ;;  %v14618_v19 = vld [vmem:[%s14973_s25 + $0xac] sm:$0xff]  }
  0xcc   : > { %v1543_v46 = vor.u32 %v1541_v14, %v1539_v32 }
  0xcd   : > { %v1595_v38 = vrot.slane %v1593_v57, 1  ;;  %v1619_v53 = vrot.slane %v1617_v39, 1  ;;  %v1673_v57 = vshll.u32 %v14618_v19, 16 }
  0xce   : > { %v1548_v51 = vsel %vm1512_vm3, %v1543_v46, %v1547_v2 }
  0xcf   : > { %v1599_v49 = vor.u32 %v1597_v43, %v1595_v38  ;;  %v1596_v25 = vsel %vm1512_vm3, %v1591_v52, %v1595_v38  ;;  %v1677_v43 = vshrl.u32 %v14618_v19, 16  ;;  %v14620_v38 = vld [vmem:[%s14973_s25 + $0xbc] sm:$0xff]   ;;  %v1675_v24 = vrot.slane %v1673_v57, 1 }
  0xd0   : > { %v1671_v52 = vor.u32 %v1669_v37, %v1667_v28  ;;  %v15544_v19 = vld [vmem:[%s14973_s25 + $0x3c] sm:$0xf] }
  0xd1   : > { %v1604_v48 = vsel %vm1512_vm3, %v1599_v49, %v1603_v26  ;;  %v14621_v49 = vld [vmem:[%s14973_s25 + $0xc4] sm:$0xff]  }
  0xd2   : > { %12676 = vmatmul.mubr.msk.bf16.gmra.mrb[40].mxu0 %vm484_vm1, %v15339_v16  ;;  %v1549_v16 = vshrl.u32 %v14602_v60, 16  ;;  %v1611_v60 = vrot.slane %v1609_v35, 1  ;;  %v2057_v35 = vld [vmem:[%s14973_s25 + $0x14] sm:$0x8]  ;;  %v1676_v39 = vsel %vm1512_vm3, %v1671_v52, %v1675_v24 }
  0xd3   : > { %12679 = vmatprep.mubr.msk.bf16.mxu0 %vm484_vm1, %v1028_v29  ;;  %v1565_v29 = vshrl.u32 %v14604_v5, 16  ;;  %v14614_v5 = vld [vmem:[%s14973_s25 + $0x8c] sm:$0xff]  }
  0xd4   : > { %v1551_v34 = vor.u32 %v1549_v16, %v1547_v2  ;;  %v1615_v32 = vor.u32 %v1613_v36, %v1611_v60  ;;  %v1629_v16 = vshrl.u32 %v14612_v61, 16  ;;  %v1641_v17 = vshll.u32 %v14614_v5, 16 }
  0xd5   : > { %v1567_v10 = vor.u32 %v1565_v29, %v1563_v62  ;;  %v1645_v29 = vshrl.u32 %v14614_v5, 16 }
  0xd6   : > { %v1556_v21 = vsel %vm1512_vm3, %v1551_v34, %v1555_v44  ;;  %v1635_v44 = vrot.slane %v1633_v0, 1  ;;  %v1643_v62 = vrot.slane %v1641_v17, 1 }
  0xd8   : > { %v1639_v8 = vor.u32 %v1637_v4, %v1635_v44  ;;  %v1701_v4 = vshrl.u32 %v14621_v49, 16 }
  0xda   : > { %12680 = vmatmul.mubr.msk.bf16.gmra.mrb[44].mxu0 %vm484_vm1, %v15350_v42  ;;  %v1569_v42 = vshll.u32 %v14605_v63, 16  ;;  %v14615_v63 = vld [vmem:[%s14973_s25 + $0x94] sm:$0xff]  }
  0xdb   : > { %12685 = vmatprep.mubr.msk.bf16.mxu0 %vm484_vm1, %v1524_v58  ;;  %v1605_v58 = vshrl.u32 %v14609_v55, 16  ;;  %v14619_v55 = vld [vmem:[%s14973_s25 + $0xb4] sm:$0xff]  }
  0xdc   : > { %v1571_v11 = vrot.slane %v1569_v42, 1  ;;  %v1649_v42 = vshll.u32 %v14615_v63, 16  ;;  %v1681_v59 = vshll.u32 %v14619_v55, 16  ;;  %v1685_v36 = vshrl.u32 %v14619_v55, 16 }
  0xdd   : > { %v1607_v40 = vor.u32 %v1605_v58, %v1603_v26  ;;  %v1679_v26 = vor.u32 %v1677_v43, %v1675_v24  ;;  %v1689_v58 = vshll.u32 %v14620_v38, 16 }
  0xde   : > { %v1572_v12 = vsel %vm1512_vm3, %v1567_v10, %v1571_v11  ;;  %v1575_v30 = vor.u32 %v1573_v31, %v1571_v11  ;;  %v1647_v10 = vor.u32 %v1645_v29, %v1643_v62  ;;  %v1651_v11 = vrot.slane %v1649_v42, 1 }
  0xdf   : > { %v1612_v14 = vsel %vm1512_vm3, %v1607_v40, %v1611_v60  ;;  %v1653_v31 = vshrl.u32 %v14615_v63, 16  ;;  %v1693_v60 = vshrl.u32 %v14620_v38, 16  ;;  %v1691_v54 = vrot.slane %v1689_v58, 1  ;;  %v15564_v58 = vld [vmem:[%s14973_s25 + $0x4c] sm:$0xf] }
  0xe0   : > { %v1580_v9 = vsel %vm1512_vm3, %v1575_v30, %v1579_v18  ;;  %v1659_v18 = vrot.slane %v1657_v3, 1 }
  0xe1   : > { %v1655_v30 = vor.u32 %v1653_v31, %v1651_v11 }
  0xe2   : > { %12686 = vmatmul.mubr.msk.bf16.vlgmr.msra.gmra.mrb[0].mxu0 %vm484_vm1, %v1532_v45  ;;  %v1625_v45 = vshll.u32 %v14612_v61, 16  ;;  %v1663_v23 = vor.u32 %v1661_v15, %v1659_v18  ;;  %v1697_v61 = vshll.u32 %v14621_v49, 16 }
  0xe3   : > { %12734 = vmatpush3.bf16.msra.mxu0 %v2528_v20  ;;  %12689 = vmatprep.mubr.msk.bf16.mxu0 %vm484_vm1, %v1540_v41  ;;  %v1621_v20 = vshrl.u32 %v14611_v56, 16  ;;  %v1620_v41 = vsel %vm1512_vm3, %v1615_v32, %v1619_v53  ;;  %v1683_v56 = vrot.slane %v1681_v59, 1 }
  0xe4   : > { %14451 = vmatprep.subr.msk.bf16.mxu0 %vm557_vm0, %v15449_v1  ;;  %v1627_v2 = vrot.slane %v1625_v45, 1 }
  0xe5   : > { %v1623_v46 = vor.u32 %v1621_v20, %v1619_v53  ;;  %v1684_v32 = vsel %vm1512_vm3, %v1679_v26, %v1683_v56  ;;  %v1687_v45 = vor.u32 %v1685_v36, %v1683_v56  ;;  %v1695_v20 = vor.u32 %v1693_v60, %v1691_v54  ;;  %v15558_v56 = vld [vmem:[%s14973_s25 + $0x44] sm:$0xf]  ;;  %v15567_v36 = vld [vmem:[%s14973_s25 + $0x50] sm:$0xf] }
  0xe6   : > { %v1631_v34 = vor.u32 %v1629_v16, %v1627_v2  ;;  %v15521_v16 = vld [vmem:[%s14973_s25 + $0x28] sm:$0xf]  ;;  %v2902_v60 = vsel %vm557_vm0, %v15449_v1, 0 }
  0xe7   : > { %v1692_v63 = vsel %vm1512_vm3, %v1687_v45, %v1691_v54  ;;  %v11531_v17 = vcombine.low %v15416_v13, %v15521_v16  ;;  %v15580_v1 = vld [vmem:[%s18357_s1 + $0xa] sm:$0x3] }
  0xea   : > { %12690 = vmatmul.mubr.msk.bf16.gmra.mrb[4].mxu0 %vm484_vm1, %v1548_v51  ;;  %v1628_v51 = vsel %vm1512_vm3, %v1623_v46, %v1627_v2 }
  0xeb   : > { %12693 = vmatprep.mubr.msk.bf16.mxu0 %vm484_vm1, %v1556_v21  ;;  %v1636_v21 = vsel %vm1512_vm3, %v1631_v34, %v1635_v44  ;;  %v15524_v34 = vld [vmem:[%s14973_s25 + $0x2c] sm:$0xf]  ;;  %v15527_v44 = vld [vmem:[%s14973_s25 + $0x30] sm:$0xf] }
  0xf2   : > { %12694 = vmatmul.mubr.msk.bf16.gmra.mrb[8].mxu0 %vm484_vm1, %v1564_v22  ;;  %v1644_v22 = vsel %vm1512_vm3, %v1639_v8, %v1643_v62  ;;  %v11532_v8 = vcombine.low %v15524_v34, %v15527_v44 }
  0xf3   : > { %12697 = vmatprep.mubr.msk.bf16.mxu0 %vm484_vm1, %v1572_v12  ;;  %v1652_v12 = vsel %vm1512_vm3, %v1647_v10, %v1651_v11  ;;  %v2249_v10 = vshrl.u32 %v11531_v17, 16  ;;  %v2252_v11 = vshll.u32 %v11531_v17, 16  ;;  %v15588_v17 = vld [vmem:[%s14973_s25 + $0x58] sm:$0xf] }
  0xf4   : > { %v2261_v15 = vshll.u32 %v11532_v8, 16 }
  0xfa   : > { %12698 = vmatmul.mubr.msk.bf16.gmra.mrb[12].mxu0 %vm484_vm1, %v1580_v9  ;;  %v1660_v9 = vsel %vm1512_vm3, %v1655_v30, %v1659_v18  ;;  %v15541_v18 = vld [vmem:[%s14973_s25 + $0x38] sm:$0xf]  ;;  %v15547_v30 = vld [vmem:[%s14973_s25 + $0x40] sm:$0xf] }
  0xfb   : > { %12701 = vmatprep.mubr.msk.bf16.mxu0 %vm484_vm1, %v1588_v47  ;;  %v1668_v47 = vsel %vm1512_vm3, %v1663_v23, %v1667_v28  ;;  %v2251_v23 = vrot.slane %v2249_v10, 3  ;;  %v2254_v28 = vrot.slane %v2252_v11, 4  ;;  %v11533_v57 = vcombine.low %v15538_v6, %v15541_v18 }
  0xfc   : > { %v11534_v43 = vcombine.low %v15544_v19, %v15547_v30 }
  0xfd   : > { %v2255_v59 = vor.u32 %v2254_v28, %v2251_v23  ;;  %v2267_v38 = vshrl.u32 %v11533_v57, 16  ;;  %v2270_v24 = vshll.u32 %v11533_v57, 16  ;;  %v15607_v23 = vld [vmem:[%s14973_s25 + $0x64] sm:$0xf]  ;;  %v15610_v28 = vld [vmem:[%s14973_s25 + $0x68] sm:$0xf] }
  0xfe   : > { %v2276_v49 = vshrl.u32 %v11534_v43, 16  ;;  %v2279_v26 = vshll.u32 %v11534_v43, 16  ;;  %v15616_v57 = vld [vmem:[%s14973_s25 + $0x70] sm:$0xf]  ;;  %v11539_v43 = vcombine.low %v15607_v23, %v15610_v28 }
 0x100   : > { %v2278_v54 = vrot.slane %v2276_v49, 3  ;;  %v2281_v45 = vrot.slane %v2279_v26, 4  ;;  %v2321_v26 = vshrl.u32 %v11539_v43, 16 }
 0x102   : > { %12702 = vmatmul.mubr.msk.bf16.gmra.mrb[16].mxu0 %vm484_vm1, %v1596_v25  ;;  %v15507_v25 = vld [vmem:[%s14973_s25 + $0x18] sm:$0xf] }
 0x103   : > { %12705 = vmatprep.mubr.msk.bf16.mxu0 %vm484_vm1, %v1604_v48  ;;  %v15510_v48 = vld [vmem:[%s14973_s25 + $0x1c] sm:$0xf]  ;;  %v11529_v40 = vcombine.low %v2057_v35, %v15507_v25  ;;  %v15561_v35 = vld [vmem:[%s14973_s25 + $0x48] sm:$0xf] }
 0x104   : > { %v11530_v53 = vcombine.low %v15510_v48, %v15413_v50 }
 0x105   : > { %v2232_v0 = vshrl.u32 %v11529_v40, 16  ;;  %v2235_v2 = vshll.u32 %v11529_v40, 16  ;;  %v2272_v40 = vrot.slane %v2270_v24, 4 }
 0x106   : > { %v2240_v5 = vshrl.u32 %v11530_v53, 16  ;;  %v2243_v46 = vshll.u32 %v11530_v53, 16 }
 0x107   : > { %v2234_v29 = vrot.slane %v2232_v0, 3  ;;  %v2237_v42 = vrot.slane %v2235_v2, 4  ;;  %v2282_v2 = vor.u32 %v2281_v45, %v2278_v54  ;;  %v15633_v54 = vld [vmem:[%s14973_s25 + $0x7c] sm:$0xf]  ;;  %v15636_v45 = vld [vmem:[%s14973_s25 + $0x80] sm:$0xf] }
 0x108   : > { %v2242_v62 = vrot.slane %v2240_v5, 3  ;;  %v2245_v7 = vrot.slane %v2243_v46, 4 }
 0x10a   : > { %12706 = vmatmul.mubr.msk.bf16.gmra.mrb[20].mxu0 %vm484_vm1, %v1612_v14  ;;  %v14622_v14 = vld [vmem:[%s14973_s25 + $0xcc] ss:$0 sps:$4 sm:$0x11]   ;;  %v2246_v31 = vor.u32 %v2245_v7, %v2242_v62 }
 0x10b   : > { %12709 = vmatprep.mubr.msk.bf16.mxu0 %vm484_vm1, %v1620_v41  ;;  %v1699_v41 = vrot.slane %v1697_v61, 1  ;;  %v2269_v61 = vrot.slane %v2267_v38, 3 }
 0x10d   : > { %v1703_v27 = vor.u32 %v1701_v4, %v1699_v41  ;;  %v15596_v4 = vld [vmem:[%s14973_s25 + $0x60] sm:$0xf] }
 0x112   : > { %12710 = vmatmul.mubr.msk.bf16.gmra.mrb[24].mxu0 %vm484_vm1, %v1628_v51  ;;  %v1700_v51 = vsel %vm1512_vm3, %v1695_v20, %v1699_v41  ;;  %v2273_v20 = vor.u32 %v2272_v40, %v2269_v61 }
 0x113   : > { %12713 = vmatprep.mubr.msk.bf16.mxu0 %vm484_vm1, %v1636_v21  ;;  %v1705_v21 = vshll.u32 %v14622_v14, 16  ;;  %v11536_v14 = vcombine.low %v15564_v58, %v15567_v36 }
 0x114   : > { %v2283_v7 = vsel %vm813_vm2, %v2273_v20, %v2282_v2 }
 0x115   : > { %v1707_v3 = vrot.slane %v1705_v21, 1  ;;  %v2294_v5 = vshrl.u32 %v11536_v14, 16  ;;  %v2297_v46 = vshll.u32 %v11536_v14, 16 }
 0x117   : > { %v1708_v55 = vsel %vm1512_vm3, %v1703_v27, %v1707_v3  ;;  %v2299_v10 = vrot.slane %v2297_v46, 4 }
 0x11a   : > { %12714 = vmatmul.mubr.msk.bf16.gmra.mrb[28].mxu0 %vm484_vm1, %v1644_v22  ;;  %v2238_v22 = vor.u32 %v2237_v42, %v2234_v29 }
 0x11b   : > { %12717 = vmatprep.mubr.msk.bf16.mxu0 %vm484_vm1, %v1652_v12  ;;  %v2258_v12 = vshrl.u32 %v11532_v8, 16  ;;  %v2296_v8 = vrot.slane %v2294_v5, 3 }
 0x11d   : > { %v2260_v37 = vrot.slane %v2258_v12, 3 }
 0x122   : > { %12718 = vmatmul.mubr.msk.bf16.gmra.mrb[32].mxu0 %vm484_vm1, %v1660_v9  ;;  %v2247_v9 = vsel %vm813_vm2, %v2238_v22, %v2246_v31 }
 0x123   : > { %12721 = vmatprep.mubr.msk.bf16.mxu0 %vm484_vm1, %v1668_v47  ;;  %v2263_v47 = vrot.slane %v2261_v15, 4 }
 0x125   : > { %v2264_v52 = vor.u32 %v2263_v47, %v2260_v37 }
 0x127   : > { %v2265_v53 = vsel %vm813_vm2, %v2255_v59, %v2264_v52  ;;  %v2274_v21 = vsel %vm813_vm2, %v2264_v52, %v2273_v20  ;;  %v2323_v20 = vrot.slane %v2321_v26, 3 }
 0x12a   : > { %12722 = vmatmul.mubr.msk.bf16.gmra.mrb[36].mxu0 %vm484_vm1, %v1676_v39  ;;  %v2256_v39 = vsel %vm813_vm2, %v2246_v31, %v2255_v59  ;;  %v2300_v31 = vor.u32 %v2299_v10, %v2296_v8 }
 0x12b   : > { %12725 = vmatprep.mubr.msk.bf16.mxu0 %vm484_vm1, %v1684_v32  ;;  %v11535_v32 = vcombine.low %v15558_v56, %v15561_v35 }
 0x12d   : > { %v2285_v41 = vshrl.u32 %v11535_v32, 16  ;;  %v2288_v0 = vshll.u32 %v11535_v32, 16  ;;  %v15627_v32 = vld [vmem:[%s14973_s25 + $0x74] sm:$0xf] }
 0x12f   : > { %v2287_v29 = vrot.slane %v2285_v41, 3  ;;  %v2290_v42 = vrot.slane %v2288_v0, 4 }
 0x131   : > { %v2291_v27 = vor.u32 %v2290_v42, %v2287_v29 }
 0x132   : > { %12726 = vmatmul.mubr.msk.bf16.gmra.mrb[40].mxu0 %vm484_vm1, %v1692_v63  ;;  %v15585_v63 = vld [vmem:[%s14973_s25 + $0x54] sm:$0xf] }
 0x133   : > { %12729 = vmatprep.mubr.msk.bf16.mxu0 %vm484_vm1, %v1700_v51  ;;  %v15593_v51 = vld [vmem:[%s14973_s25 + $0x5c] sm:$0xf]  ;;  %v11537_v62 = vcombine.low %v15585_v63, %v15588_v17  ;;  %v2301_v59 = vsel %vm813_vm2, %v2291_v27, %v2300_v31 }
 0x134   : > { %v11538_v11 = vcombine.low %v15593_v51, %v15596_v4 }
 0x135   : > { %v2303_v3 = vshrl.u32 %v11537_v62, 16  ;;  %v2306_v22 = vshll.u32 %v11537_v62, 16 }
 0x136   : > { %v2312_v12 = vshrl.u32 %v11538_v11, 16  ;;  %v2315_v15 = vshll.u32 %v11538_v11, 16  ;;  %v15647_v11 = vld [vmem:[%s14973_s25 + $0x84] sm:$0xf] }
 0x137   : > { %v2305_v37 = vrot.slane %v2303_v3, 3  ;;  %v2308_v47 = vrot.slane %v2306_v22, 4  ;;  %v15653_v3 = vld [vmem:[%s14973_s25 + $0x8c] sm:$0xf]  ;;  %v15656_v22 = vld [vmem:[%s14973_s25 + $0x90] sm:$0xf] }
 0x138   : > { %v2314_v38 = vrot.slane %v2312_v12, 3  ;;  %v2317_v24 = vrot.slane %v2315_v15, 4 }
 0x139   : > { %v2309_v49 = vor.u32 %v2308_v47, %v2305_v37 }
 0x13a   : > { %12730 = vmatmul.mubr.msk.bf16.gmra.mrb[44].mxu0 %vm484_vm1, %v1708_v55  ;;  %v15613_v55 = vld [vmem:[%s14973_s25 + $0x6c] sm:$0xf] }
 0x13b   : > { %12735 = vmatprep.mubr.msk.bf16.mxu0 %vm484_vm1, %v2247_v9  ;;  %v2292_v9 = vsel %vm813_vm2, %v2282_v2, %v2291_v27  ;;  %v11540_v52 = vcombine.low %v15613_v55, %v15616_v57  ;;  %v2310_v14 = vsel %vm813_vm2, %v2300_v31, %v2309_v49  ;;  %v15650_v27 = vld [vmem:[%s14973_s25 + $0x88] sm:$0xf] }
 0x13d   : > { %v2330_v61 = vshrl.u32 %v11540_v52, 16  ;;  %v2333_v40 = vshll.u32 %v11540_v52, 16 }
 0x13f   : > { %v2332_v5 = vrot.slane %v2330_v61, 3  ;;  %v2335_v46 = vrot.slane %v2333_v40, 4  ;;  %v15670_v61 = vld [vmem:[%s14973_s25 + $0x98] sm:$0xf]  ;;  %v15673_v40 = vld [vmem:[%s14973_s25 + $0x9c] sm:$0xf] }
 0x142   : > { %12736 = vmatmul.mubr.msk.bf16.vlgmr.msra.gmra.mrb[0].mxu0 %vm484_vm1, %v2256_v39  ;;  %v2324_v39 = vshll.u32 %v11539_v43, 16 }
 0x143   : > { %12784 = vmatpush3.bf16.msra.mxu0 %v2902_v60  ;;  %12739 = vmatprep.mubr.msk.bf16.mxu0 %vm484_vm1, %v2265_v53  ;;  %v2318_v60 = vor.u32 %v2317_v24, %v2314_v38  ;;  %v15630_v53 = vld [vmem:[%s14973_s25 + $0x78] sm:$0xf] }
 0x144   : > { %14452 = vmatprep.subr.msk.bf16.mxu0 %vm557_vm0, %v15580_v1  ;;  %v2326_v41 = vrot.slane %v2324_v39, 4  ;;  %v11541_v0 = vcombine.low %v15627_v32, %v15630_v53 }
 0x145   : > { %v2319_v2 = vsel %vm813_vm2, %v2309_v49, %v2318_v60 }
 0x146   : > { %v2327_v29 = vor.u32 %v2326_v41, %v2323_v20  ;;  %v2339_v42 = vshrl.u32 %v11541_v0, 16  ;;  %v2342_v62 = vshll.u32 %v11541_v0, 16 }
 0x148   : > { %v2328_v31 = vsel %vm813_vm2, %v2318_v60, %v2327_v29  ;;  %v2341_v12 = vrot.slane %v2339_v42, 3  ;;  %v2344_v15 = vrot.slane %v2342_v62, 4  ;;  %v15667_v60 = vld [vmem:[%s14973_s25 + $0x94] sm:$0xf] }
 0x14a   : > { %12740 = vmatmul.mubr.msk.bf16.gmra.mrb[4].mxu0 %vm484_vm1, %v2274_v21  ;;  %v11542_v21 = vcombine.low %v15633_v54, %v15636_v45  ;;  %v2345_v38 = vor.u32 %v2344_v15, %v2341_v12  ;;  %v15687_v12 = vld [vmem:[%s14973_s25 + $0xa4] sm:$0xf]  ;;  %v15690_v15 = vld [vmem:[%s14973_s25 + $0xa8] sm:$0xf] }
 0x14b   : > { %12743 = vmatprep.mubr.msk.bf16.mxu0 %vm484_vm1, %v2283_v7  ;;  %v2336_v7 = vor.u32 %v2335_v46, %v2332_v5 }
 0x14c   : > { %v2348_v8 = vshrl.u32 %v11542_v21, 16  ;;  %v2351_v10 = vshll.u32 %v11542_v21, 16 }
 0x14d   : > { %v2337_v37 = vsel %vm813_vm2, %v2327_v29, %v2336_v7  ;;  %v2346_v20 = vsel %vm813_vm2, %v2336_v7, %v2345_v38 }
 0x14e   : > { %v2350_v47 = vrot.slane %v2348_v8, 3  ;;  %v2353_v43 = vrot.slane %v2351_v10, 4 }
 0x150   : > { %v2354_v49 = vor.u32 %v2353_v43, %v2350_v47 }
 0x152   : > { %12744 = vmatmul.mubr.msk.bf16.gmra.mrb[8].mxu0 %vm484_vm1, %v2292_v9  ;;  %v11543_v9 = vcombine.low %v15647_v11, %v15650_v27  ;;  %v2355_v5 = vsel %vm813_vm2, %v2345_v38, %v2354_v49  ;;  %v11547_v38 = vcombine.low %v15687_v12, %v15690_v15 }
 0x153   : > { %12747 = vmatprep.mubr.msk.bf16.mxu0 %vm484_vm1, %v2301_v59  ;;  %v11544_v59 = vcombine.low %v15653_v3, %v15656_v22 }
 0x154   : > { %v2357_v24 = vshrl.u32 %v11543_v9, 16  ;;  %v2360_v52 = vshll.u32 %v11543_v9, 16  ;;  %v15693_v9 = vld [vmem:[%s14973_s25 + $0xac] sm:$0xf] }
 0x155   : > { %v2366_v26 = vshrl.u32 %v11544_v59, 16  ;;  %v2369_v39 = vshll.u32 %v11544_v59, 16 }
 0x156   : > { %v2359_v41 = vrot.slane %v2357_v24, 3  ;;  %v2362_v0 = vrot.slane %v2360_v52, 4 }
 0x157   : > { %v2368_v46 = vrot.slane %v2366_v26, 3  ;;  %v2371_v21 = vrot.slane %v2369_v39, 4 }
 0x158   : > { %v2363_v42 = vor.u32 %v2362_v0, %v2359_v41  ;;  %v2396_v41 = vshll.u32 %v11547_v38, 16 }
 0x159   : > { %v2372_v8 = vor.u32 %v2371_v21, %v2368_v46  ;;  %v15707_v46 = vld [vmem:[%s14973_s25 + $0xb4] sm:$0xf]  ;;  %v15710_v21 = vld [vmem:[%s14973_s25 + $0xb8] sm:$0xf] }
 0x15a   : > { %12748 = vmatmul.mubr.msk.bf16.gmra.mrb[12].mxu0 %vm484_vm1, %v2310_v14  ;;  %v15676_v14 = vld [vmem:[%s14973_s25 + $0xa0] sm:$0xf]  ;;  %v2364_v47 = vsel %vm813_vm2, %v2354_v49, %v2363_v42  ;;  %18509 = vst [vmem:[#allocation9_spill] sm:$0xff] %v15710_v21 }
 0x15b   : > { %12751 = vmatprep.mubr.msk.bf16.mxu0 %vm484_vm1, %v2319_v2  ;;  %v11545_v2 = vcombine.low %v15667_v60, %v15670_v61  ;;  %v11546_v29 = vcombine.low %v15673_v40, %v15676_v14  ;;  %v2373_v24 = vsel %vm813_vm2, %v2363_v42, %v2372_v8  ;;  %v15716_v42 = vld [vmem:[%s14973_s25 + $0xc0] sm:$0xf] }
 0x15c   : > { %18511 = vst [vmem:[#allocation10_spill] sm:$0xff] %v15716_v42 }
 0x15d   : > { %v2375_v62 = vshrl.u32 %v11545_v2, 16  ;;  %v2378_v7 = vshll.u32 %v11545_v2, 16  ;;  %v2384_v10 = vshrl.u32 %v11546_v29, 16 }
 0x15f   : > { %v2377_v43 = vrot.slane %v2375_v62, 3  ;;  %v2380_v59 = vrot.slane %v2378_v7, 4  ;;  %v2386_v52 = vrot.slane %v2384_v10, 3  ;;  %v2398_v10 = vrot.slane %v2396_v41, 4  ;;  %v15727_v41 = vld [vmem:[%s14973_s25 + $0xc4] sm:$0xf] }
 0x161   : > { %v2381_v49 = vor.u32 %v2380_v59, %v2377_v43 }
 0x162   : > { %12752 = vmatmul.mubr.msk.bf16.gmra.mrb[16].mxu0 %vm484_vm1, %v2328_v31  ;;  %v2387_v31 = vshll.u32 %v11546_v29, 16  ;;  %v15713_v29 = vld [vmem:[%s14973_s25 + $0xbc] sm:$0xf] }
 0x163   : > { %12755 = vmatprep.mubr.msk.bf16.mxu0 %vm484_vm1, %v2337_v37  ;;  %v15696_v37 = vld [vmem:[%s14973_s25 + $0xb0] sm:$0xf]  ;;  %18510 = vst [vmem:[#allocation11_spill] sm:$0xff] %v15713_v29  ;;  %v2382_v62 = vsel %vm813_vm2, %v2372_v8, %v2381_v49 }
 0x164   : > { %v2389_v26 = vrot.slane %v2387_v31, 4  ;;  %v11548_v39 = vcombine.low %v15693_v9, %v15696_v37  ;;  %v11549_v31 = vcombine.low %v15707_v46, %v15710_v21 }
 0x166   : > { %v2390_v0 = vor.u32 %v2389_v26, %v2386_v52  ;;  %v2402_v2 = vshrl.u32 %v11548_v39, 16  ;;  %v2414_v52 = vshll.u32 %v11549_v31, 16 }
 0x168   : > { %v2404_v43 = vrot.slane %v2402_v2, 3  ;;  %v15736_v2 = vld [vmem:[%s14973_s25 + $0xd0] sm:$0xf] }
 0x169   : > { %18514 = vst [vmem:[#allocation15_spill] sm:$0xff] %v15736_v2 }
 0x16a   : > { %12756 = vmatmul.mubr.msk.bf16.gmra.mrb[20].mxu0 %vm484_vm1, %v2346_v20  ;;  %v2393_v20 = vshrl.u32 %v11547_v38, 16  ;;  %v11550_v38 = vcombine.low %v15713_v29, %v15716_v42  ;;  %v2416_v42 = vrot.slane %v2414_v52, 4  ;;  %v15747_v29 = vld [vmem:[%s14973_s25 + $0xd4] sm:$0xf] }
 0x16b   : > { %12759 = vmatprep.mubr.msk.bf16.mxu0 %vm484_vm1, %v2355_v5  ;;  %v2405_v5 = vshll.u32 %v11548_v39, 16 }
 0x16c   : > { %v2395_v7 = vrot.slane %v2393_v20, 3  ;;  %v2420_v39 = vshrl.u32 %v11550_v38, 16  ;;  %v2423_v20 = vshll.u32 %v11550_v38, 16 }
 0x16d   : > { %v2407_v59 = vrot.slane %v2405_v5, 4 }
 0x16e   : > { %v2399_v8 = vor.u32 %v2398_v10, %v2395_v7  ;;  %v11551_v7 = vcombine.low %v15727_v41, %v15730_v33 }
 0x16f   : > { %v2408_v26 = vor.u32 %v2407_v59, %v2404_v43 }
 0x170   : > { %v2400_v5 = vsel %vm813_vm2, %v2390_v0, %v2399_v8  ;;  %v2429_v38 = vshrl.u32 %v11551_v7, 16 }
 0x171   : > { %v2409_v10 = vsel %vm813_vm2, %v2399_v8, %v2408_v26 }
 0x172   : > { %12760 = vmatmul.mubr.msk.bf16.gmra.mrb[24].mxu0 %vm484_vm1, %v2364_v47  ;;  %v2391_v47 = vsel %vm813_vm2, %v2381_v49, %v2390_v0  ;;  %v15733_v49 = vld [vmem:[%s14973_s25 + $0xcc] sm:$0xf]  ;;  %v2432_v0 = vshll.u32 %v11551_v7, 16  ;;  %v2431_v8 = vrot.slane %v2429_v38, 3 }
 0x173   : > { %12763 = vmatprep.mubr.msk.bf16.mxu0 %vm484_vm1, %v2373_v24  ;;  %v2411_v24 = vshrl.u32 %v11549_v31, 16  ;;  %18513 = vst [vmem:[#allocation12_spill] sm:$0xff] %v15733_v49  ;;  %v2422_v31 = vrot.slane %v2420_v39, 3  ;;  %v11552_v43 = vcombine.low %v15733_v49, %v15736_v2 }
 0x174   : > { %v2434_v39 = vrot.slane %v2432_v0, 4  ;;  %v18515_v0 = vcombine.low %v15413_v50, %v15416_v13  ;;  %v11584_v50 = vcombine.low %v15547_v30, %v15558_v56  ;;  %v11585_v13 = vcombine.low %v15561_v35, %v15564_v58 }
 0x175   : > { %v2441_v52 = vshll.u32 %v11552_v43, 16  ;;  %v11592_v30 = vcombine.low %v15636_v45, %v15647_v11  ;;  %v11593_v56 = vcombine.low %v15650_v27, %v15653_v3  ;;  %v11594_v35 = vcombine.low %v15656_v22, %v15667_v60  ;;  %v18520_v27 = vld [vmem:[#allocation13_spill] sm:$0xff] }
 0x176   : > { %v11595_v58 = vcombine.low %v15670_v61, %v15673_v40  ;;  %v14674_v40 = vld [vmem:[%s14973_s25 + $0x28] sm:$0xff]  }
 0x177   : > { %v2443_v49 = vrot.slane %v2441_v52, 4  ;;  %v3371_v52 = vshrl.u32 %v14674_v40, 16 }
 0x17a   : > { %12764 = vmatmul.mubr.msk.bf16.gmra.mrb[28].mxu0 %vm484_vm1, %v2382_v62  ;;  %v2413_v62 = vrot.slane %v2411_v24, 3  ;;  %v2438_v24 = vshrl.u32 %v11552_v43, 16  ;;  %v18519_v11 = vld [vmem:[#allocation12_spill] sm:$0xff] }
 0x17b   : > { %12767 = vmatprep.mubr.msk.bf16.mxu0 %vm484_vm1, %v2391_v47  ;;  %v2425_v47 = vrot.slane %v2423_v20, 4  ;;  %v11553_v20 = vcombine.low %v15747_v29, %v15747_v29  ;;  %v11601_v3 = vcombine.low %v18520_v27, %v18519_v11 }
 0x17c   : > { %v2417_v59 = vor.u32 %v2416_v42, %v2413_v62  ;;  %v2435_v42 = vor.u32 %v2434_v39, %v2431_v8 }
 0x17d   : > { %v2426_v21 = vor.u32 %v2425_v47, %v2422_v31  ;;  %v2447_v62 = vshrl.u32 %v11553_v20, 16  ;;  %v2450_v7 = vshll.u32 %v11553_v20, 16  ;;  %v14676_v20 = vld [vmem:[%s14973_s25 + $0x38] sm:$0xff]  }
 0x17e   : > { %v2418_v33 = vsel %vm813_vm2, %v2408_v26, %v2417_v59 }
 0x17f   : > { %v2427_v2 = vsel %vm813_vm2, %v2417_v59, %v2426_v21  ;;  %v2436_v31 = vsel %vm813_vm2, %v2426_v21, %v2435_v42  ;;  %v2449_v26 = vrot.slane %v2447_v62, 3  ;;  %v2452_v47 = vrot.slane %v2450_v7, 4  ;;  %v14677_v7 = vld [vmem:[%s14973_s25 + $0x40] sm:$0xff]  }
 0x180   : > { %v11581_v21 = vcombine.low %v15521_v16, %v15524_v34  ;;  %v11586_v16 = vcombine.low %v15567_v36, %v15585_v63  ;;  %v11587_v34 = vcombine.low %v15588_v17, %v15593_v51  ;;  %v15822_v36 = vld [vmem:[%s14973_s25 + $0x2c] sm:$0xf]  ;;  %v11596_v17 = vcombine.low %v15676_v14, %v15687_v12  ;;  %v16147_v63 = vld [vmem:[%s14973_s25 + $0xd4] sm:$0xf] }
 0x181   : > { %v2453_v59 = vor.u32 %v2452_v47, %v2449_v26  ;;  %v11597_v51 = vcombine.low %v15690_v15, %v15693_v9  ;;  %v14675_v15 = vld [vmem:[%s14973_s25 + $0x30] sm:$0xff]   ;;  %18525 = vst [vmem:[#allocation6_spill] sm:$0xff] %v16147_v63 }
 0x182   : > { %12768 = vmatmul.mubr.msk.bf16.gmra.mrb[32].mxu0 %vm484_vm1, %v2400_v5  ;;  %v2440_v5 = vrot.slane %v2438_v24, 3  ;;  %v18521_v9 = vld [vmem:[#allocation15_spill] sm:$0xff]  ;;  %v3375_v8 = vshll.u32 %v14675_v15, 16 }
 0x183   : > { %12771 = vmatprep.mubr.msk.bf16.mxu0 %vm484_vm1, %v2409_v10 }
 0x184   : > { %v2444_v10 = vor.u32 %v2443_v49, %v2440_v5  ;;  %v3620_v49 = vsel %vm557_vm0, %v15580_v1, 0  ;;  %v15825_v1 = vld [vmem:[%s14973_s25 + $0x30] sm:$0xf]  ;;  %v3377_v62 = vrot.slane %v3375_v8, 1 }
 0x186   : > { %v2445_v43 = vsel %vm813_vm2, %v2435_v42, %v2444_v10  ;;  %v2454_v38 = vsel %vm813_vm2, %v2444_v10, %v2453_v59  ;;  %v3383_v10 = vshll.u32 %v14676_v20, 16  ;;  %v3391_v59 = vshll.u32 %v14677_v7, 16 }
 0x18a   : > { %12772 = vmatmul.mubr.msk.bf16.gmra.mrb[36].mxu0 %vm484_vm1, %v2418_v33  ;;  %v11579_v33 = vcombine.low %v15507_v25, %v15510_v48  ;;  %v11582_v25 = vcombine.low %v15527_v44, %v15538_v6  ;;  %v11583_v48 = vcombine.low %v15541_v18, %v15544_v19  ;;  %v11588_v44 = vcombine.low %v15596_v4, %v15607_v23  ;;  %v18516_v23 = vld [vmem:[#allocation11_spill] sm:$0xff] }
 0x18b   : > { %12775 = vmatprep.mubr.msk.bf16.mxu0 %vm484_vm1, %v2427_v2  ;;  %v15771_v2 = vld [vmem:[%s18357_s1 + $0xc] sm:$0x3]  ;;  %v11589_v6 = vcombine.low %v15610_v28, %v15613_v55  ;;  %v11590_v18 = vcombine.low %v15616_v57, %v15627_v32  ;;  %v11591_v19 = vcombine.low %v15630_v53, %v15633_v54  ;;  %v11598_v4 = vcombine.low %v15696_v37, %v15707_v46  ;;  %v18517_v28 = vld [vmem:[#allocation9_spill] sm:$0xff]  ;;  %v14672_v57 = vld [vmem:[%s14973_s25 + $0x18] sm:$0xff]  }
 0x18c   : > { %v11599_v55 = vcombine.low %v18517_v28, %v18516_v23  ;;  %v14673_v32 = vld [vmem:[%s14973_s25 + $0x20] sm:$0xff]   ;;  %v3354_v53 = vshll.u32 %v14672_v57, 16  ;;  %v18518_v54 = vld [vmem:[#allocation10_spill] sm:$0xff]  ;;  %v3352_v22 = vshrl.u32 %v14672_v57, 16  ;;  %v11602_v37 = vcombine.low %v18521_v9, %v15747_v29 }
 0x18d   : > { %v11600_v45 = vcombine.low %v18518_v54, %v15727_v41  ;;  %v3359_v61 = vshll.u32 %v14673_v32, 16  ;;  %v3367_v46 = vshll.u32 %v14674_v40, 16  ;;  %v3363_v41 = vshrl.u32 %v14673_v32, 16  ;;  %v14682_v57 = vld [vmem:[%s14973_s25 + $0x68] sm:$0xff]  }
 0x18e   : > { %v3356_v60 = vrot.slane %v3354_v53, 1  ;;  %v4366_v26 = vsel %vm557_vm0, %v15771_v2, 0  ;;  %v3431_v11 = vshll.u32 %v14682_v57, 16 }
 0x18f   : > { %v3361_v12 = vrot.slane %v3359_v61, 1  ;;  %v3369_v39 = vrot.slane %v3367_v46, 1 }
 0x190   : > { %v3357_v14 = vor.u32 %v3356_v60, %v3352_v22  ;;  %v3435_v60 = vshrl.u32 %v14682_v57, 16  ;;  %v3433_v40 = vrot.slane %v3431_v11, 1  ;;  %v14692_v57 = vld [vmem:[%s14973_s25 + $0xb8] sm:$0xff]  }
 0x191   : > { %v3365_v5 = vor.u32 %v3363_v41, %v3361_v12  ;;  %v3373_v42 = vor.u32 %v3371_v52, %v3369_v39  ;;  %v3511_v11 = vshll.u32 %v14692_v57, 16 }
 0x192   : > { %12776 = vmatmul.mubr.msk.bf16.gmra.mrb[40].mxu0 %vm484_vm1, %v2436_v31  ;;  %v3362_v24 = vsel %vm1512_vm3, %v3357_v14, %v3361_v12  ;;  %v3379_v31 = vshrl.u32 %v14675_v15, 16  ;;  %v14684_v14 = vld [vmem:[%s14973_s25 + $0x78] sm:$0xff]   ;;  %v3437_v15 = vor.u32 %v3435_v60, %v3433_v40  ;;  %v3515_v60 = vshrl.u32 %v14692_v57, 16  ;;  %v15961_v57 = vld [vmem:[%s14973_s25 + $0x48] sm:$0xf] }
 0x193   : > { %12779 = vmatprep.mubr.msk.bf16.mxu0 %vm484_vm1, %v2445_v43  ;;  %v3370_v29 = vsel %vm1512_vm3, %v3365_v5, %v3369_v39  ;;  %v3378_v47 = vsel %vm1512_vm3, %v3373_v42, %v3377_v62  ;;  %v3387_v43 = vshrl.u32 %v14676_v20, 16  ;;  %v3447_v46 = vshll.u32 %v14684_v14, 16  ;;  %v14686_v5 = vld [vmem:[%s14973_s25 + $0x88] sm:$0xff]  }
 0x194   : > { %v3451_v8 = vshrl.u32 %v14684_v14, 16  ;;  %v3513_v14 = vrot.slane %v3511_v11, 1 }
 0x195   : > { %v3449_v20 = vrot.slane %v3447_v46, 1  ;;  %v3895_v46 = vld [vmem:[%s14973_s25 + $0x20] sm:$0x8] }
 0x19a   : > { %12780 = vmatmul.mubr.msk.bf16.gmra.mrb[44].mxu0 %vm484_vm1, %v2454_v38  ;;  %v15866_v38 = vld [vmem:[%s18357_s1 + $0xe] sm:$0x3] }
 0x19b   : > { %12785 = vmatprep.mubr.msk.bf16.mxu0 %vm484_vm1, %v11579_v33  ;;  %v3385_v33 = vrot.slane %v3383_v10, 1  ;;  %v14687_v10 = vld [vmem:[%s14973_s25 + $0x90] sm:$0xff]  }
 0x1a2   : > { %12786 = vmatmul.mubr.msk.bf16.vlgmr.msra.gmra.mrb[0].mxu0 %vm484_vm1, %v18515_v0  ;;  %v3389_v0 = vor.u32 %v3387_v43, %v3385_v33  ;;  %v3467_v43 = vshrl.u32 %v14686_v5, 16 }
 0x1a3   : > { %12834 = vmatpush3.bf16.msra.mxu0 %v3620_v49  ;;  %12789 = vmatprep.mubr.msk.bf16.mxu0 %vm484_vm1, %v11581_v21  ;;  %v14678_v21 = vld [vmem:[%s14973_s25 + $0x48] sm:$0xff]   ;;  %v3381_v49 = vor.u32 %v3379_v31, %v3377_v62  ;;  %v3453_v62 = vor.u32 %v3451_v8, %v3449_v20 }
 0x1a4   : > { %14453 = vmatprep.subr.msk.bf16.mxu0 %vm557_vm0, %v15771_v2  ;;  %v3393_v2 = vrot.slane %v3391_v59, 1  ;;  %v3471_v59 = vshll.u32 %v14687_v10, 16 }
 0x1aa   : > { %12790 = vmatmul.mubr.msk.bf16.gmra.mrb[4].mxu0 %vm484_vm1, %v11582_v25  ;;  %v14679_v25 = vld [vmem:[%s14973_s25 + $0x50] sm:$0xff]  }
 0x1ab   : > { %12793 = vmatprep.mubr.msk.bf16.mxu0 %vm484_vm1, %v11583_v48  ;;  %v3399_v48 = vshll.u32 %v14678_v21, 16 }
 0x1b2   : > { %12794 = vmatmul.mubr.msk.bf16.gmra.mrb[8].mxu0 %vm484_vm1, %v11584_v50  ;;  %v3386_v50 = vsel %vm1512_vm3, %v3381_v49, %v3385_v33 }
 0x1b3   : > { %12797 = vmatprep.mubr.msk.bf16.mxu0 %vm484_vm1, %v11585_v13  ;;  %v3395_v13 = vshrl.u32 %v14677_v7, 16 }
 0x1ba   : > { %12798 = vmatmul.mubr.msk.bf16.gmra.mrb[12].mxu0 %vm484_vm1, %v11586_v16  ;;  %v3394_v16 = vsel %vm1512_vm3, %v3389_v0, %v3393_v2 }
 0x1bb   : > { %12801 = vmatprep.mubr.msk.bf16.mxu0 %vm484_vm1, %v11587_v34  ;;  %v3403_v34 = vshrl.u32 %v14678_v21, 16  ;;  %v14688_v21 = vld [vmem:[%s14973_s25 + $0x98] sm:$0xff]  }
 0x1c2   : > { %12802 = vmatmul.mubr.msk.bf16.gmra.mrb[16].mxu0 %vm484_vm1, %v11588_v44  ;;  %v3407_v44 = vshll.u32 %v14679_v25, 16 }
 0x1c3   : > { %12805 = vmatprep.mubr.msk.bf16.mxu0 %vm484_vm1, %v11589_v6  ;;  %v3401_v6 = vrot.slane %v3399_v48, 1  ;;  %v3479_v48 = vshll.u32 %v14688_v21, 16 }
 0x1ca   : > { %12806 = vmatmul.mubr.msk.bf16.gmra.mrb[20].mxu0 %vm484_vm1, %v11590_v18  ;;  %v14680_v18 = vld [vmem:[%s14973_s25 + $0x58] sm:$0xff]  }
 0x1cb   : > { %12809 = vmatprep.mubr.msk.bf16.mxu0 %vm484_vm1, %v11591_v19  ;;  %v3397_v19 = vor.u32 %v3395_v13, %v3393_v2  ;;  %v3419_v23 = vshrl.u32 %v14680_v18, 16  ;;  %v3473_v2 = vrot.slane %v3471_v59, 1  ;;  %v3475_v13 = vshrl.u32 %v14687_v10, 16 }
 0x1d2   : > { %12810 = vmatmul.mubr.msk.bf16.gmra.mrb[24].mxu0 %vm484_vm1, %v11592_v30  ;;  %v3405_v30 = vor.u32 %v3403_v34, %v3401_v6  ;;  %v3483_v34 = vshrl.u32 %v14688_v21, 16 }
 0x1d3   : > { %12813 = vmatprep.mubr.msk.bf16.mxu0 %vm484_vm1, %v11593_v56  ;;  %v3409_v56 = vrot.slane %v3407_v44, 1 }
 0x1da   : > { %12814 = vmatmul.mubr.msk.bf16.gmra.mrb[28].mxu0 %vm484_vm1, %v11594_v35  ;;  %v14681_v35 = vld [vmem:[%s14973_s25 + $0x60] sm:$0xff]  }
 0x1db   : > { %12817 = vmatprep.mubr.msk.bf16.mxu0 %vm484_vm1, %v11595_v58  ;;  %v3415_v58 = vshll.u32 %v14680_v18, 16  ;;  %v3423_v28 = vshll.u32 %v14681_v35, 16  ;;  %v14690_v18 = vld [vmem:[%s14973_s25 + $0xa8] sm:$0xff]  }
 0x1dd   : > { %v3425_v54 = vrot.slane %v3423_v28, 1 }
 0x1e2   : > { %12818 = vmatmul.mubr.msk.bf16.gmra.mrb[32].mxu0 %vm484_vm1, %v11596_v17  ;;  %v3402_v17 = vsel %vm1512_vm3, %v3397_v19, %v3401_v6  ;;  %v3481_v6 = vrot.slane %v3479_v48, 1  ;;  %v3477_v19 = vor.u32 %v3475_v13, %v3473_v2 }
 0x1e3   : > { %12821 = vmatprep.mubr.msk.bf16.mxu0 %vm484_vm1, %v11597_v51  ;;  %v3411_v51 = vshrl.u32 %v14679_v25, 16  ;;  %v14689_v25 = vld [vmem:[%s14973_s25 + $0xa0] sm:$0xff]  }
 0x1e4   : > { %v3487_v44 = vshll.u32 %v14689_v25, 16 }
 0x1e5   : > { %v3413_v32 = vor.u32 %v3411_v51, %v3409_v56  ;;  %v3491_v51 = vshrl.u32 %v14689_v25, 16 }
 0x1ea   : > { %12822 = vmatmul.mubr.msk.bf16.gmra.mrb[36].mxu0 %vm484_vm1, %v11598_v4  ;;  %v3410_v4 = vsel %vm1512_vm3, %v3405_v30, %v3409_v56  ;;  %v3485_v30 = vor.u32 %v3483_v34, %v3481_v6  ;;  %v3489_v56 = vrot.slane %v3487_v44, 1 }
 0x1eb   : > { %12825 = vmatprep.mubr.msk.bf16.mxu0 %vm484_vm1, %v11599_v55  ;;  %v3417_v55 = vrot.slane %v3415_v58, 1  ;;  %v3495_v58 = vshll.u32 %v14690_v18, 16 }
 0x1ed   : > { %v3421_v53 = vor.u32 %v3419_v23, %v3417_v55  ;;  %v3418_v27 = vsel %vm1512_vm3, %v3413_v32, %v3417_v55  ;;  %v3499_v23 = vshrl.u32 %v14690_v18, 16  ;;  %v3497_v55 = vrot.slane %v3495_v58, 1 }
 0x1ee   : > { %v3493_v32 = vor.u32 %v3491_v51, %v3489_v56 }
 0x1ef   : > { %v3426_v22 = vsel %vm1512_vm3, %v3421_v53, %v3425_v54  ;;  %v3501_v53 = vor.u32 %v3499_v23, %v3497_v55 }
 0x1f2   : > { %12826 = vmatmul.mubr.msk.bf16.gmra.mrb[40].mxu0 %vm484_vm1, %v11600_v45  ;;  %v14683_v45 = vld [vmem:[%s14973_s25 + $0x70] sm:$0xff]  }
 0x1f3   : > { %12829 = vmatprep.mubr.msk.bf16.mxu0 %vm484_vm1, %v11601_v3  ;;  %v3427_v3 = vshrl.u32 %v14681_v35, 16  ;;  %v3439_v61 = vshll.u32 %v14683_v45, 16  ;;  %v14691_v35 = vld [vmem:[%s14973_s25 + $0xb0] sm:$0xff]  }
 0x1f4   : > { %v3503_v28 = vshll.u32 %v14691_v35, 16 }
 0x1f5   : > { %v3429_v12 = vor.u32 %v3427_v3, %v3425_v54  ;;  %v3441_v9 = vrot.slane %v3439_v61, 1  ;;  %v3507_v3 = vshrl.u32 %v14691_v35, 16 }
 0x1f6   : > { %v3505_v54 = vrot.slane %v3503_v28, 1  ;;  %v15955_v28 = vld [vmem:[%s14973_s25 + $0x40] sm:$0xf] }
 0x1f7   : > { %v3434_v41 = vsel %vm1512_vm3, %v3429_v12, %v3433_v40  ;;  %v3442_v52 = vsel %vm1512_vm3, %v3437_v15, %v3441_v9  ;;  %v14694_v40 = vld [vmem:[%s14973_s25 + $0xc8] sm:$0xff]   ;;  %v14695_v15 = vld [vmem:[%s14973_s25 + $0xd0] sm:$0xff]  }
 0x1f8   : > { %v3509_v12 = vor.u32 %v3507_v3, %v3505_v54  ;;  %v3539_v13 = vshrl.u32 %v14695_v15, 16 }
 0x1fa   : > { %12830 = vmatmul.mubr.msk.bf16.gmra.mrb[44].mxu0 %vm484_vm1, %v11602_v37  ;;  %v14685_v37 = vld [vmem:[%s14973_s25 + $0x80] sm:$0xff]  }
 0x1fb   : > { %12835 = vmatprep.mubr.msk.bf16.mxu0 %vm484_vm1, %v3362_v24  ;;  %v3443_v24 = vshrl.u32 %v14683_v45, 16  ;;  %v3455_v39 = vshll.u32 %v14685_v37, 16  ;;  %v14693_v45 = vld [vmem:[%s14973_s25 + $0xc0] sm:$0xff]  }
 0x1fc   : > { %v3519_v61 = vshll.u32 %v14693_v45, 16  ;;  %v3523_v8 = vshrl.u32 %v14693_v45, 16 }
 0x1fd   : > { %v3445_v42 = vor.u32 %v3443_v24, %v3441_v9  ;;  %v3457_v7 = vrot.slane %v3455_v39, 1  ;;  %v3517_v9 = vor.u32 %v3515_v60, %v3513_v14  ;;  %v3527_v24 = vshll.u32 %v14694_v40, 16 }
 0x1fe   : > { %v3514_v39 = vsel %vm1512_vm3, %v3509_v12, %v3513_v14 }
 0x1ff   : > { %v3450_v31 = vsel %vm1512_vm3, %v3445_v42, %v3449_v20  ;;  %v3531_v20 = vshrl.u32 %v14694_v40, 16  ;;  %v3529_v10 = vrot.slane %v3527_v24, 1  ;;  %v15981_v24 = vld [vmem:[%s14973_s25 + $0x58] sm:$0xf] }
 0x202   : > { %12836 = vmatmul.mubr.msk.bf16.vlgmr.msra.gmra.mrb[0].mxu0 %vm484_vm1, %v3370_v29  ;;  %v3463_v29 = vshll.u32 %v14686_v5, 16  ;;  %v3535_v5 = vshll.u32 %v14695_v15, 16 }
 0x203   : > { %12884 = vmatpush3.bf16.msra.mxu0 %v4366_v26  ;;  %12839 = vmatprep.mubr.msk.bf16.mxu0 %vm484_vm1, %v3378_v47  ;;  %v3459_v26 = vshrl.u32 %v14685_v37, 16  ;;  %v3458_v47 = vsel %vm1512_vm3, %v3453_v62, %v3457_v7  ;;  %v3521_v37 = vrot.slane %v3519_v61, 1 }
 0x204   : > { %14454 = vmatprep.subr.msk.bf16.mxu0 %vm557_vm0, %v15866_v38  ;;  %v3465_v33 = vrot.slane %v3463_v29, 1 }
 0x205   : > { %v3461_v49 = vor.u32 %v3459_v26, %v3457_v7  ;;  %v3522_v62 = vsel %vm1512_vm3, %v3517_v9, %v3521_v37  ;;  %v3525_v29 = vor.u32 %v3523_v8, %v3521_v37  ;;  %v3533_v26 = vor.u32 %v3531_v20, %v3529_v10  ;;  %v15975_v37 = vld [vmem:[%s14973_s25 + $0x50] sm:$0xf]  ;;  %v15984_v8 = vld [vmem:[%s14973_s25 + $0x5c] sm:$0xf] }
 0x206   : > { %v3469_v0 = vor.u32 %v3467_v43, %v3465_v33  ;;  %v15938_v43 = vld [vmem:[%s14973_s25 + $0x34] sm:$0xf]  ;;  %v4740_v20 = vsel %vm557_vm0, %v15866_v38, 0  ;;  %v15997_v38 = vld [vmem:[%s18357_s1 + $0x10] sm:$0x3] }
 0x207   : > { %v3530_v25 = vsel %vm1512_vm3, %v3525_v29, %v3529_v10  ;;  %v11680_v48 = vcombine.low %v15825_v1, %v15938_v43 }
 0x20a   : > { %12840 = vmatmul.mubr.msk.bf16.gmra.mrb[4].mxu0 %vm484_vm1, %v3386_v50  ;;  %v3466_v50 = vsel %vm1512_vm3, %v3461_v49, %v3465_v33 }
 0x20b   : > { %12843 = vmatprep.mubr.msk.bf16.mxu0 %vm484_vm1, %v3394_v16  ;;  %v3474_v16 = vsel %vm1512_vm3, %v3469_v0, %v3473_v2  ;;  %v15941_v0 = vld [vmem:[%s14973_s25 + $0x38] sm:$0xf]  ;;  %v15944_v2 = vld [vmem:[%s14973_s25 + $0x3c] sm:$0xf] }
 0x212   : > { %12844 = vmatmul.mubr.msk.bf16.gmra.mrb[8].mxu0 %vm484_vm1, %v3402_v17  ;;  %v3482_v17 = vsel %vm1512_vm3, %v3477_v19, %v3481_v6  ;;  %v11681_v19 = vcombine.low %v15941_v0, %v15944_v2 }
 0x213   : > { %12847 = vmatprep.mubr.msk.bf16.mxu0 %vm484_vm1, %v3410_v4  ;;  %v3490_v4 = vsel %vm1512_vm3, %v3485_v30, %v3489_v56  ;;  %v4087_v30 = vshrl.u32 %v11680_v48, 16  ;;  %v4090_v56 = vshll.u32 %v11680_v48, 16  ;;  %v16005_v48 = vld [vmem:[%s14973_s25 + $0x64] sm:$0xf] }
 0x214   : > { %v4099_v23 = vshll.u32 %v11681_v19, 16 }
 0x21a   : > { %12848 = vmatmul.mubr.msk.bf16.gmra.mrb[12].mxu0 %vm484_vm1, %v3418_v27  ;;  %v3498_v27 = vsel %vm1512_vm3, %v3493_v32, %v3497_v55  ;;  %v15958_v55 = vld [vmem:[%s14973_s25 + $0x44] sm:$0xf]  ;;  %v15964_v32 = vld [vmem:[%s14973_s25 + $0x4c] sm:$0xf] }
 0x21b   : > { %12851 = vmatprep.mubr.msk.bf16.mxu0 %vm484_vm1, %v3426_v22  ;;  %v3506_v22 = vsel %vm1512_vm3, %v3501_v53, %v3505_v54  ;;  %v4089_v53 = vrot.slane %v4087_v30, 3  ;;  %v4092_v54 = vrot.slane %v4090_v56, 4  ;;  %v11682_v11 = vcombine.low %v15955_v28, %v15958_v55 }
 0x21c   : > { %v11683_v60 = vcombine.low %v15961_v57, %v15964_v32 }
 0x21d   : > { %v4093_v61 = vor.u32 %v4092_v54, %v4089_v53  ;;  %v4105_v40 = vshrl.u32 %v11682_v11, 16  ;;  %v4108_v14 = vshll.u32 %v11682_v11, 16  ;;  %v16024_v53 = vld [vmem:[%s14973_s25 + $0x70] sm:$0xf]  ;;  %v16027_v54 = vld [vmem:[%s14973_s25 + $0x74] sm:$0xf] }
 0x21e   : > { %v4114_v15 = vshrl.u32 %v11683_v60, 16  ;;  %v4117_v9 = vshll.u32 %v11683_v60, 16  ;;  %v16033_v11 = vld [vmem:[%s14973_s25 + $0x7c] sm:$0xf]  ;;  %v11688_v60 = vcombine.low %v16024_v53, %v16027_v54 }
 0x220   : > { %v4116_v10 = vrot.slane %v4114_v15, 3  ;;  %v4119_v29 = vrot.slane %v4117_v9, 4  ;;  %v4159_v9 = vshrl.u32 %v11688_v60, 16 }
 0x222   : > { %12852 = vmatmul.mubr.msk.bf16.gmra.mrb[16].mxu0 %vm484_vm1, %v3434_v41  ;;  %v15924_v41 = vld [vmem:[%s14973_s25 + $0x24] sm:$0xf] }
 0x223   : > { %12855 = vmatprep.mubr.msk.bf16.mxu0 %vm484_vm1, %v3442_v52  ;;  %v15927_v52 = vld [vmem:[%s14973_s25 + $0x28] sm:$0xf]  ;;  %v11678_v42 = vcombine.low %v3895_v46, %v15924_v41  ;;  %v15978_v46 = vld [vmem:[%s14973_s25 + $0x54] sm:$0xf] }
 0x224   : > { %v11679_v7 = vcombine.low %v15927_v52, %v15822_v36 }
 0x225   : > { %v4070_v59 = vshrl.u32 %v11678_v42, 16  ;;  %v4073_v33 = vshll.u32 %v11678_v42, 16  ;;  %v4110_v42 = vrot.slane %v4108_v14, 4 }
 0x226   : > { %v4078_v21 = vshrl.u32 %v11679_v7, 16  ;;  %v4081_v49 = vshll.u32 %v11679_v7, 16 }
 0x227   : > { %v4072_v34 = vrot.slane %v4070_v59, 3  ;;  %v4075_v44 = vrot.slane %v4073_v33, 4  ;;  %v4120_v33 = vor.u32 %v4119_v29, %v4116_v10  ;;  %v16050_v10 = vld [vmem:[%s14973_s25 + $0x88] sm:$0xf]  ;;  %v16053_v29 = vld [vmem:[%s14973_s25 + $0x8c] sm:$0xf] }
 0x228   : > { %v4080_v6 = vrot.slane %v4078_v21, 3  ;;  %v4083_v18 = vrot.slane %v4081_v49, 4 }
 0x22a   : > { %12856 = vmatmul.mubr.msk.bf16.gmra.mrb[20].mxu0 %vm484_vm1, %v3450_v31  ;;  %v14696_v31 = vld [vmem:[%s14973_s25 + $0xd8] ss:$0 sps:$4 sm:$0x11]   ;;  %v4084_v51 = vor.u32 %v4083_v18, %v4080_v6 }
 0x22b   : > { %12859 = vmatprep.mubr.msk.bf16.mxu0 %vm484_vm1, %v3458_v47  ;;  %v3537_v47 = vrot.slane %v3535_v5, 1  ;;  %v4107_v5 = vrot.slane %v4105_v40, 3 }
 0x22d   : > { %v3541_v35 = vor.u32 %v3539_v13, %v3537_v47  ;;  %v16013_v13 = vld [vmem:[%s14973_s25 + $0x6c] sm:$0xf] }
 0x232   : > { %12860 = vmatmul.mubr.msk.bf16.gmra.mrb[24].mxu0 %vm484_vm1, %v3466_v50  ;;  %v3538_v50 = vsel %vm1512_vm3, %v3533_v26, %v3537_v47  ;;  %v4111_v26 = vor.u32 %v4110_v42, %v4107_v5 }
 0x233   : > { %12863 = vmatprep.mubr.msk.bf16.mxu0 %vm484_vm1, %v3474_v16  ;;  %v3543_v16 = vshll.u32 %v14696_v31, 16  ;;  %v11685_v31 = vcombine.low %v15981_v24, %v15984_v8 }
 0x234   : > { %v4121_v18 = vsel %vm813_vm2, %v4111_v26, %v4120_v33 }
 0x235   : > { %v3545_v58 = vrot.slane %v3543_v16, 1  ;;  %v4132_v21 = vshrl.u32 %v11685_v31, 16  ;;  %v4135_v49 = vshll.u32 %v11685_v31, 16 }
 0x237   : > { %v3546_v45 = vsel %vm1512_vm3, %v3541_v35, %v3545_v58  ;;  %v4137_v30 = vrot.slane %v4135_v49, 4 }
 0x23a   : > { %12864 = vmatmul.mubr.msk.bf16.gmra.mrb[28].mxu0 %vm484_vm1, %v3482_v17  ;;  %v4076_v17 = vor.u32 %v4075_v44, %v4072_v34 }
 0x23b   : > { %12867 = vmatprep.mubr.msk.bf16.mxu0 %vm484_vm1, %v3490_v4  ;;  %v4096_v4 = vshrl.u32 %v11681_v19, 16  ;;  %v4134_v19 = vrot.slane %v4132_v21, 3 }
 0x23d   : > { %v4098_v3 = vrot.slane %v4096_v4, 3 }
 0x242   : > { %12868 = vmatmul.mubr.msk.bf16.gmra.mrb[32].mxu0 %vm484_vm1, %v3498_v27  ;;  %v4085_v27 = vsel %vm813_vm2, %v4076_v17, %v4084_v51 }
 0x243   : > { %12871 = vmatprep.mubr.msk.bf16.mxu0 %vm484_vm1, %v3506_v22  ;;  %v4101_v22 = vrot.slane %v4099_v23, 4 }
 0x245   : > { %v4102_v12 = vor.u32 %v4101_v22, %v4098_v3 }
 0x247   : > { %v4103_v7 = vsel %vm813_vm2, %v4093_v61, %v4102_v12  ;;  %v4112_v16 = vsel %vm813_vm2, %v4102_v12, %v4111_v26  ;;  %v4161_v26 = vrot.slane %v4159_v9, 3 }
 0x24a   : > { %12872 = vmatmul.mubr.msk.bf16.gmra.mrb[36].mxu0 %vm484_vm1, %v3514_v39  ;;  %v4094_v39 = vsel %vm813_vm2, %v4084_v51, %v4093_v61  ;;  %v4138_v51 = vor.u32 %v4137_v30, %v4134_v19 }
 0x24b   : > { %12875 = vmatprep.mubr.msk.bf16.mxu0 %vm484_vm1, %v3522_v62  ;;  %v11684_v62 = vcombine.low %v15975_v37, %v15978_v46 }
 0x24d   : > { %v4123_v47 = vshrl.u32 %v11684_v62, 16  ;;  %v4126_v59 = vshll.u32 %v11684_v62, 16  ;;  %v16044_v62 = vld [vmem:[%s14973_s25 + $0x80] sm:$0xf] }
 0x24f   : > { %v4125_v34 = vrot.slane %v4123_v47, 3  ;;  %v4128_v44 = vrot.slane %v4126_v59, 4 }
 0x251   : > { %v4129_v35 = vor.u32 %v4128_v44, %v4125_v34 }
 0x252   : > { %12876 = vmatmul.mubr.msk.bf16.gmra.mrb[40].mxu0 %vm484_vm1, %v3530_v25  ;;  %v16002_v25 = vld [vmem:[%s14973_s25 + $0x60] sm:$0xf] }
 0x253   : > { %12879 = vmatprep.mubr.msk.bf16.mxu0 %vm484_vm1, %v3538_v50  ;;  %v16010_v50 = vld [vmem:[%s14973_s25 + $0x68] sm:$0xf]  ;;  %v11686_v6 = vcombine.low %v16002_v25, %v16005_v48  ;;  %v4139_v61 = vsel %vm813_vm2, %v4129_v35, %v4138_v51 }
 0x254   : > { %v11687_v56 = vcombine.low %v16010_v50, %v16013_v13 }
 0x255   : > { %v4141_v58 = vshrl.u32 %v11686_v6, 16  ;;  %v4144_v17 = vshll.u32 %v11686_v6, 16 }
 0x256   : > { %v4150_v4 = vshrl.u32 %v11687_v56, 16  ;;  %v4153_v23 = vshll.u32 %v11687_v56, 16  ;;  %v16064_v56 = vld [vmem:[%s14973_s25 + $0x90] sm:$0xf] }
 0x257   : > { %v4143_v3 = vrot.slane %v4141_v58, 3  ;;  %v4146_v22 = vrot.slane %v4144_v17, 4  ;;  %v16070_v58 = vld [vmem:[%s14973_s25 + $0x98] sm:$0xf]  ;;  %v16073_v17 = vld [vmem:[%s14973_s25 + $0x9c] sm:$0xf] }
 0x258   : > { %v4152_v40 = vrot.slane %v4150_v4, 3  ;;  %v4155_v14 = vrot.slane %v4153_v23, 4 }
 0x259   : > { %v4147_v15 = vor.u32 %v4146_v22, %v4143_v3 }
 0x25a   : > { %12880 = vmatmul.mubr.msk.bf16.gmra.mrb[44].mxu0 %vm484_vm1, %v3546_v45  ;;  %v16030_v45 = vld [vmem:[%s14973_s25 + $0x78] sm:$0xf] }
 0x25b   : > { %12885 = vmatprep.mubr.msk.bf16.mxu0 %vm484_vm1, %v4085_v27  ;;  %v4130_v27 = vsel %vm813_vm2, %v4120_v33, %v4129_v35  ;;  %v11689_v12 = vcombine.low %v16030_v45, %v16033_v11  ;;  %v4148_v31 = vsel %vm813_vm2, %v4138_v51, %v4147_v15  ;;  %v16067_v35 = vld [vmem:[%s14973_s25 + $0x94] sm:$0xf] }
 0x25d   : > { %v4168_v5 = vshrl.u32 %v11689_v12, 16  ;;  %v4171_v42 = vshll.u32 %v11689_v12, 16 }
 0x25f   : > { %v4170_v21 = vrot.slane %v4168_v5, 3  ;;  %v4173_v49 = vrot.slane %v4171_v42, 4  ;;  %v16087_v5 = vld [vmem:[%s14973_s25 + $0xa4] sm:$0xf]  ;;  %v16090_v42 = vld [vmem:[%s14973_s25 + $0xa8] sm:$0xf] }
 0x262   : > { %12886 = vmatmul.mubr.msk.bf16.vlgmr.msra.gmra.mrb[0].mxu0 %vm484_vm1, %v4094_v39  ;;  %v4162_v39 = vshll.u32 %v11688_v60, 16 }
 0x263   : > { %12934 = vmatpush3.bf16.msra.mxu0 %v4740_v20  ;;  %12889 = vmatprep.mubr.msk.bf16.mxu0 %vm484_vm1, %v4103_v7  ;;  %v4156_v20 = vor.u32 %v4155_v14, %v4152_v40  ;;  %v16047_v7 = vld [vmem:[%s14973_s25 + $0x84] sm:$0xf] }
 0x264   : > { %14455 = vmatprep.subr.msk.bf16.mxu0 %vm557_vm0, %v15997_v38  ;;  %v4164_v47 = vrot.slane %v4162_v39, 4  ;;  %v11690_v59 = vcombine.low %v16044_v62, %v16047_v7 }
 0x265   : > { %v4157_v33 = vsel %vm813_vm2, %v4147_v15, %v4156_v20 }
 0x266   : > { %v4165_v34 = vor.u32 %v4164_v47, %v4161_v26  ;;  %v4177_v44 = vshrl.u32 %v11690_v59, 16  ;;  %v4180_v6 = vshll.u32 %v11690_v59, 16 }
 0x268   : > { %v4166_v51 = vsel %vm813_vm2, %v4156_v20, %v4165_v34  ;;  %v4179_v4 = vrot.slane %v4177_v44, 3  ;;  %v4182_v23 = vrot.slane %v4180_v6, 4  ;;  %v16084_v20 = vld [vmem:[%s14973_s25 + $0xa0] sm:$0xf] }
 0x26a   : > { %12890 = vmatmul.mubr.msk.bf16.gmra.mrb[4].mxu0 %vm484_vm1, %v4112_v16  ;;  %v11691_v16 = vcombine.low %v16050_v10, %v16053_v29  ;;  %v4183_v40 = vor.u32 %v4182_v23, %v4179_v4  ;;  %v16104_v4 = vld [vmem:[%s14973_s25 + $0xb0] sm:$0xf]  ;;  %v16107_v23 = vld [vmem:[%s14973_s25 + $0xb4] sm:$0xf] }
 0x26b   : > { %12893 = vmatprep.mubr.msk.bf16.mxu0 %vm484_vm1, %v4121_v18  ;;  %v4174_v18 = vor.u32 %v4173_v49, %v4170_v21 }
 0x26c   : > { %v4186_v19 = vshrl.u32 %v11691_v16, 16  ;;  %v4189_v30 = vshll.u32 %v11691_v16, 16 }
 0x26d   : > { %v4175_v3 = vsel %vm813_vm2, %v4165_v34, %v4174_v18  ;;  %v4184_v26 = vsel %vm813_vm2, %v4174_v18, %v4183_v40 }
 0x26e   : > { %v4188_v22 = vrot.slane %v4186_v19, 3  ;;  %v4191_v60 = vrot.slane %v4189_v30, 4 }
 0x270   : > { %v4192_v15 = vor.u32 %v4191_v60, %v4188_v22 }
 0x272   : > { %12894 = vmatmul.mubr.msk.bf16.gmra.mrb[8].mxu0 %vm484_vm1, %v4130_v27  ;;  %v11692_v27 = vcombine.low %v16064_v56, %v16067_v35  ;;  %v4193_v21 = vsel %vm813_vm2, %v4183_v40, %v4192_v15  ;;  %v11696_v40 = vcombine.low %v16104_v4, %v16107_v23 }
 0x273   : > { %12897 = vmatprep.mubr.msk.bf16.mxu0 %vm484_vm1, %v4139_v61  ;;  %v11693_v61 = vcombine.low %v16070_v58, %v16073_v17 }
 0x274   : > { %v4195_v14 = vshrl.u32 %v11692_v27, 16  ;;  %v4198_v12 = vshll.u32 %v11692_v27, 16  ;;  %v16110_v27 = vld [vmem:[%s14973_s25 + $0xb8] sm:$0xf] }
 0x275   : > { %v4204_v9 = vshrl.u32 %v11693_v61, 16  ;;  %v4207_v39 = vshll.u32 %v11693_v61, 16 }
 0x276   : > { %v4197_v47 = vrot.slane %v4195_v14, 3  ;;  %v4200_v59 = vrot.slane %v4198_v12, 4 }
 0x277   : > { %v4206_v49 = vrot.slane %v4204_v9, 3  ;;  %v4209_v16 = vrot.slane %v4207_v39, 4 }
 0x278   : > { %v4201_v44 = vor.u32 %v4200_v59, %v4197_v47  ;;  %v4234_v47 = vshll.u32 %v11696_v40, 16 }
 0x279   : > { %v4210_v19 = vor.u32 %v4209_v16, %v4206_v49  ;;  %v16124_v49 = vld [vmem:[%s14973_s25 + $0xc0] sm:$0xf]  ;;  %v16127_v16 = vld [vmem:[%s14973_s25 + $0xc4] sm:$0xf] }
 0x27a   : > { %12898 = vmatmul.mubr.msk.bf16.gmra.mrb[12].mxu0 %vm484_vm1, %v4148_v31  ;;  %v16093_v31 = vld [vmem:[%s14973_s25 + $0xac] sm:$0xf]  ;;  %v4202_v22 = vsel %vm813_vm2, %v4192_v15, %v4201_v44  ;;  %18522 = vst [vmem:[#allocation14_spill] sm:$0xff] %v16127_v16 }
 0x27b   : > { %12901 = vmatprep.mubr.msk.bf16.mxu0 %vm484_vm1, %v4157_v33  ;;  %v11694_v33 = vcombine.low %v16084_v20, %v16087_v5  ;;  %v11695_v34 = vcombine.low %v16090_v42, %v16093_v31  ;;  %v4211_v14 = vsel %vm813_vm2, %v4201_v44, %v4210_v19  ;;  %v16133_v44 = vld [vmem:[%s14973_s25 + $0xcc] sm:$0xf] }
 0x27c   : > { %18524 = vst [vmem:[#allocation7_spill] sm:$0xff] %v16133_v44 }
 0x27d   : > { %v4213_v6 = vshrl.u32 %v11694_v33, 16  ;;  %v4216_v18 = vshll.u32 %v11694_v33, 16  ;;  %v4222_v30 = vshrl.u32 %v11695_v34, 16 }
 0x27f   : > { %v4215_v60 = vrot.slane %v4213_v6, 3  ;;  %v4218_v61 = vrot.slane %v4216_v18, 4  ;;  %v4224_v12 = vrot.slane %v4222_v30, 3  ;;  %v4236_v30 = vrot.slane %v4234_v47, 4  ;;  %v16144_v47 = vld [vmem:[%s14973_s25 + $0xd0] sm:$0xf] }
 0x281   : > { %v4219_v15 = vor.u32 %v4218_v61, %v4215_v60 }
 0x282   : > { %12902 = vmatmul.mubr.msk.bf16.gmra.mrb[16].mxu0 %vm484_vm1, %v4166_v51  ;;  %v4225_v51 = vshll.u32 %v11695_v34, 16  ;;  %v16130_v34 = vld [vmem:[%s14973_s25 + $0xc8] sm:$0xf] }
 0x283   : > { %12905 = vmatprep.mubr.msk.bf16.mxu0 %vm484_vm1, %v4175_v3  ;;  %v16113_v3 = vld [vmem:[%s14973_s25 + $0xbc] sm:$0xf]  ;;  %18523 = vst [vmem:[#allocation16_spill] sm:$0xff] %v16130_v34  ;;  %v4220_v6 = vsel %vm813_vm2, %v4210_v19, %v4219_v15 }
 0x284   : > { %v4227_v9 = vrot.slane %v4225_v51, 4  ;;  %v11697_v39 = vcombine.low %v16110_v27, %v16113_v3  ;;  %v11698_v51 = vcombine.low %v16124_v49, %v16127_v16 }
 0x286   : > { %v4228_v59 = vor.u32 %v4227_v9, %v4224_v12  ;;  %v4240_v33 = vshrl.u32 %v11697_v39, 16  ;;  %v4252_v12 = vshll.u32 %v11698_v51, 16 }
 0x288   : > { %v4242_v60 = vrot.slane %v4240_v33, 3  ;;  %v16153_v33 = vld [vmem:[%s14973_s25 + $0xdc] sm:$0xf] }
 0x289   : > { %18527 = vst [vmem:[#allocation11_spill] sm:$0xff] %v16153_v33 }
 0x28a   : > { %12906 = vmatmul.mubr.msk.bf16.gmra.mrb[20].mxu0 %vm484_vm1, %v4184_v26  ;;  %v4231_v26 = vshrl.u32 %v11696_v40, 16  ;;  %v11699_v40 = vcombine.low %v16130_v34, %v16133_v44  ;;  %v4254_v44 = vrot.slane %v4252_v12, 4  ;;  %v16164_v34 = vld [vmem:[%s14973_s25 + $0xe0] sm:$0xf] }
 0x28b   : > { %12909 = vmatprep.mubr.msk.bf16.mxu0 %vm484_vm1, %v4193_v21  ;;  %v4243_v21 = vshll.u32 %v11697_v39, 16 }
 0x28c   : > { %v4233_v18 = vrot.slane %v4231_v26, 3  ;;  %v4258_v39 = vshrl.u32 %v11699_v40, 16  ;;  %v4261_v26 = vshll.u32 %v11699_v40, 16 }
 0x28d   : > { %v4245_v61 = vrot.slane %v4243_v21, 4 }
 0x28e   : > { %v4237_v19 = vor.u32 %v4236_v30, %v4233_v18  ;;  %v11700_v18 = vcombine.low %v16144_v47, %v16147_v63 }
 0x28f   : > { %v4246_v9 = vor.u32 %v4245_v61, %v4242_v60 }
 0x290   : > { %v4238_v21 = vsel %vm813_vm2, %v4228_v59, %v4237_v19  ;;  %v4267_v40 = vshrl.u32 %v11700_v18, 16 }
 0x291   : > { %v4247_v30 = vsel %vm813_vm2, %v4237_v19, %v4246_v9 }
 0x292   : > { %12910 = vmatmul.mubr.msk.bf16.gmra.mrb[24].mxu0 %vm484_vm1, %v4202_v22  ;;  %v4229_v22 = vsel %vm813_vm2, %v4219_v15, %v4228_v59  ;;  %v16150_v15 = vld [vmem:[%s14973_s25 + $0xd8] sm:$0xf]  ;;  %v4270_v59 = vshll.u32 %v11700_v18, 16  ;;  %v4269_v19 = vrot.slane %v4267_v40, 3 }
 0x293   : > { %12913 = vmatprep.mubr.msk.bf16.mxu0 %vm484_vm1, %v4211_v14  ;;  %v4249_v14 = vshrl.u32 %v11698_v51, 16  ;;  %18526 = vst [vmem:[#allocation8_spill] sm:$0xff] %v16150_v15  ;;  %v4260_v51 = vrot.slane %v4258_v39, 3  ;;  %v11701_v60 = vcombine.low %v16150_v15, %v16153_v33 }
 0x294   : > { %v4272_v39 = vrot.slane %v4270_v59, 4  ;;  %v5858_v59 = vld [vmem:[%s18361_s5 + $0xb0] sm:$0xff] }
 0x295   : > { %v4279_v12 = vshll.u32 %v11701_v60, 16 }
 0x297   : > { %v4281_v15 = vrot.slane %v4279_v12, 4  ;;  %v5862_v12 = vld [vmem:[%s18361_s5 + $0xd0] sm:$0xff] }
 0x29a   : > { %12914 = vmatmul.mubr.msk.bf16.gmra.mrb[28].mxu0 %vm484_vm1, %v4220_v6  ;;  %v4251_v6 = vrot.slane %v4249_v14, 3  ;;  %v4276_v14 = vshrl.u32 %v11701_v60, 16 }
 0x29b   : > { %12917 = vmatprep.mubr.msk.bf16.mxu0 %vm484_vm1, %v4229_v22  ;;  %v4263_v22 = vrot.slane %v4261_v26, 4  ;;  %v11702_v26 = vcombine.low %v16164_v34, %v16164_v34 }
 0x29c   : > { %v4255_v61 = vor.u32 %v4254_v44, %v4251_v6  ;;  %v4273_v44 = vor.u32 %v4272_v39, %v4269_v19  ;;  %v5865_v19 = vld [vmem:[%s18361_s5 + $0xe8] sm:$0xff]  ;;  %v5866_v39 = vld [vmem:[%s18361_s5 + $0xf0] sm:$0xff] }
 0x29d   : > { %v4264_v16 = vor.u32 %v4263_v22, %v4260_v51  ;;  %v4285_v6 = vshrl.u32 %v11702_v26, 16  ;;  %v4288_v18 = vshll.u32 %v11702_v26, 16  ;;  %v5869_v26 = vld [vmem:[%s18361_s5 + $0x108] sm:$0xff] }
 0x29e   : > { %v4256_v63 = vsel %vm813_vm2, %v4246_v9, %v4255_v61 }
 0x29f   : > { %v4265_v33 = vsel %vm813_vm2, %v4255_v61, %v4264_v16  ;;  %v4274_v51 = vsel %vm813_vm2, %v4264_v16, %v4273_v44  ;;  %v4287_v9 = vrot.slane %v4285_v6, 3  ;;  %v4290_v22 = vrot.slane %v4288_v18, 4  ;;  %v5874_v6 = vld [vmem:[%s18361_s5 + $0x130] sm:$0xff]  ;;  %v5877_v18 = vld [vmem:[%s18361_s5 + $0x148] sm:$0xff] }
 0x2a0   : > { %v14864_v16 = vmov 0  }
 0x2a1   : > { %v4291_v61 = vor.u32 %v4290_v22, %v4287_v9  ;;  %14510 = vset.pattern.permute.xlu0 %v14864_v16  ;;  %307 = vst.msk [vmem:[#allocation2 + $0x8] sm:$0xff] %vm305_vm4, %v14864_v16  ;;  %308 = vst.msk [vmem:[#allocation2 + $0x10] sm:$0xff] %vm305_vm4, %v14864_v16  ;;  %14511 = vset.pattern.permute.xlu1 %v14864_v16  ;;  %v5836_v9 = vld [vmem:[%s18361_s5] sm:$0xff]  ;;  %v5839_v22 = vld [vmem:[%s18361_s5 + $0x18] sm:$0xff] }
 0x2a2   : > { %12918 = vmatmul.mubr.msk.bf16.gmra.mrb[32].mxu0 %vm484_vm1, %v4238_v21  ;;  %v4278_v21 = vrot.slane %v4276_v14, 3  ;;  %309 = vst.msk [vmem:[#allocation2 + $0xd8] sm:$0xff] %vm305_vm4, %v14864_v16  ;;  %310 = vst.msk [vmem:[#allocation2 + $0xe0] sm:$0xff] %vm305_vm4, %v14864_v16  ;;  %v5857_v14 = vld [vmem:[%s18361_s5 + $0xa8] sm:$0xff]  ;;  %5996 = vperm.xlu1 %14511, %v5858_v59   ;;  %v5850_v59 = vld [vmem:[%s18361_s5 + $0x70] sm:$0xff] }
 0x2a3   : > { %12921 = vmatprep.mubr.msk.bf16.mxu0 %vm484_vm1, %v4247_v30 }
 0x2a4   : > { %v4282_v30 = vor.u32 %v4281_v15, %v4278_v21  ;;  %v5856_v15 = vld [vmem:[%s18361_s5 + $0xa0] sm:$0xff]  ;;  %v5870_v21 = vld [vmem:[%s18361_s5 + $0x110] sm:$0xff] }
 0x2a5   : > { %5986 = vperm.xlu0 %14510, %v5856_v15   ;;  %v14746_v15 = vld [vmem:[%s14973_s25 + $0x24] sm:$0xff]  }
 0x2a6   : > { %v4283_v60 = vsel %vm813_vm2, %v4273_v44, %v4282_v30  ;;  %v4292_v40 = vsel %vm813_vm2, %v4282_v30, %v4291_v61  ;;  %v5873_v44 = vld [vmem:[%s18361_s5 + $0x128] sm:$0xff]  ;;  %v5878_v30 = vld [vmem:[%s18361_s5 + $0x150] sm:$0xff]  ;;  %v5843_v61 = vld [vmem:[%s18361_s5 + $0x38] sm:$0xff] }
 0x2a9   : > { %5991 = vperm.xlu0 %14510, %v5857_v14   ;;  %v18531_v14 = vld [vmem:[#allocation7_spill] sm:$0xff] }
 0x2aa   : > { %12922 = vmatmul.mubr.msk.bf16.gmra.mrb[36].mxu0 %vm484_vm1, %v4256_v63  ;;  %v11728_v63 = vcombine.low %v15924_v41, %v15927_v52  ;;  %v11730_v41 = vcombine.low %v15938_v43, %v15941_v0  ;;  %v5458_v52 = vsel %vm557_vm0, %v15997_v38, 0  ;;  %v5859_v43 = vld [vmem:[%s18361_s5 + $0xb8] sm:$0xff]  ;;  %v11732_v0 = vcombine.low %v15958_v55, %v15961_v57  ;;  %v5861_v38 = vld [vmem:[%s18361_s5 + $0xc8] sm:$0xff] }
 0x2ab   : > { %12925 = vmatprep.mubr.msk.bf16.mxu0 %vm484_vm1, %v4265_v33  ;;  %v18528_v33 = vcombine.low %v15822_v36, %v15825_v1  ;;  %v5860_v36 = vld [vmem:[%s18361_s5 + $0xc0] sm:$0xff]  ;;  %v11731_v1 = vcombine.low %v15944_v2, %v15955_v28  ;;  %6001 = vperm.xlu1 %14511, %v5859_v43   ;;  %v5863_v2 = vld [vmem:[%s18361_s5 + $0xd8] sm:$0xff]  ;;  %v11733_v55 = vcombine.low %v15964_v32, %v15975_v37 }
 0x2ac   : > { %v5864_v28 = vld [vmem:[%s18361_s5 + $0xe0] sm:$0xff]  ;;  %v11734_v57 = vcombine.low %v15978_v46, %v15981_v24  ;;  %v5867_v32 = vld [vmem:[%s18361_s5 + $0xf8] sm:$0xff]  ;;  %v11735_v46 = vcombine.low %v15984_v8, %v16002_v25  ;;  %v11736_v24 = vcombine.low %v16005_v48, %v16010_v50  ;;  %v11737_v48 = vcombine.low %v16013_v13, %v16024_v53 }
 0x2ad   : > { %6006 = vperm.xlu0 %14510, %v5860_v36   ;;  %v5868_v37 = vld [vmem:[%s18361_s5 + $0x100] sm:$0xff]  ;;  %v5871_v8 = vld [vmem:[%s18361_s5 + $0x118] sm:$0xff]  ;;  %v11738_v50 = vcombine.low %v16027_v54, %v16030_v45  ;;  %v11739_v54 = vcombine.low %v16033_v11, %v16044_v62  ;;  %v11740_v45 = vcombine.low %v16047_v7, %v16050_v10  ;;  %v11741_v7 = vcombine.low %v16053_v29, %v16064_v56  ;;  %v5837_v29 = vld [vmem:[%s18361_s5 + $0x8] sm:$0xff] }
 0x2ae   : > { %v5872_v25 = vld [vmem:[%s18361_s5 + $0x120] sm:$0xff]  ;;  %v5875_v13 = vld [vmem:[%s18361_s5 + $0x138] sm:$0xff]  ;;  %v11742_v10 = vcombine.low %v16067_v35, %v16070_v58  ;;  %v5838_v56 = vld [vmem:[%s18361_s5 + $0x10] sm:$0xff]  ;;  %v11743_v35 = vcombine.low %v16073_v17, %v16084_v20  ;;  %v11744_v58 = vcombine.low %v16087_v5, %v16090_v42  ;;  %v11745_v5 = vcombine.low %v16093_v31, %v16104_v4 }
 0x2af   : > { %6011 = vperm.xlu1 %14511, %v5861_v38   ;;  %v5876_v53 = vld [vmem:[%s18361_s5 + $0x140] sm:$0xff]  ;;  %v5879_v11 = vld [vmem:[%s18361_s5 + $0x158] sm:$0xff]  ;;  %v5841_v17 = vld [vmem:[%s18361_s5 + $0x28] sm:$0xff]  ;;  %v11746_v42 = vcombine.low %v16107_v23, %v16110_v27  ;;  %v11747_v23 = vcombine.low %v16113_v3, %v16124_v49  ;;  %v5192_v3 = vshll.u32 %v14746_v15, 16  ;;  %v11749_v43 = vcombine.low %v18531_v14, %v16144_v47 }
 0x2b0   : > { %v5880_v62 = vld [vmem:[%s18361_s5 + $0x160] sm:$0xff]  ;;  %v5842_v20 = vld [vmem:[%s18361_s5 + $0x30] sm:$0xff]  ;;  %v5845_v31 = vld [vmem:[%s18361_s5 + $0x48] sm:$0xff]  ;;  %v5190_v38 = vshrl.u32 %v14746_v15, 16 }
 0x2b1   : > { %6016 = vperm.xlu0 %14510, %v5862_v12   ;;  %v5846_v4 = vld [vmem:[%s18361_s5 + $0x50] sm:$0xff]  ;;  %v18529_v27 = vld [vmem:[#allocation16_spill] sm:$0xff]  ;;  %v5849_v49 = vld [vmem:[%s18361_s5 + $0x68] sm:$0xff]  ;;  %v5194_v12 = vrot.slane %v5192_v3, 1 }
 0x2b2   : > { %12926 = vmatmul.mubr.msk.bf16.gmra.mrb[40].mxu0 %vm484_vm1, %v4274_v51  ;;  %v5881_v51 = vld [vmem:[%s18361_s5 + $0x168] sm:$0xff]  ;;  %v18532_v36 = vld [vmem:[#allocation8_spill] sm:$0xff] }
 0x2b3   : > { %12929 = vmatprep.mubr.msk.bf16.mxu0 %vm484_vm1, %v4283_v60  ;;  %6021 = vperm.xlu1 %14511, %v5863_v2   ;;  %v5840_v60 = vld [vmem:[%s18361_s5 + $0x20] sm:$0xff]  ;;  %v5195_v47 = vor.u32 %v5194_v12, %v5190_v38 }
 0x2b5   : > { %6026 = vperm.xlu0 %14510, %v5864_v28   ;;  %v5851_v28 = vld [vmem:[%s18361_s5 + $0x78] sm:$0xff] }
 0x2b7   : > { %6031 = vperm.xlu1 %14511, %v5865_v19  }
 0x2b9   : > { %6036 = vperm.xlu0 %14510, %v5866_v39   ;;  %v14749_v39 = vld [vmem:[%s14973_s25 + $0x3c] sm:$0xff]  }
 0x2ba   : > { %12930 = vmatmul.mubr.msk.bf16.gmra.mrb[44].mxu0 %vm484_vm1, %v4292_v40  ;;  %v5844_v40 = vld [vmem:[%s18361_s5 + $0x40] sm:$0xff] }
 0x2bb   : > { %12935 = vmatprep.mubr.msk.bf16.mxu0 %vm484_vm1, %v11728_v63  ;;  %6041 = vperm.xlu1 %14511, %v5867_v32   ;;  %v18530_v63 = vld [vmem:[#allocation14_spill] sm:$0xff] }
 0x2bc   : > { %v11748_v16 = vcombine.low %v18530_v63, %v18529_v27  ;;  %v5853_v32 = vld [vmem:[%s18361_s5 + $0x88] sm:$0xff] }
 0x2bd   : > { %6046 = vperm.xlu0 %14510, %v5868_v37   ;;  %v5854_v37 = vld [vmem:[%s18361_s5 + $0x90] sm:$0xff] }
 0x2be   : > { %v14755_v63 = vld [vmem:[%s14973_s25 + $0x6c] sm:$0xff]  }
 0x2bf   : > { %6051 = vperm.xlu1 %14511, %v5869_v26   ;;  %v5261_v3 = vshll.u32 %v14755_v63, 16  ;;  %v5265_v12 = vshrl.u32 %v14755_v63, 16 }
 0x2c1   : > { %6056 = vperm.xlu0 %14510, %v5870_v21  }
 0x2c2   : > { %12936 = vmatmul.mubr.msk.bf16.vlgmr.msra.gmra.mrb[0].mxu0 %vm484_vm1, %v18528_v33  ;;  %v14747_v33 = vld [vmem:[%s14973_s25 + $0x2c] sm:$0xff]  }
 0x2c3   : > { %12984 = vmatpush3.bf16.msra.mxu0 %v5458_v52  ;;  %12939 = vmatprep.mubr.msk.bf16.mxu0 %vm484_vm1, %v11730_v41  ;;  %v5847_v41 = vld [vmem:[%s18361_s5 + $0x58] sm:$0xff]  ;;  %v5848_v52 = vld [vmem:[%s18361_s5 + $0x60] sm:$0xff]  ;;  %v5197_v2 = vshll.u32 %v14747_v33, 16  ;;  %v5201_v21 = vshrl.u32 %v14747_v33, 16 }
 0x2c4   : > { %6061 = vperm.xlu1 %14511, %v5871_v8  }
 0x2c5   : > { %6066 = vperm.xlu0 %14510, %v5872_v25   ;;  %v5199_v19 = vrot.slane %v5197_v2, 1 }
 0x2c7   : > { %v5200_v8 = vsel %vm1512_vm3, %v5195_v47, %v5199_v19  ;;  %v14758_v47 = vld [vmem:[%s14973_s25 + $0x84] sm:$0xff]  }
 0x2c8   : > { %6071 = vperm.xlu1 %14511, %v5873_v44   ;;  %v5882_v44 = vld [vmem:[%s18361_s5 + $0x170] sm:$0xff] }
 0x2c9   : > { %6076 = vperm.xlu0 %14510, %v5874_v6   ;;  %v14750_v6 = vld [vmem:[%s14973_s25 + $0x44] sm:$0xff]  }
 0x2ca   : > { %12940 = vmatmul.mubr.msk.bf16.gmra.mrb[4].mxu0 %vm484_vm1, %v11731_v1  ;;  %v18533_v1 = vld [vmem:[#allocation6_spill] sm:$0xff] }
 0x2cb   : > { %12943 = vmatprep.mubr.msk.bf16.mxu0 %vm484_vm1, %v11732_v0  ;;  %v11750_v0 = vcombine.low %v18533_v1, %v18532_v36  ;;  %v5263_v36 = vrot.slane %v5261_v3, 1  ;;  %v14757_v1 = vld [vmem:[%s14973_s25 + $0x7c] sm:$0xff]  }
 0x2cc   : > { %6081 = vperm.xlu1 %14511, %v5875_v13   ;;  %v5203_v13 = vor.u32 %v5201_v21, %v5199_v19 }
 0x2cd   : > { %6086 = vperm.xlu0 %14510, %v5876_v53   ;;  %v5267_v19 = vor.u32 %v5265_v12, %v5263_v36 }
 0x2d0   : > { %6091 = vperm.xlu1 %14511, %v5877_v18   ;;  %v5883_v18 = vld [vmem:[%s18361_s5 + $0x178] sm:$0xff] }
 0x2d1   : > { %6096 = vperm.xlu0 %14510, %v5878_v30   ;;  %v5221_v30 = vshll.u32 %v14750_v6, 16 }
 0x2d2   : > { %12944 = vmatmul.mubr.msk.bf16.gmra.mrb[8].mxu0 %vm484_vm1, %v11733_v55  ;;  %v5852_v55 = vld [vmem:[%s18361_s5 + $0x80] sm:$0xff] }
 0x2d3   : > { %12947 = vmatprep.mubr.msk.bf16.mxu0 %vm484_vm1, %v11734_v57  ;;  %v14748_v57 = vld [vmem:[%s14973_s25 + $0x34] sm:$0xff]  }
 0x2d4   : > { %6101 = vperm.xlu1 %14511, %v5879_v11   ;;  %v5205_v26 = vshll.u32 %v14748_v57, 16  ;;  %v5209_v25 = vshrl.u32 %v14748_v57, 16 }
 0x2d5   : > { %6106 = vperm.xlu0 %14510, %v5880_v62   ;;  %v5217_v62 = vshrl.u32 %v14749_v39, 16 }
 0x2d8   : > { %6111 = vperm.xlu1 %14511, %v5881_v51  }
 0x2d9   : > { %5886 = vperm.xlu0 %14510, %v5836_v9   ;;  %v5223_v9 = vrot.slane %v5221_v30, 1 }
 0x2da   : > { %12948 = vmatmul.mubr.msk.bf16.gmra.mrb[12].mxu0 %vm484_vm1, %v11735_v46  ;;  %v18534_v46 = vld [vmem:[#allocation11_spill] sm:$0xff] }
 0x2db   : > { %12951 = vmatprep.mubr.msk.bf16.mxu0 %vm484_vm1, %v11736_v24  ;;  %v11751_v24 = vcombine.low %v18534_v46, %v16164_v34  ;;  %v5207_v34 = vrot.slane %v5205_v26, 1  ;;  %v5285_v46 = vshll.u32 %v14758_v47, 16  ;;  %v5281_v26 = vshrl.u32 %v14757_v1, 16 }
 0x2dc   : > { %5891 = vperm.xlu1 %14511, %v5837_v29   ;;  %v14752_v29 = vld [vmem:[%s14973_s25 + $0x54] sm:$0xff]  }
 0x2dd   : > { %5896 = vperm.xlu0 %14510, %v5838_v56   ;;  %v5211_v53 = vor.u32 %v5209_v25, %v5207_v34  ;;  %v5208_v11 = vsel %vm1512_vm3, %v5203_v13, %v5207_v34  ;;  %v14761_v13 = vld [vmem:[%s14973_s25 + $0x9c] sm:$0xff]  }
 0x2e0   : > { %5901 = vperm.xlu1 %14511, %v5839_v22   ;;  %v14753_v22 = vld [vmem:[%s14973_s25 + $0x5c] sm:$0xff]  }
 0x2e1   : > { %5906 = vperm.xlu0 %14510, %v5840_v60   ;;  %v5237_v60 = vshll.u32 %v14752_v29, 16 }
 0x2e2   : > { %12952 = vmatmul.mubr.msk.bf16.gmra.mrb[16].mxu0 %vm484_vm1, %v11737_v48  ;;  %v5213_v48 = vshll.u32 %v14749_v39, 16 }
 0x2e3   : > { %12955 = vmatprep.mubr.msk.bf16.mxu0 %vm484_vm1, %v11738_v50  ;;  %v5855_v50 = vld [vmem:[%s18361_s5 + $0x98] sm:$0xff] }
 0x2e4   : > { %5911 = vperm.xlu1 %14511, %v5841_v17  }
 0x2e5   : > { %5916 = vperm.xlu0 %14510, %v5842_v20  }
 0x2e8   : > { %5921 = vperm.xlu1 %14511, %v5843_v61   ;;  %v5245_v61 = vshll.u32 %v14753_v22, 16 }
 0x2e9   : > { %5926 = vperm.xlu0 %14510, %v5844_v40   ;;  %v5239_v40 = vrot.slane %v5237_v60, 1 }
 0x2ea   : > { %12956 = vmatmul.mubr.msk.bf16.gmra.mrb[20].mxu0 %vm484_vm1, %v11739_v54  ;;  %v5215_v54 = vrot.slane %v5213_v48, 1  ;;  %v5247_v27 = vrot.slane %v5245_v61, 1  ;;  %v5287_v48 = vrot.slane %v5285_v46, 1 }
 0x2eb   : > { %12959 = vmatprep.mubr.msk.bf16.mxu0 %vm484_vm1, %v11740_v45  ;;  %v14751_v45 = vld [vmem:[%s14973_s25 + $0x4c] sm:$0xff]  }
 0x2ec   : > { %5931 = vperm.xlu1 %14511, %v5845_v31   ;;  %v5229_v51 = vshll.u32 %v14751_v45, 16  ;;  %v5219_v56 = vor.u32 %v5217_v62, %v5215_v54  ;;  %v5233_v20 = vshrl.u32 %v14751_v45, 16  ;;  %v14754_v31 = vld [vmem:[%s14973_s25 + $0x64] sm:$0xff]  }
 0x2ed   : > { %5936 = vperm.xlu0 %14510, %v5846_v4   ;;  %v5257_v33 = vshrl.u32 %v14754_v31, 16 }
 0x2ee   : > { %v5224_v17 = vsel %vm1512_vm3, %v5219_v56, %v5223_v9 }
 0x2f0   : > { %5941 = vperm.xlu1 %14511, %v5847_v41   ;;  %v5249_v41 = vshrl.u32 %v14753_v22, 16 }
 0x2f1   : > { %5946 = vperm.xlu0 %14510, %v5848_v52  }
 0x2f2   : > { %12960 = vmatmul.mubr.msk.bf16.gmra.mrb[24].mxu0 %vm484_vm1, %v11741_v7  ;;  %v5216_v7 = vsel %vm1512_vm3, %v5211_v53, %v5215_v54  ;;  %v5251_v14 = vor.u32 %v5249_v41, %v5247_v27 }
 0x2f3   : > { %12963 = vmatprep.mubr.msk.bf16.mxu0 %vm484_vm1, %v11742_v10  ;;  %v5225_v10 = vshrl.u32 %v14750_v6, 16 }
 0x2f4   : > { %5951 = vperm.xlu1 %14511, %v5849_v49  }
 0x2f5   : > { %5956 = vperm.xlu0 %14510, %v5850_v59   ;;  %v14756_v59 = vld [vmem:[%s14973_s25 + $0x74] sm:$0xff]  }
 0x2f8   : > { %5961 = vperm.xlu1 %14511, %v5851_v28   ;;  %v5273_v28 = vshrl.u32 %v14756_v59, 16 }
 0x2f9   : > { %5966 = vperm.xlu0 %14510, %v5852_v55   ;;  %v5277_v55 = vshll.u32 %v14757_v1, 16 }
 0x2fa   : > { %12964 = vmatmul.mubr.msk.bf16.gmra.mrb[28].mxu0 %vm484_vm1, %v11743_v35  ;;  %v5227_v35 = vor.u32 %v5225_v10, %v5223_v9 }
 0x2fb   : > { %12967 = vmatprep.mubr.msk.bf16.mxu0 %vm484_vm1, %v11744_v58  ;;  %v5231_v58 = vrot.slane %v5229_v51, 1 }
 0x2fc   : > { %5971 = vperm.xlu1 %14511, %v5853_v32   ;;  %v5279_v32 = vrot.slane %v5277_v55, 1 }
 0x2fd   : > { %5976 = vperm.xlu0 %14510, %v5854_v37   ;;  %v5235_v4 = vor.u32 %v5233_v20, %v5231_v58  ;;  %v14759_v37 = vld [vmem:[%s14973_s25 + $0x8c] sm:$0xff]  }
 0x2fe   : > { %v5293_v25 = vshll.u32 %v14759_v37, 16  ;;  %v5297_v45 = vshrl.u32 %v14759_v37, 16 }
 0x2ff   : > { %v5240_v15 = vsel %vm1512_vm3, %v5235_v4, %v5239_v40 }
 0x300   : > { %5981 = vperm.xlu1 %14511, %v5855_v50   ;;  %v14760_v50 = vld [vmem:[%s14973_s25 + $0x94] sm:$0xff]   ;;  %v5295_v6 = vrot.slane %v5293_v25, 1 }
 0x301   : > { %6116 = vperm.xlu0 %14510, %v5882_v44   ;;  %v5283_v44 = vor.u32 %v5281_v26, %v5279_v32  ;;  %v5301_v53 = vshll.u32 %v14760_v50, 16  ;;  %v5305_v30 = vshrl.u32 %v14760_v50, 16 }
 0x302   : > { %12968 = vmatmul.mubr.msk.bf16.gmra.mrb[32].mxu0 %vm484_vm1, %v11745_v5  ;;  %v5232_v5 = vsel %vm1512_vm3, %v5227_v35, %v5231_v58  ;;  %v5299_v10 = vor.u32 %v5297_v45, %v5295_v6  ;;  %v5313_v58 = vshrl.u32 %v14761_v13, 16  ;;  %v11827_v45 = vld [vmem:[%s18358_s2 + $0x4] sm:$0xf] }
 0x303   : > { %12971 = vmatprep.mubr.msk.bf16.mxu0 %vm484_vm1, %v11746_v42  ;;  %v5241_v42 = vshrl.u32 %v14752_v29, 16  ;;  %v5288_v54 = vsel %vm1512_vm3, %v5283_v44, %v5287_v48  ;;  %v5303_v62 = vrot.slane %v5301_v53, 1  ;;  %v14763_v29 = vld [vmem:[%s14973_s25 + $0xac] sm:$0xff]   ;;  %14456 = vmatprep.subr.msk.bf16.mxu0 %vm6274_vm5, %v11827_v45 }
 0x304   : > { %6121 = vperm.xlu1 %14511, %v5883_v18   ;;  %14457 = vmatprep.subr.msk.bf16.mxu1 %vm6274_vm5, %v11827_v45 }
 0x305   : > { %v5307_v51 = vor.u32 %v5305_v30, %v5303_v62  ;;  %v5304_v35 = vsel %vm1512_vm3, %v5299_v10, %v5303_v62  ;;  %v6246_v30 = vld [vmem:[#allocation2 + $0x8] sm:$0xf0] }
 0x306   : > { %v6275_v62 = vrot.slane %v6246_v30, 4 }
 0x30a   : > { %12972 = vmatmul.mubr.msk.bf16.gmra.mrb[36].mxu0 %vm484_vm1, %v11747_v23  ;;  %v5243_v23 = vor.u32 %v5241_v42, %v5239_v40 }
 0x30b   : > { %12975 = vmatprep.mubr.msk.bf16.mxu0 %vm484_vm1, %v11748_v16  ;;  %v5253_v16 = vshll.u32 %v14754_v31, 16  ;;  %v14765_v31 = vld [vmem:[%s14973_s25 + $0xbc] sm:$0xff]  }
 0x30c   : > { %v5248_v52 = vsel %vm1512_vm3, %v5243_v23, %v5247_v27  ;;  %v5329_v27 = vshrl.u32 %v14763_v29, 16 }
 0x30d   : > { %v5255_v49 = vrot.slane %v5253_v16, 1 }
 0x30f   : > { %v5256_v38 = vsel %vm1512_vm3, %v5251_v14, %v5255_v49 }
 0x312   : > { %12976 = vmatmul.mubr.msk.bf16.gmra.mrb[40].mxu0 %vm484_vm1, %v11749_v43  ;;  %v5259_v43 = vor.u32 %v5257_v33, %v5255_v49 }
 0x313   : > { %12979 = vmatprep.mubr.msk.bf16.mxu0 %vm484_vm1, %v11750_v0  ;;  %v5269_v0 = vshll.u32 %v14756_v59, 16  ;;  %v14767_v59 = vld [vmem:[%s14973_s25 + $0xcc] sm:$0xff]  }
 0x314   : > { %v5264_v2 = vsel %vm1512_vm3, %v5259_v43, %v5263_v36  ;;  %v5345_v36 = vshrl.u32 %v14765_v31, 16 }
 0x315   : > { %v5271_v57 = vrot.slane %v5269_v0, 1 }
 0x317   : > { %v5275_v39 = vor.u32 %v5273_v28, %v5271_v57 }
 0x319   : > { %v5280_v21 = vsel %vm1512_vm3, %v5275_v39, %v5279_v32  ;;  %v5361_v32 = vshrl.u32 %v14767_v59, 16 }
 0x31a   : > { %12980 = vmatmul.mubr.msk.bf16.gmra.mrb[44].mxu0 %vm484_vm1, %v11751_v24  ;;  %v5272_v24 = vsel %vm1512_vm3, %v5267_v19, %v5271_v57 }
 0x31b   : > { %12985 = vmatprep.mubr.msk.bf16.mxu0 %vm484_vm1, %v5200_v8  ;;  %v5289_v8 = vshrl.u32 %v14758_v47, 16  ;;  %v14769_v47 = vld [vmem:[%s14973_s25 + $0xdc] sm:$0xff]  }
 0x31c   : > { %v5377_v44 = vshrl.u32 %v14769_v47, 16 }
 0x31d   : > { %v5291_v34 = vor.u32 %v5289_v8, %v5287_v48  ;;  %v14770_v8 = vld [vmem:[%s14973_s25 + $0xe4] ss:$0 sps:$4 sm:$0x11]  }
 0x31f   : > { %v5296_v18 = vsel %vm1512_vm3, %v5291_v34, %v5295_v6  ;;  %v5381_v34 = vshll.u32 %v14770_v8, 16 }
 0x321   : > { %v5383_v53 = vrot.slane %v5381_v34, 1 }
 0x322   : > { %12986 = vmatmul.mubr.msk.bf16.vlgmr.msra.gmra.mrb[0].mxu0 %vm484_vm1, %v5208_v11  ;;  %v5309_v11 = vshll.u32 %v14761_v13, 16 }
 0x323   : > { %12989 = vmatprep.mubr.msk.bf16.mxu0 %vm484_vm1, %v5216_v7  ;;  %v14762_v7 = vld [vmem:[%s14973_s25 + $0xa4] sm:$0xff]  }
 0x324   : > { %v5311_v9 = vrot.slane %v5309_v11, 1  ;;  %v5317_v56 = vshll.u32 %v14762_v7, 16  ;;  %v5321_v60 = vshrl.u32 %v14762_v7, 16  ;;  %v6398_v11 = vsel %vm6274_vm5, %v11827_v45, 0 }
 0x325   : > { %13034 = vmatpush3.bf16.msra.mxu0 %v6398_v11  ;;  %13534 = vmatpush3.bf16.msra.mxu1 %v6398_v11 }
 0x326   : > { %v5312_v22 = vsel %vm1512_vm3, %v5307_v51, %v5311_v9  ;;  %v5319_v20 = vrot.slane %v5317_v56, 1  ;;  %v5315_v42 = vor.u32 %v5313_v58, %v5311_v9 }
 0x328   : > { %v5323_v61 = vor.u32 %v5321_v60, %v5319_v20  ;;  %v5320_v23 = vsel %vm1512_vm3, %v5315_v42, %v5319_v20 }
 0x32a   : > { %12990 = vmatmul.mubr.msk.bf16.gmra.mrb[4].mxu0 %vm484_vm1, %v5224_v17  ;;  %v5325_v17 = vshll.u32 %v14763_v29, 16 }
 0x32b   : > { %12993 = vmatprep.mubr.msk.bf16.mxu0 %vm484_vm1, %v5232_v5  ;;  %v14764_v5 = vld [vmem:[%s14973_s25 + $0xb4] sm:$0xff]  }
 0x32c   : > { %v5327_v40 = vrot.slane %v5325_v17, 1  ;;  %v5333_v4 = vshll.u32 %v14764_v5, 16  ;;  %v5337_v16 = vshrl.u32 %v14764_v5, 16 }
 0x32e   : > { %v5328_v63 = vsel %vm1512_vm3, %v5323_v61, %v5327_v40  ;;  %v5335_v41 = vrot.slane %v5333_v4, 1  ;;  %v5331_v33 = vor.u32 %v5329_v27, %v5327_v40 }
 0x330   : > { %v5339_v3 = vor.u32 %v5337_v16, %v5335_v41  ;;  %v5336_v43 = vsel %vm1512_vm3, %v5331_v33, %v5335_v41  ;;  %v16530_v41 = vld [vmem:[%s18358_s2] sm:$0xf] }
 0x331   : > { %14458 = vmatprep.subr.msk.bf16.mxu1 %vm6274_vm5, %v16530_v41 }
 0x332   : > { %12994 = vmatmul.mubr.msk.bf16.gmra.mrb[8].mxu0 %vm484_vm1, %v5240_v15  ;;  %v5341_v15 = vshll.u32 %v14765_v31, 16 }
 0x333   : > { %12997 = vmatprep.mubr.msk.bf16.mxu0 %vm484_vm1, %v5248_v52  ;;  %v14766_v52 = vld [vmem:[%s14973_s25 + $0xc4] sm:$0xff]  }
 0x334   : > { %v5343_v49 = vrot.slane %v5341_v15, 1  ;;  %v5349_v14 = vshll.u32 %v14766_v52, 16  ;;  %v5353_v0 = vshrl.u32 %v14766_v52, 16 }
 0x336   : > { %v5344_v1 = vsel %vm1512_vm3, %v5339_v3, %v5343_v49  ;;  %v5351_v12 = vrot.slane %v5349_v14, 1  ;;  %v5347_v28 = vor.u32 %v5345_v36, %v5343_v49 }
 0x338   : > { %v5355_v55 = vor.u32 %v5353_v0, %v5351_v12  ;;  %v5352_v39 = vsel %vm1512_vm3, %v5347_v28, %v5351_v12 }
 0x33a   : > { %12998 = vmatmul.mubr.msk.bf16.gmra.mrb[12].mxu0 %vm484_vm1, %v5256_v38  ;;  %v5357_v38 = vshll.u32 %v14767_v59, 16 }
 0x33b   : > { %13001 = vmatprep.mubr.msk.bf16.mxu0 %vm484_vm1, %v5264_v2  ;;  %v14768_v2 = vld [vmem:[%s14973_s25 + $0xd4] sm:$0xff]  }
 0x33c   : > { %v5359_v57 = vrot.slane %v5357_v38, 1  ;;  %v5365_v19 = vshll.u32 %v14768_v2, 16  ;;  %v5369_v46 = vshrl.u32 %v14768_v2, 16 }
 0x33e   : > { %v5360_v37 = vsel %vm1512_vm3, %v5355_v55, %v5359_v57  ;;  %v5367_v26 = vrot.slane %v5365_v19, 1 }
 0x340   : > { %v5371_v25 = vor.u32 %v5369_v46, %v5367_v26 }
 0x342   : > { %13002 = vmatmul.mubr.msk.bf16.gmra.mrb[16].mxu0 %vm484_vm1, %v5272_v24  ;;  %v5373_v24 = vshll.u32 %v14769_v47, 16  ;;  %v16557_v47 = vld [vmem:[%s18359_s3] ss:$0 sm:$0xff] }
 0x343   : > { %13005 = vmatprep.mubr.msk.bf16.mxu0 %vm484_vm1, %v5280_v21  ;;  %v5363_v21 = vor.u32 %v5361_v32, %v5359_v57 }
 0x344   : > { %v5375_v48 = vrot.slane %v5373_v24, 1 }
 0x345   : > { %v5368_v50 = vsel %vm1512_vm3, %v5363_v21, %v5367_v26 }
 0x346   : > { %v5376_v6 = vsel %vm1512_vm3, %v5371_v25, %v5375_v48  ;;  %v5379_v13 = vor.u32 %v5377_v44, %v5375_v48 }
 0x34a   : > { %13006 = vmatmul.mubr.msk.bf16.gmra.mrb[20].mxu0 %vm484_vm1, %v5288_v54  ;;  %v5384_v54 = vsel %vm1512_vm3, %v5379_v13, %v5383_v53 }
 0x34b   : > { %13009 = vmatprep.mubr.msk.bf16.mxu0 %vm484_vm1, %v5296_v18  ;;  %v16477_v18 = vld [vmem:[#allocation2 + $0x10] sm:$0xff] }
 0x34c   : > { %v6276_v7 = vrot.slane %v16477_v18, 4  ;;  %v6634_v51 = vshrl.u32 %v16477_v18, 16  ;;  %v6637_v9 = vshll.u32 %v16477_v18, 16 }
 0x34e   : > { %v6277_v10 = vsel %vm6274_vm5, %v6275_v62, %v6276_v7  ;;  %v7161_v29 = vrot.slane %v6634_v51, 4  ;;  %v7162_v56 = vrot.slane %v6637_v9, 5 }
 0x350   : > { %v16495_v58 = vor.u32 %v7162_v56, %v7161_v29 }
 0x352   : > { %13010 = vmatmul.mubr.msk.bf16.gmra.mrb[24].mxu0 %vm484_vm1, %v5304_v35  ;;  %v16493_v35 = vpop.permute.xlu0 %5986  ;;  %18535 = vst [vmem:[#allocation9_spill] sm:$0xff] %v16495_v58 }
 0x353   : > { %13013 = vmatprep.mubr.msk.bf16.mxu0 %vm484_vm1, %v5312_v22  ;;  %v16497_v22 = vpop.permute.xlu1 %5996 }
 0x356   : > { %v16499_v60 = vpop.permute.xlu0 %5991 }
 0x357   : > { %v16501_v17 = vpop.permute.xlu1 %6001 }
 0x35a   : > { %13014 = vmatmul.mubr.msk.bf16.gmra.mrb[28].mxu0 %vm484_vm1, %v5320_v23  ;;  %v16503_v20 = vpop.permute.xlu0 %6006 }
 0x35b   : > { %13017 = vmatprep.mubr.msk.bf16.mxu0 %vm484_vm1, %v5328_v63  ;;  %v16505_v5 = vpop.permute.xlu1 %6011 }
 0x35e   : > { %v16507_v42 = vpop.permute.xlu0 %6016 }
 0x35f   : > { %v16509_v61 = vpop.permute.xlu1 %6021 }
 0x362   : > { %13018 = vmatmul.mubr.msk.bf16.gmra.mrb[32].mxu0 %vm484_vm1, %v5336_v43  ;;  %v16511_v40 = vpop.permute.xlu0 %6026 }
 0x363   : > { %13021 = vmatprep.mubr.msk.bf16.mxu0 %vm484_vm1, %v5344_v1  ;;  %v16513_v31 = vpop.permute.xlu1 %6031 }
 0x366   : > { %v16515_v4 = vpop.permute.xlu0 %6036 }
 0x367   : > { %v16517_v23 = vpop.permute.xlu1 %6041 }
 0x36a   : > { %13022 = vmatmul.mubr.msk.bf16.gmra.mrb[36].mxu0 %vm484_vm1, %v5352_v39  ;;  %v16519_v27 = vpop.permute.xlu0 %6046 }
 0x36b   : > { %13025 = vmatprep.mubr.msk.bf16.mxu0 %vm484_vm1, %v5360_v37  ;;  %v16521_v63 = vpop.permute.xlu1 %6051 }
 0x36e   : > { %v16523_v16 = vpop.permute.xlu0 %6056 }
 0x36f   : > { %v16525_v15 = vpop.permute.xlu1 %6061 }
 0x372   : > { %13026 = vmatmul.mubr.msk.bf16.gmra.mrb[40].mxu0 %vm484_vm1, %v5368_v50  ;;  %v16534_v52 = vpop.permute.xlu0 %6066 }
 0x373   : > { %13029 = vmatprep.mubr.msk.bf16.mxu0 %vm484_vm1, %v5376_v6  ;;  %v16536_v33 = vpop.permute.xlu1 %6071 }
 0x376   : > { %v16538_v3 = vpop.permute.xlu0 %6076 }
 0x377   : > { %v16540_v49 = vpop.permute.xlu1 %6081 }
 0x37a   : > { %13030 = vmatmul.mubr.msk.bf16.gmra.mrb[44].mxu0 %vm484_vm1, %v5384_v54  ;;  %v16542_v59 = vpop.permute.xlu0 %6086 }
 0x37b   : > { %13035 = vmatprep.mubr.msk.bf16.mxu0 %vm305_vm4, %v6277_v10  ;;  %v16544_v14 = vpop.permute.xlu1 %6091 }
 0x37e   : > { %v16546_v43 = vpop.permute.xlu0 %6096 }
 0x37f   : > { %v16548_v36 = vpop.permute.xlu1 %6101 }
 0x382   : > { %v16550_v1 = vpop.permute.xlu0 %6106 }
 0x383   : > { %v16552_v0 = vpop.permute.xlu1 %6111 }
 0x386   : > { %v5887_v38 = vpop.permute.xlu0 %5886 }
 0x387   : > { %v5892_v12 = vpop.permute.xlu1 %5891 }
 0x38a   : > { %v5897_v2 = vpop.permute.xlu0 %5896 }
 0x38b   : > { %v5902_v28 = vpop.permute.xlu1 %5901 }
 0x38e   : > { %v5907_v55 = vpop.permute.xlu0 %5906 }
 0x38f   : > { %v5912_v57 = vpop.permute.xlu1 %5911 }
 0x392   : > { %v5917_v19 = vpop.permute.xlu0 %5916 }
 0x393   : > { %v5922_v32 = vpop.permute.xlu1 %5921 }
 0x396   : > { %v5927_v44 = vpop.permute.xlu0 %5926 }
 0x397   : > { %v16563_v13 = vpop.permute.xlu1 %5931 }
 0x3f5   : > { %v12987_v39 = vpop.f32.mrb[0].mxu0 }
 0x3f6   : > { %v5742_v37 = vadd.f32 %v12987_v39, %v16557_v47  ;;  %v5494_v46 = vpop.f32.mrb[1].mxu0 }
 0x3f7   : > { %v5740_v24 = vadd.f32 %v16557_v47, %v5494_v46  ;;  %v12988_v26 = vpop.f32.mrb[2].mxu0  ;;  %v5937_v46 = vpop.permute.xlu0 %5936 }
 0x3f8   : > { %v5790_v21 = vmax.f32 %v5742_v37, 0.0  ;;  %v5743_v8 = vadd.f32 %v12988_v26, %v16557_v47  ;;  %v5497_v25 = vpop.f32.mrb[3].mxu0 }
 0x3f9   : > { %v5788_v48 = vmax.f32 %v5740_v24, 0.0  ;;  %v5741_v50 = vadd.f32 %v16557_v47, %v5497_v25  ;;  %v6636_v25 = vrot.slane %v6634_v51, 3 }
 0x3fa   : > { %v5791_v34 = vmax.f32 %v5743_v8, 0.0  ;;  %v6126_v53 = vmul.f32 %v5897_v2, %v5790_v21  ;;  %v5942_v2 = vpop.permute.xlu1 %5941 }
 0x3fb   : > { %v5789_v6 = vmax.f32 %v5741_v50, 0.0  ;;  %v6124_v45 = vmul.f32 %v5887_v38, %v5788_v48  ;;  %v6639_v48 = vrot.slane %v6637_v9, 4 }
 0x3fc   : > { %v6127_v54 = vmul.f32 %v5902_v28, %v5791_v34 }
 0x3fd   : > { %v6125_v30 = vmul.f32 %v5892_v12, %v5789_v6  ;;  %v12991_v11 = vpop.f32.mrb[4].mxu0  ;;  %v16583_v9 = vor.u32 %v6639_v48, %v6636_v25 }
 0x3fe   : > { %v6173_v62 = vpack.c.bf16 %v6127_v54, %v6126_v53  ;;  %v5746_v10 = vadd.f32 %v12991_v11, %v16557_v47  ;;  %v5510_v29 = vpop.f32.mrb[5].mxu0  ;;  %v16581_v51 = vpop.permute.xlu1 %5951 }
 0x3ff   : > { %v6172_v56 = vpack.c.bf16 %v6125_v30, %v6124_v45  ;;  %v5744_v39 = vadd.f32 %v16557_v47, %v5510_v29  ;;  %v12992_v37 = vpop.f32.mrb[6].mxu0  ;;  %v16575_v45 = vpop.permute.xlu0 %5946 }
 0x400   : > { %6197 = vst.msk [vmem:[#allocation2 + $0x20] sm:$0xff] %vm305_vm4, %v6173_v62  ;;  %v5794_v24 = vmax.f32 %v5746_v10, 0.0  ;;  %v5747_v26 = vadd.f32 %v12992_v37, %v16557_v47  ;;  %v5513_v8 = vpop.f32.mrb[7].mxu0 }
 0x401   : > { %6196 = vst.msk [vmem:[#allocation2 + $0x18] sm:$0xff] %vm305_vm4, %v6172_v56  ;;  %v5792_v38 = vmax.f32 %v5744_v39, 0.0  ;;  %v5745_v12 = vadd.f32 %v16557_v47, %v5513_v8 }
 0x402   : > { %v5795_v28 = vmax.f32 %v5747_v26, 0.0  ;;  %v6130_v50 = vmul.f32 %v5917_v19, %v5794_v24 }
 0x403   : > { %v5793_v21 = vmax.f32 %v5745_v12, 0.0  ;;  %v6128_v6 = vmul.f32 %v5907_v55, %v5792_v38 }
 0x404   : > { %v6131_v34 = vmul.f32 %v5922_v32, %v5795_v28 }
 0x405   : > { %v6129_v53 = vmul.f32 %v5912_v57, %v5793_v21  ;;  %v12995_v54 = vpop.f32.mrb[8].mxu0 }
 0x406   : > { %v6175_v30 = vpack.c.bf16 %v6131_v34, %v6130_v50  ;;  %v5750_v11 = vadd.f32 %v12995_v54, %v16557_v47  ;;  %v5526_v62 = vpop.f32.mrb[9].mxu0  ;;  %v5957_v54 = vpop.permute.xlu0 %5956 }
 0x407   : > { %v6174_v10 = vpack.c.bf16 %v6129_v53, %v6128_v6  ;;  %v5748_v29 = vadd.f32 %v16557_v47, %v5526_v62  ;;  %v12996_v56 = vpop.f32.mrb[10].mxu0  ;;  %v16579_v39 = vld [vmem:[#allocation2 + $0x20] sm:$0xff] }
 0x408   : > { %6199 = vst.msk [vmem:[#allocation2 + $0x30] sm:$0xff] %vm305_vm4, %v6175_v30  ;;  %v5798_v55 = vmax.f32 %v5750_v11, 0.0  ;;  %v5751_v57 = vadd.f32 %v12996_v56, %v16557_v47  ;;  %v5529_v19 = vpop.f32.mrb[11].mxu0  ;;  %v6222_v32 = vld [vmem:[#allocation2 + $0x18] sm:$0xff]  ;;  %v6280_v37 = vrot.slane %v16579_v39, 4  ;;  %v6652_v24 = vshrl.u32 %v16579_v39, 16 }
 0x409   : > { %6198 = vst.msk [vmem:[#allocation2 + $0x28] sm:$0xff] %vm305_vm4, %v6174_v10  ;;  %v5796_v26 = vmax.f32 %v5748_v29, 0.0  ;;  %v5749_v8 = vadd.f32 %v16557_v47, %v5529_v19  ;;  %v6278_v38 = vrot.slane %v6222_v32, 4  ;;  %v6643_v12 = vshrl.u32 %v6222_v32, 16 }
 0x40a   : > { %v5799_v28 = vmax.f32 %v5751_v57, 0.0  ;;  %v6134_v21 = vmul.f32 %v5937_v46, %v5798_v55  ;;  %v6646_v25 = vshll.u32 %v6222_v32, 16  ;;  %v6654_v48 = vrot.slane %v6652_v24, 3 }
 0x40b   : > { %v6132_v50 = vmul.f32 %v5927_v44, %v5796_v26  ;;  %v5797_v34 = vmax.f32 %v5749_v8, 0.0  ;;  %v6279_v6 = vsel %vm6274_vm5, %v6276_v7, %v6278_v38  ;;  %v6281_v53 = vsel %vm6274_vm5, %v6278_v38, %v6280_v37  ;;  %v5962_v44 = vpop.permute.xlu1 %5961 }
 0x40c   : > { %v6135_v30 = vmul.f32 %v5942_v2, %v5799_v28  ;;  %13036 = vmatmul.mubr.msk.bf16.vlgmr.msra.gmra.mrb[48].mxu0 %vm305_vm4, %v6279_v6  ;;  %v6645_v11 = vrot.slane %v6643_v12, 3  ;;  %v6648_v62 = vrot.slane %v6646_v25, 4  ;;  %v6655_v10 = vshll.u32 %v16579_v39, 16 }
 0x40d   : > { %v6133_v46 = vmul.f32 %v16563_v13, %v5797_v34  ;;  %v12999_v29 = vpop.f32.mrb[12].mxu0  ;;  %13039 = vmatprep.mubr.msk.bf16.mxu0 %vm305_vm4, %v6281_v53  ;;  %v7165_v56 = vrot.slane %v6643_v12, 4  ;;  %v7166_v18 = vrot.slane %v6646_v25, 5  ;;  %v7169_v55 = vrot.slane %v6652_v24, 4 }
 0x40e   : > { %v6177_v7 = vpack.c.bf16 %v6135_v30, %v6134_v21  ;;  %v5754_v57 = vadd.f32 %v12999_v29, %v16557_v47  ;;  %v5542_v19 = vpop.f32.mrb[13].mxu0  ;;  %v6649_v2 = vor.u32 %v6648_v62, %v6645_v11  ;;  %v6657_v32 = vrot.slane %v6655_v10, 4  ;;  %v5967_v11 = vpop.permute.xlu0 %5966 }
 0x40f   : > { %v6176_v26 = vpack.c.bf16 %v6133_v46, %v6132_v50  ;;  %v5752_v8 = vadd.f32 %v16557_v47, %v5542_v19  ;;  %v13000_v38 = vpop.f32.mrb[14].mxu0  ;;  %v16601_v39 = vld [vmem:[#allocation2 + $0x30] sm:$0xff]  ;;  %v16603_v13 = vor.u32 %v7166_v18, %v7165_v56  ;;  %v7170_v28 = vrot.slane %v6655_v10, 5 }
 0x410   : > { %6201 = vst.msk [vmem:[#allocation2 + $0x40] sm:$0xff] %vm305_vm4, %v6177_v7  ;;  %v5802_v12 = vmax.f32 %v5754_v57, 0.0  ;;  %v5755_v24 = vadd.f32 %v13000_v38, %v16557_v47  ;;  %v5545_v21 = vpop.f32.mrb[15].mxu0  ;;  %v16607_v25 = vld [vmem:[#allocation2 + $0x28] sm:$0xff]  ;;  %v6284_v34 = vrot.slane %v16601_v39, 4  ;;  %v16612_v50 = vsel %vm813_vm2, %v16583_v9, %v6649_v2 }
 0x411   : > { %6200 = vst.msk [vmem:[#allocation2 + $0x38] sm:$0xff] %vm305_vm4, %v6176_v26  ;;  %v5800_v6 = vmax.f32 %v5752_v8, 0.0  ;;  %v5753_v53 = vadd.f32 %v16557_v47, %v5545_v21  ;;  %v6282_v30 = vrot.slane %v16607_v25, 4  ;;  %v6658_v62 = vor.u32 %v6657_v32, %v6654_v48  ;;  %v5972_v26 = vpop.permute.xlu1 %5971 }
 0x412   : > { %v5803_v10 = vmax.f32 %v5755_v24, 0.0  ;;  %v6138_v46 = vmul.f32 %v5957_v54, %v5802_v12  ;;  %v18389_v29 = vshrl.u32 %v16607_v25, 16  ;;  %v18386_v56 = vshll.u32 %v16607_v25, 16 }
 0x413   : > { %v6136_v18 = vmul.f32 %v16575_v45, %v5800_v6  ;;  %v5801_v7 = vmax.f32 %v5753_v53, 0.0  ;;  %v6283_v57 = vsel %vm6274_vm5, %v6280_v37, %v6282_v30  ;;  %v6285_v19 = vsel %vm6274_vm5, %v6282_v30, %v6284_v34 }
 0x414   : > { %v6139_v8 = vmul.f32 %v5962_v44, %v5803_v10  ;;  %13040 = vmatmul.mubr.msk.bf16.gmra.mrb[52].mxu0 %vm305_vm4, %v6283_v57  ;;  %v16624_v38 = vsel %vm813_vm2, %v6649_v2, %v6658_v62  ;;  %v6663_v48 = vrot.slane %v18389_v29, 3  ;;  %v6666_v54 = vrot.slane %v18386_v56, 4 }
 0x415   : > { %v6137_v45 = vmul.f32 %v16581_v51, %v5801_v7  ;;  %v13003_v32 = vpop.f32.mrb[16].mxu0  ;;  %13043 = vmatprep.mubr.msk.bf16.mxu0 %vm305_vm4, %v6285_v19  ;;  %v18388_v37 = vshrl.u32 %v16601_v39, 16  ;;  %v18387_v44 = vshll.u32 %v16601_v39, 16  ;;  %v16637_v2 = vsel %vm7152_vm6, %v16495_v58, %v16603_v13  ;;  %v5977_v7 = vpop.permute.xlu0 %5976 }
 0x416   : > { %18536 = vst [vmem:[#allocation10_spill] sm:$0xff] %v16637_v2  ;;  %v6179_v12 = vpack.c.bf16 %v6139_v8, %v6138_v46  ;;  %v5758_v24 = vadd.f32 %v13003_v32, %v16557_v47  ;;  %v5558_v21 = vpop.f32.mrb[17].mxu0  ;;  %v6667_v6 = vor.u32 %v6666_v54, %v6663_v48  ;;  %v16640_v53 = vor.u32 %v7170_v28, %v7169_v55  ;;  %v5982_v32 = vpop.permute.xlu1 %5981 }
 0x417   : > { %v6178_v51 = vpack.c.bf16 %v6137_v45, %v6136_v18  ;;  %v5756_v30 = vadd.f32 %v16557_v47, %v5558_v21  ;;  %v13004_v10 = vpop.f32.mrb[18].mxu0  ;;  %v16643_v57 = vld [vmem:[#allocation2 + $0x40] sm:$0xff]  ;;  %v6672_v19 = vrot.slane %v18388_v37, 3  ;;  %v6675_v56 = vrot.slane %v18387_v44, 4 }
 0x418   : > { %6203 = vst.msk [vmem:[#allocation2 + $0x50] sm:$0xff] %vm305_vm4, %v6179_v12  ;;  %v5806_v46 = vmax.f32 %v5758_v24, 0.0  ;;  %v5759_v8 = vadd.f32 %v13004_v10, %v16557_v47  ;;  %v5561_v55 = vpop.f32.mrb[19].mxu0  ;;  %v16651_v28 = vld [vmem:[#allocation2 + $0x38] sm:$0xff]  ;;  %v6288_v18 = vrot.slane %v16643_v57, 4  ;;  %v16655_v48 = vsel %vm813_vm2, %v6658_v62, %v6667_v6 }
 0x419   : > { %6202 = vst.msk [vmem:[#allocation2 + $0x48] sm:$0xff] %vm305_vm4, %v6178_v51  ;;  %v5804_v54 = vmax.f32 %v5756_v30, 0.0  ;;  %v5757_v45 = vadd.f32 %v16557_v47, %v5561_v55  ;;  %v6286_v21 = vrot.slane %v16651_v28, 4  ;;  %v6676_v12 = vor.u32 %v6675_v56, %v6672_v19 }
 0x41a   : > { %v5807_v24 = vmax.f32 %v5759_v8, 0.0  ;;  %v6142_v44 = vmul.f32 %v5977_v7, %v5806_v46  ;;  %v18394_v10 = vshrl.u32 %v16651_v28, 16  ;;  %v18393_v37 = vshll.u32 %v16651_v28, 16 }
 0x41b   : > { %v6140_v29 = vmul.f32 %v5967_v11, %v5804_v54  ;;  %v5805_v2 = vmax.f32 %v5757_v45, 0.0  ;;  %v6287_v62 = vsel %vm6274_vm5, %v6284_v34, %v6286_v21  ;;  %v6289_v58 = vsel %vm6274_vm5, %v6286_v21, %v6288_v18 }
 0x41c   : > { %v6143_v51 = vmul.f32 %v5982_v32, %v5807_v24  ;;  %13044 = vmatmul.mubr.msk.bf16.gmra.mrb[56].mxu0 %vm305_vm4, %v6287_v62  ;;  %v16666_v30 = vsel %vm813_vm2, %v6667_v6, %v6676_v12  ;;  %v6681_v56 = vrot.slane %v18394_v10, 3  ;;  %v6684_v7 = vrot.slane %v18393_v37, 4 }
 0x41d   : > { %v6141_v19 = vmul.f32 %v5972_v26, %v5805_v2  ;;  %v13007_v46 = vpop.f32.mrb[20].mxu0  ;;  %13047 = vmatprep.mubr.msk.bf16.mxu0 %vm305_vm4, %v6289_v58  ;;  %v18392_v34 = vshrl.u32 %v16643_v57, 16  ;;  %v18391_v11 = vshll.u32 %v16643_v57, 16  ;;  %v16678_v8 = vsel %vm7152_vm6, %v16603_v13, %v16640_v53 }
 0x41e   : > { %18537 = vst [vmem:[#allocation12_spill] sm:$0xff] %v16678_v8  ;;  %v6181_v6 = vpack.c.bf16 %v6143_v51, %v6142_v44  ;;  %v5762_v55 = vadd.f32 %v13007_v46, %v16557_v47  ;;  %v5574_v54 = vpop.f32.mrb[21].mxu0  ;;  %v6685_v45 = vor.u32 %v6684_v7, %v6681_v56  ;;  %v18538_v32 = vshrl.u32 %v16607_v25, 16 }
 0x41f   : > { %v6180_v2 = vpack.c.bf16 %v6141_v19, %v6140_v29  ;;  %v5760_v58 = vadd.f32 %v16557_v47, %v5574_v54  ;;  %v13008_v21 = vpop.f32.mrb[22].mxu0  ;;  %v16686_v24 = vld [vmem:[#allocation2 + $0x50] sm:$0xff]  ;;  %v6690_v62 = vrot.slane %v18392_v34, 3  ;;  %v6693_v13 = vrot.slane %v18391_v11, 4 }
 0x420   : > { %v16683_v26 = vrot.slane %v18538_v32, 4  ;;  %6205 = vst.msk [vmem:[#allocation2 + $0x60] sm:$0xff] %vm305_vm4, %v6181_v6  ;;  %v5810_v44 = vmax.f32 %v5762_v55, 0.0  ;;  %v5763_v51 = vadd.f32 %v13008_v21, %v16557_v47  ;;  %v5577_v56 = vpop.f32.mrb[23].mxu0  ;;  %v16694_v7 = vld [vmem:[#allocation2 + $0x48] sm:$0xff]  ;;  %v6292_v29 = vrot.slane %v16686_v24, 4 }
 0x421   : > { %v16698_v19 = vsel %vm813_vm2, %v6676_v12, %v6685_v45  ;;  %6204 = vst.msk [vmem:[#allocation2 + $0x58] sm:$0xff] %vm305_vm4, %v6180_v2  ;;  %v5808_v46 = vmax.f32 %v5760_v58, 0.0  ;;  %v5761_v54 = vadd.f32 %v16557_v47, %v5577_v56  ;;  %v6290_v32 = vrot.slane %v16694_v7, 4 }
 0x422   : > { %v6694_v11 = vor.u32 %v6693_v13, %v6690_v62  ;;  %v6146_v6 = vmul.f32 %v16497_v22, %v5810_v44  ;;  %v5811_v55 = vmax.f32 %v5763_v51, 0.0  ;;  %v18396_v21 = vshrl.u32 %v16694_v7, 16 }
 0x423   : > { %v18395_v34 = vshll.u32 %v16694_v7, 16  ;;  %v6144_v37 = vmul.f32 %v16493_v35, %v5808_v46  ;;  %v5809_v10 = vmax.f32 %v5761_v54, 0.0  ;;  %v6291_v12 = vsel %vm6274_vm5, %v6288_v18, %v6290_v32 }
 0x424   : > { %v6293_v2 = vsel %vm6274_vm5, %v6290_v32, %v6292_v29  ;;  %v6147_v58 = vmul.f32 %v16501_v17, %v5811_v55  ;;  %13048 = vmatmul.mubr.msk.bf16.gmra.mrb[60].mxu0 %vm305_vm4, %v6291_v12  ;;  %v16712_v62 = vsel %vm813_vm2, %v6685_v45, %v6694_v11  ;;  %v6699_v22 = vrot.slane %v18396_v21, 3 }
 0x425   : > { %v6702_v13 = vrot.slane %v18395_v34, 4  ;;  %v6145_v35 = vmul.f32 %v16499_v60, %v5809_v10  ;;  %v13011_v44 = vpop.f32.mrb[24].mxu0  ;;  %13051 = vmatprep.mubr.msk.bf16.mxu0 %vm305_vm4, %v6293_v2  ;;  %v18398_v18 = vshrl.u32 %v16686_v24, 16  ;;  %v18397_v17 = vshll.u32 %v16686_v24, 16 }
 0x426   : > { %v18539_v51 = vshll.u32 %v16607_v25, 16  ;;  %v6183_v45 = vpack.c.bf16 %v6147_v58, %v6146_v6  ;;  %v5766_v46 = vadd.f32 %v13011_v44, %v16557_v47  ;;  %v5590_v54 = vpop.f32.mrb[25].mxu0  ;;  %v18540_v55 = vshrl.u32 %v16601_v39, 16 }
 0x427   : > { %v6703_v32 = vor.u32 %v6702_v13, %v6699_v22  ;;  %v6182_v60 = vpack.c.bf16 %v6145_v35, %v6144_v37  ;;  %v5764_v10 = vadd.f32 %v16557_v47, %v5590_v54  ;;  %v13012_v2 = vpop.f32.mrb[26].mxu0  ;;  %v16730_v34 = vld [vmem:[#allocation2 + $0x60] sm:$0xff]  ;;  %v6708_v21 = vrot.slane %v18398_v18, 3 }
 0x428   : > { %v7174_v56 = vrot.slane %v18539_v51, 5  ;;  %v16727_v12 = vrot.slane %v18540_v55, 4  ;;  %v6711_v25 = vrot.slane %v18397_v17, 4  ;;  %6207 = vst.msk [vmem:[#allocation2 + $0x70] sm:$0xff] %vm305_vm4, %v6183_v45  ;;  %v5814_v6 = vmax.f32 %v5766_v46, 0.0  ;;  %v5593_v22 = vpop.f32.mrb[27].mxu0 }
 0x429   : > { %v5767_v58 = vadd.f32 %v13012_v2, %v16557_v47  ;;  %v16738_v13 = vld [vmem:[#allocation2 + $0x58] sm:$0xff]  ;;  %v6296_v37 = vrot.slane %v16730_v34, 4  ;;  %v16742_v35 = vsel %vm813_vm2, %v6694_v11, %v6703_v32  ;;  %6206 = vst.msk [vmem:[#allocation2 + $0x68] sm:$0xff] %vm305_vm4, %v6182_v60  ;;  %v5812_v44 = vmax.f32 %v5764_v10, 0.0 }
 0x42a   : > { %v5765_v51 = vadd.f32 %v16557_v47, %v5593_v22  ;;  %v6294_v54 = vrot.slane %v16738_v13, 4  ;;  %v6712_v55 = vor.u32 %v6711_v25, %v6708_v21  ;;  %v6150_v45 = vmul.f32 %v16507_v42, %v5814_v6 }
 0x42b   : > { %v5815_v46 = vmax.f32 %v5767_v58, 0.0  ;;  %v18402_v2 = vshrl.u32 %v16738_v13, 16  ;;  %v18399_v17 = vshll.u32 %v16738_v13, 16  ;;  %v6148_v18 = vmul.f32 %v16503_v20, %v5812_v44 }
 0x42c   : > { %v5813_v8 = vmax.f32 %v5765_v51, 0.0  ;;  %v6295_v11 = vsel %vm6274_vm5, %v6292_v29, %v6294_v54  ;;  %v6297_v60 = vsel %vm6274_vm5, %v6294_v54, %v6296_v37  ;;  %v16756_v21 = vsel %vm813_vm2, %v6703_v32, %v6712_v55 }
 0x42d   : > { %v6151_v10 = vmul.f32 %v16509_v61, %v5815_v46  ;;  %13052 = vmatmul.mubr.msk.bf16.gmra.mrb[64].mxu0 %vm305_vm4, %v6295_v11  ;;  %v6717_v42 = vrot.slane %v18402_v2, 3  ;;  %v6720_v25 = vrot.slane %v18399_v17, 4  ;;  %v13015_v6 = vpop.f32.mrb[28].mxu0  ;;  %v18401_v29 = vshrl.u32 %v16730_v34, 16 }
 0x42e   : > { %v6149_v20 = vmul.f32 %v16505_v5, %v5813_v8  ;;  %13055 = vmatprep.mubr.msk.bf16.mxu0 %vm305_vm4, %v6297_v60  ;;  %v18400_v61 = vshll.u32 %v16730_v34, 16  ;;  %v16767_v58 = vor.u32 %v7174_v56, %v16683_v26  ;;  %v5770_v22 = vadd.f32 %v13015_v6, %v16557_v47  ;;  %v5606_v44 = vpop.f32.mrb[29].mxu0 }
 0x42f   : > { %v6185_v32 = vpack.c.bf16 %v6151_v10, %v6150_v45  ;;  %v6721_v51 = vor.u32 %v6720_v25, %v6717_v42  ;;  %v18541_v54 = vshll.u32 %v16601_v39, 16  ;;  %v5768_v5 = vadd.f32 %v16557_v47, %v5606_v44  ;;  %v13016_v8 = vpop.f32.mrb[30].mxu0  ;;  %v16773_v60 = vld [vmem:[#allocation2 + $0x70] sm:$0xff] }
 0x430   : > { %v6184_v11 = vpack.c.bf16 %v6149_v20, %v6148_v18  ;;  %v6726_v17 = vrot.slane %v18401_v29, 3  ;;  %v6729_v26 = vrot.slane %v18400_v61, 4  ;;  %v5818_v56 = vmax.f32 %v5770_v22, 0.0  ;;  %v5609_v10 = vpop.f32.mrb[31].mxu0  ;;  %v16781_v39 = vld [vmem:[#allocation2 + $0x68] sm:$0xff] }
 0x431   : > { %v7178_v46 = vrot.slane %v18541_v54, 5  ;;  %6209 = vst.msk [vmem:[#allocation2 + $0x80] sm:$0xff] %vm305_vm4, %v6185_v32  ;;  %v5771_v45 = vadd.f32 %v13016_v8, %v16557_v47  ;;  %v6300_v18 = vrot.slane %v16773_v60, 4  ;;  %v18407_v42 = vshrl.u32 %v16773_v60, 16 }
 0x432   : > { %6208 = vst.msk [vmem:[#allocation2 + $0x78] sm:$0xff] %vm305_vm4, %v6184_v11  ;;  %v5816_v25 = vmax.f32 %v5768_v5, 0.0  ;;  %v5769_v20 = vadd.f32 %v16557_v47, %v5609_v10  ;;  %v6298_v6 = vrot.slane %v16781_v39, 4  ;;  %v18403_v44 = vshll.u32 %v16773_v60, 16 }
 0x433   : > { %v6154_v32 = vmul.f32 %v16515_v4, %v5818_v56  ;;  %v5819_v22 = vmax.f32 %v5771_v45, 0.0  ;;  %v16791_v54 = vsel %vm813_vm2, %v6712_v55, %v6721_v51  ;;  %v6730_v8 = vor.u32 %v6729_v26, %v6726_v17 }
 0x434   : > { %v6152_v61 = vmul.f32 %v16511_v40, %v5816_v25  ;;  %v5817_v29 = vmax.f32 %v5769_v20, 0.0  ;;  %v6299_v2 = vsel %vm6274_vm5, %v6296_v37, %v6298_v6  ;;  %v6301_v11 = vsel %vm6274_vm5, %v6298_v6, %v6300_v18 }
 0x435   : > { %v6155_v5 = vmul.f32 %v16517_v23, %v5819_v22  ;;  %13056 = vmatmul.mubr.msk.bf16.gmra.mrb[68].mxu0 %vm305_vm4, %v6299_v2  ;;  %13059 = vmatprep.mubr.msk.bf16.mxu1 %vm305_vm4, %v6301_v11  ;;  %v16800_v4 = vsel %vm813_vm2, %v6721_v51, %v6730_v8  ;;  %v18410_v55 = vshrl.u32 %v16781_v39, 16  ;;  %v18409_v17 = vshll.u32 %v16781_v39, 16  ;;  %v13019_v26 = vpop.f32.mrb[32].mxu0 }
 0x436   : > { %v6153_v40 = vmul.f32 %v16513_v31, %v5817_v29  ;;  %v6744_v37 = vrot.slane %v18407_v42, 3  ;;  %v6747_v23 = vrot.slane %v18403_v44, 4  ;;  %v16812_v2 = vsel %vm7152_vm6, %v16640_v53, %v16767_v58  ;;  %v5622_v45 = vpop.f32.mrb[33].mxu0 }
 0x437   : > { %v6187_v51 = vpack.c.bf16 %v6155_v5, %v6154_v32  ;;  %v5774_v56 = vadd.f32 %v13019_v26, %v16557_v47  ;;  %v6735_v10 = vrot.slane %v18410_v55, 3  ;;  %v6738_v31 = vrot.slane %v18409_v17, 4  ;;  %v13020_v20 = vpop.f32.mrb[34].mxu0 }
 0x438   : > { %v6186_v29 = vpack.c.bf16 %v6153_v40, %v6152_v61  ;;  %v5772_v25 = vadd.f32 %v16557_v47, %v5622_v45  ;;  %v16820_v6 = vld [vmem:[#allocation2 + $0x80] sm:$0xff]  ;;  %v6748_v22 = vor.u32 %v6747_v23, %v6744_v37  ;;  %v16823_v53 = vor.u32 %v7178_v46, %v16727_v12  ;;  %v5625_v5 = vpop.f32.mrb[35].mxu0 }
 0x439   : > { %6211 = vst.msk [vmem:[#allocation2 + $0x90] sm:$0xff] %vm305_vm4, %v6187_v51  ;;  %v5822_v32 = vmax.f32 %v5774_v56, 0.0  ;;  %v5775_v11 = vadd.f32 %v13020_v20, %v16557_v47  ;;  %v16827_v26 = vld [vmem:[#allocation2 + $0x78] sm:$0xff]  ;;  %v6304_v44 = vrot.slane %v16820_v6, 4  ;;  %v6739_v61 = vor.u32 %v6738_v31, %v6735_v10  ;;  %v16848_v20 = vld [vmem:[%s18358_s2 + $0x8] sm:$0xf] }
 0x43a   : > { %6210 = vst.msk [vmem:[#allocation2 + $0x88] sm:$0xff] %vm305_vm4, %v6186_v29  ;;  %v5820_v40 = vmax.f32 %v5772_v25, 0.0  ;;  %v5773_v45 = vadd.f32 %v16557_v47, %v5625_v5  ;;  %v6302_v37 = vrot.slane %v16827_v26, 4  ;;  %v18406_v12 = vshrl.u32 %v16827_v26, 16 }
 0x43b   : > { %v5823_v46 = vmax.f32 %v5775_v11, 0.0  ;;  %v6922_v23 = vsel %vm6274_vm5, %v16530_v41, 0  ;;  %v16837_v51 = vsel %vm813_vm2, %v6730_v8, %v6739_v61  ;;  %v16840_v56 = vsel %vm813_vm2, %v6739_v61, %v6748_v22 }
 0x43c   : > { %v6158_v10 = vmul.f32 %v16523_v16, %v5822_v32  ;;  %v5821_v31 = vmax.f32 %v5773_v45, 0.0  ;;  %v6303_v29 = vsel %vm6274_vm5, %v6300_v18, %v6302_v37  ;;  %v6305_v25 = vsel %vm6274_vm5, %v6302_v37, %v6304_v44 }
 0x43d   : > { %v6159_v41 = vmul.f32 %v16525_v15, %v5823_v46  ;;  %13060 = vmatmul.mubr.msk.bf16.vlgmr.msra.gmra.mrb[0].mxu1 %vm305_vm4, %v6303_v29  ;;  %v6753_v8 = vrot.slane %v18406_v12, 3  ;;  %v18404_v11 = vshll.u32 %v16827_v26, 16  ;;  %v18405_v16 = vshrl.u32 %v16820_v6, 16  ;;  %v13023_v5 = vpop.f32.mrb[36].mxu0 }
 0x43e   : > { %v6156_v18 = vmul.f32 %v16519_v27, %v5820_v40  ;;  %v6157_v32 = vmul.f32 %v16521_v63, %v5821_v31  ;;  %13084 = vmatpush3.bf16.msra.mxu1 %v6922_v23  ;;  %13063 = vmatprep.mubr.msk.bf16.mxu1 %vm305_vm4, %v6305_v25  ;;  %v18408_v61 = vshll.u32 %v16820_v6, 16  ;;  %v16863_v15 = vsel %vm7152_vm6, %v16767_v58, %v16823_v53  ;;  %v5638_v46 = vpop.f32.mrb[37].mxu0  ;;  %v16875_v58 = vld [vmem:[#allocation2 + $0x8] sm:$0xf8] }
 0x43f   : > { %18542 = vst [vmem:[#allocation13_spill] sm:$0xff] %v16863_v15  ;;  %v6189_v45 = vpack.c.bf16 %v6159_v41, %v6158_v10  ;;  %v5778_v37 = vadd.f32 %v13023_v5, %v16557_v47  ;;  %14459 = vmatprep.subr.msk.bf16.mxu1 %vm6274_vm5, %v16848_v20  ;;  %v6756_v27 = vrot.slane %v18404_v11, 4  ;;  %v6762_v63 = vrot.slane %v18405_v16, 3  ;;  %v13024_v31 = vpop.f32.mrb[38].mxu0 }
 0x440   : > { %v6188_v40 = vpack.c.bf16 %v6157_v32, %v6156_v18  ;;  %v5776_v23 = vadd.f32 %v16557_v47, %v5638_v46  ;;  %v16873_v29 = vld [vmem:[#allocation2 + $0x90] sm:$0xff]  ;;  %v6765_v10 = vrot.slane %v18408_v61, 4  ;;  %v5779_v41 = vadd.f32 %v13024_v31, %v16557_v47  ;;  %v5641_v5 = vpop.f32.mrb[39].mxu0 }
 0x441   : > { %6213 = vst.msk [vmem:[#allocation2 + $0xa0] sm:$0xff] %vm305_vm4, %v6189_v45  ;;  %v5826_v25 = vmax.f32 %v5778_v37, 0.0  ;;  %v16881_v11 = vld [vmem:[#allocation2 + $0x88] sm:$0xff]  ;;  %v6308_v18 = vrot.slane %v16873_v29, 4  ;;  %v6757_v32 = vor.u32 %v6756_v27, %v6753_v8  ;;  %v5777_v16 = vadd.f32 %v16557_v47, %v5641_v5 }
 0x442   : > { %6212 = vst.msk [vmem:[#allocation2 + $0x98] sm:$0xff] %vm305_vm4, %v6188_v40  ;;  %v5824_v46 = vmax.f32 %v5776_v23, 0.0  ;;  %v6306_v12 = vrot.slane %v16881_v11, 4  ;;  %v6766_v42 = vor.u32 %v6765_v10, %v6762_v63  ;;  %v5827_v61 = vmax.f32 %v5779_v41, 0.0 }
 0x443   : > { %v6626_v45 = vshrl.u32 %v16875_v58, 16  ;;  %v16889_v37 = vsel %vm813_vm2, %v6748_v22, %v6757_v32  ;;  %v18414_v31 = vshrl.u32 %v16881_v11, 16  ;;  %v6162_v17 = vmul.f32 %v16538_v3, %v5826_v25 }
 0x444   : > { %v5825_v55 = vmax.f32 %v5777_v16, 0.0  ;;  %v6307_v8 = vsel %vm6274_vm5, %v6304_v44, %v6306_v12  ;;  %v6309_v27 = vsel %vm6274_vm5, %v6306_v12, %v6308_v18  ;;  %v6163_v40 = vmul.f32 %v16540_v49, %v5827_v61 }
 0x445   : > { %13064 = vmatmul.mubr.msk.bf16.gmra.mrb[4].mxu1 %vm305_vm4, %v6307_v8  ;;  %v16898_v63 = vsel %vm813_vm2, %v6757_v32, %v6766_v42  ;;  %v6771_v22 = vrot.slane %v18414_v31, 3  ;;  %v18412_v23 = vshll.u32 %v16881_v11, 16  ;;  %v6160_v10 = vmul.f32 %v16534_v52, %v5824_v46  ;;  %v13027_v16 = vpop.f32.mrb[40].mxu0 }
 0x446   : > { %v6161_v3 = vmul.f32 %v16536_v33, %v5825_v55  ;;  %13067 = vmatprep.mubr.msk.bf16.mxu1 %vm305_vm4, %v6309_v27  ;;  %v18411_v44 = vshrl.u32 %v16873_v29, 16  ;;  %v18413_v49 = vshll.u32 %v16873_v29, 16  ;;  %v6191_v12 = vpack.c.bf16 %v6163_v40, %v6162_v17  ;;  %v5654_v25 = vpop.f32.mrb[41].mxu0 }
 0x447   : > { %v5782_v61 = vadd.f32 %v13027_v16, %v16557_v47  ;;  %v6629_v41 = vshll.u32 %v16875_v58, 16  ;;  %v6774_v5 = vrot.slane %v18412_v23, 4  ;;  %v5780_v52 = vadd.f32 %v16557_v47, %v5654_v25  ;;  %v13028_v33 = vpop.f32.mrb[42].mxu0 }
 0x448   : > { %v6190_v32 = vpack.c.bf16 %v6161_v3, %v6160_v10  ;;  %v16913_v55 = vld [vmem:[#allocation2 + $0xa0] sm:$0xff]  ;;  %v6780_v46 = vrot.slane %v18411_v44, 3  ;;  %v6783_v17 = vrot.slane %v18413_v49, 4  ;;  %6215 = vst.msk [vmem:[#allocation2 + $0xb0] sm:$0xff] %vm305_vm4, %v6191_v12  ;;  %v5783_v58 = vadd.f32 %v13028_v33, %v16557_v47  ;;  %v5657_v27 = vpop.f32.mrb[43].mxu0 }
 0x449   : > { %v5830_v8 = vmax.f32 %v5782_v61, 0.0  ;;  %v16921_v40 = vld [vmem:[#allocation2 + $0x98] sm:$0xff]  ;;  %v6312_v10 = vrot.slane %v16913_v55, 4  ;;  %v6775_v3 = vor.u32 %v6774_v5, %v6771_v22  ;;  %v5828_v16 = vmax.f32 %v5780_v52, 0.0 }
 0x44a   : > { %6214 = vst.msk [vmem:[#allocation2 + $0xa8] sm:$0xff] %vm305_vm4, %v6190_v32  ;;  %v5781_v25 = vadd.f32 %v16557_v47, %v5657_v27  ;;  %v6310_v44 = vrot.slane %v16921_v40, 4  ;;  %v6784_v23 = vor.u32 %v6783_v17, %v6780_v46  ;;  %v5831_v49 = vmax.f32 %v5783_v58, 0.0 }
 0x44b   : > { %v16927_v31 = vrot.slane %v6626_v45, 3  ;;  %v16930_v12 = vsel %vm813_vm2, %v6766_v42, %v6775_v3  ;;  %v18418_v61 = vshrl.u32 %v16921_v40, 16  ;;  %v6166_v33 = vmul.f32 %v16546_v43, %v5830_v8 }
 0x44c   : > { %v5829_v15 = vmax.f32 %v5781_v25, 0.0  ;;  %v6311_v22 = vsel %vm6274_vm5, %v6308_v18, %v6310_v44  ;;  %v6313_v5 = vsel %vm6274_vm5, %v6310_v44, %v6312_v10  ;;  %v6167_v32 = vmul.f32 %v16548_v36, %v5831_v49 }
 0x44d   : > { %13068 = vmatmul.mubr.msk.bf16.gmra.mrb[8].mxu1 %vm305_vm4, %v6311_v22  ;;  %v16939_v52 = vsel %vm813_vm2, %v6775_v3, %v6784_v23  ;;  %v6789_v42 = vrot.slane %v18418_v61, 3  ;;  %v18417_v45 = vshll.u32 %v16921_v40, 16  ;;  %v6164_v46 = vmul.f32 %v16542_v59, %v5828_v16  ;;  %v13031_v17 = vpop.f32.mrb[44].mxu0 }
 0x44e   : > { %v6165_v43 = vmul.f32 %v16544_v14, %v5829_v15  ;;  %13071 = vmatprep.mubr.msk.bf16.mxu1 %vm305_vm4, %v6313_v5  ;;  %v18415_v18 = vshrl.u32 %v16913_v55, 16  ;;  %v18416_v36 = vshll.u32 %v16913_v55, 16  ;;  %v6193_v44 = vpack.c.bf16 %v6167_v32, %v6166_v33  ;;  %v5670_v8 = vpop.f32.mrb[45].mxu0 }
 0x44f   : > { %v5786_v49 = vadd.f32 %v13031_v17, %v16557_v47  ;;  %v6631_v58 = vrot.slane %v6629_v41, 4  ;;  %v6792_v27 = vrot.slane %v18417_v45, 4  ;;  %v5784_v59 = vadd.f32 %v16557_v47, %v5670_v8  ;;  %v13032_v16 = vpop.f32.mrb[46].mxu0  ;;  %v16953_v14 = vld [vmem:[#allocation2 + $0xb0] sm:$0xff] }
 0x450   : > { %v6192_v3 = vpack.c.bf16 %v6165_v43, %v6164_v46  ;;  %v6798_v15 = vrot.slane %v18415_v18, 3  ;;  %v6801_v25 = vrot.slane %v18416_v36, 4  ;;  %6217 = vst.msk [vmem:[#allocation2 + $0xc0] sm:$0xff] %vm305_vm4, %v6193_v44  ;;  %v5787_v41 = vadd.f32 %v13032_v16, %v16557_v47  ;;  %v5673_v22 = vpop.f32.mrb[47].mxu0 }
 0x451   : > { %v5834_v33 = vmax.f32 %v5786_v49, 0.0  ;;  %v16961_v5 = vld [vmem:[#allocation2 + $0xa8] sm:$0xff]  ;;  %v6316_v32 = vrot.slane %v16953_v14, 4  ;;  %v6793_v46 = vor.u32 %v6792_v27, %v6789_v42  ;;  %v5832_v43 = vmax.f32 %v5784_v59, 0.0  ;;  %v6122_v42 = vpop.permute.xlu1 %6121  ;;  %v6117_v27 = vpop.permute.xlu0 %6116 }
 0x452   : > { %18543 = vst [vmem:[#allocation15_spill] sm:$0xff] %v16961_v5  ;;  %6216 = vst.msk [vmem:[#allocation2 + $0xb8] sm:$0xff] %vm305_vm4, %v6192_v3  ;;  %v5785_v17 = vadd.f32 %v16557_v47, %v5673_v22  ;;  %v6314_v8 = vrot.slane %v16961_v5, 4  ;;  %v16967_v18 = vor.u32 %v6801_v25, %v6798_v15  ;;  %v5835_v36 = vmax.f32 %v5787_v41, 0.0 }
 0x453   : > { %v16970_v44 = vsel %vm813_vm2, %v6784_v23, %v6793_v46  ;;  %v18544_v49 = vshrl.u32 %v16651_v28, 16  ;;  %v18545_v45 = vshll.u32 %v16651_v28, 16  ;;  %v6632_v15 = vor.u32 %v6631_v58, %v16927_v31 }
 0x454   : > { %v5833_v3 = vmax.f32 %v5785_v17, 0.0  ;;  %v6315_v59 = vsel %vm6274_vm5, %v6312_v10, %v6314_v8  ;;  %v6317_v47 = vsel %vm6274_vm5, %v6314_v8, %v6316_v32  ;;  %v6170_v25 = vmul.f32 %v6117_v27, %v5834_v33 }
 0x455   : > { %v7181_v16 = vrot.slane %v18544_v49, 4  ;;  %v7182_v61 = vrot.slane %v18545_v45, 5  ;;  %v6171_v41 = vmul.f32 %v6122_v42, %v5835_v36  ;;  %13072 = vmatmul.mubr.msk.bf16.gmra.mrb[12].mxu1 %vm305_vm4, %v6315_v59  ;;  %v16982_v23 = vsel %vm813_vm2, %v6793_v46, %v16967_v18 }
 0x456   : > { %v6168_v28 = vmul.f32 %v16550_v1, %v5832_v43  ;;  %v6169_v45 = vmul.f32 %v16552_v0, %v5833_v3  ;;  %13075 = vmatprep.mubr.msk.bf16.mxu1 %vm305_vm4, %v6317_v47  ;;  %v18424_v10 = vshrl.u32 %v16953_v14, 16  ;;  %v18423_v22 = vshll.u32 %v16953_v14, 16 }
 0x457   : > { %v6195_v17 = vpack.c.bf16 %v6171_v41, %v6170_v25  ;;  %v7183_v31 = vor.u32 %v7182_v61, %v7181_v16  ;;  %v16989_v36 = vld [vmem:[#allocation2 + $0xc0] sm:$0xff]  ;;  %v6641_v33 = vsel %vm813_vm2, %v6632_v15, %v16583_v9  ;;  %v17003_v61 = vsel %vm6274_vm5, %v16848_v20, 0 }
 0x458   : > { %v6194_v58 = vpack.c.bf16 %v6169_v45, %v6168_v28  ;;  %v6816_v46 = vrot.slane %v18424_v10, 3  ;;  %v6819_v1 = vrot.slane %v18423_v22, 4  ;;  %v6320_v43 = vrot.slane %v16989_v36, 4 }
 0x459   : > { %6219 = vst.msk [vmem:[#allocation2 + $0xd0] sm:$0xff] %vm305_vm4, %v6195_v17  ;;  %v16998_v0 = vld [vmem:[#allocation2 + $0xb8] sm:$0xff]  ;;  %v18420_v8 = vshrl.u32 %v16989_v36, 16  ;;  %v18419_v9 = vshll.u32 %v16989_v36, 16  ;;  %v17010_v16 = vshrl.u32 %v16961_v5, 16  ;;  %v17015_v3 = vshll.u32 %v16961_v5, 16 }
 0x45a   : > { %6218 = vst.msk [vmem:[#allocation2 + $0xc8] sm:$0xff] %vm305_vm4, %v6194_v58  ;;  %v6318_v49 = vrot.slane %v16998_v0, 4  ;;  %v18421_v42 = vshrl.u32 %v16998_v0, 16  ;;  %v18422_v27 = vshll.u32 %v16998_v0, 16  ;;  %v17023_v47 = vsel %vm7152_vm6, %v16823_v53, %v7183_v31 }
 0x45b   : > { %v6834_v20 = vrot.slane %v18420_v8, 3  ;;  %v6837_v59 = vrot.slane %v18419_v9, 4  ;;  %18546 = vst [vmem:[#allocation16_spill] sm:$0xff] %v17023_v47  ;;  %v17027_v41 = vor.u32 %v6819_v1, %v6816_v46  ;;  %v18547_v58 = vshrl.u32 %v16643_v57, 16 }
 0x45c   : > { %v6319_v15 = vsel %vm6274_vm5, %v6316_v32, %v6318_v49  ;;  %v6321_v25 = vsel %vm6274_vm5, %v6318_v49, %v6320_v43  ;;  %v6825_v28 = vrot.slane %v18421_v42, 3  ;;  %v6828_v45 = vrot.slane %v18422_v27, 4 }
 0x45d   : > { %13076 = vmatmul.mubr.msk.bf16.gmra.mrb[16].mxu1 %vm305_vm4, %v6319_v15  ;;  %v6838_v17 = vor.u32 %v6837_v59, %v6834_v20  ;;  %v7185_v9 = vrot.slane %v18547_v58, 4  ;;  %v18548_v53 = vshll.u32 %v16643_v57, 16  ;;  %v18549_v32 = vshrl.u32 %v16694_v7, 16 }
 0x45e   : > { %13079 = vmatprep.mubr.msk.bf16.mxu1 %vm305_vm4, %v6321_v25  ;;  %v18550_v1 = vshll.u32 %v16694_v7, 16  ;;  %v18551_v15 = vshrl.u32 %v16686_v24, 16  ;;  %v18552_v27 = vshll.u32 %v16686_v24, 16  ;;  %v6829_v59 = vor.u32 %v6828_v45, %v6825_v28 }
 0x45f   : > { %v7186_v8 = vrot.slane %v18548_v53, 5  ;;  %v7189_v46 = vrot.slane %v18549_v32, 4  ;;  %v18553_v58 = vshrl.u32 %v16738_v13, 16  ;;  %v18554_v53 = vshll.u32 %v16738_v13, 16 }
 0x460   : > { %v7190_v49 = vrot.slane %v18550_v1, 5  ;;  %v7193_v42 = vrot.slane %v18551_v15, 4  ;;  %v7194_v20 = vrot.slane %v18552_v27, 5  ;;  %v18555_v32 = vshrl.u32 %v16730_v34, 16 }
 0x461   : > { %v7187_v22 = vor.u32 %v7186_v8, %v7185_v9  ;;  %v7197_v57 = vrot.slane %v18553_v58, 4  ;;  %v7198_v25 = vrot.slane %v18554_v53, 5  ;;  %v18556_v1 = vshll.u32 %v16730_v34, 16  ;;  %v6244_v15 = vld [vmem:[#allocation2 + $0xc8] sm:$0xf] }
 0x462   : > { %v7191_v10 = vor.u32 %v7190_v49, %v7189_v46  ;;  %v7195_v5 = vor.u32 %v7194_v20, %v7193_v42  ;;  %v7201_v7 = vrot.slane %v18555_v32, 4  ;;  %v17057_v24 = vsel %vm813_vm2, %v17027_v41, %v6829_v59 }
 0x463   : > { %v7202_v47 = vrot.slane %v18556_v1, 5  ;;  %v17060_v8 = vsel %vm813_vm2, %v6829_v59, %v6838_v17  ;;  %v17063_v9 = vsel %vm7152_vm6, %v7183_v31, %v7187_v22  ;;  %v7199_v13 = vor.u32 %v7198_v25, %v7197_v57 }
 0x464   : > { %v6322_v27 = vrot.slane %v6244_v15, 4  ;;  %v6841_v42 = vshrl.u32 %v6244_v15, 16  ;;  %v6844_v28 = vshll.u32 %v6244_v15, 16  ;;  %v17066_v45 = vsel %vm7152_vm6, %v7187_v22, %v7191_v10 }
 0x465   : > { %v17069_v34 = vsel %vm7152_vm6, %v7191_v10, %v7195_v5  ;;  %v17072_v46 = vsel %vm7152_vm6, %v7195_v5, %v7199_v13  ;;  %v7203_v49 = vor.u32 %v7202_v47, %v7201_v7  ;;  %v18557_v20 = vshrl.u32 %v16781_v39, 16 }
 0x466   : > { %v6323_v31 = vsel %vm6274_vm5, %v6320_v43, %v6322_v27  ;;  %v6843_v58 = vrot.slane %v6841_v42, 3  ;;  %v6846_v57 = vrot.slane %v6844_v28, 4  ;;  %v18558_v53 = vshll.u32 %v16781_v39, 16 }
 0x467   : > { %v7205_v59 = vrot.slane %v18557_v20, 4  ;;  %13080 = vmatmul.mubr.msk.bf16.gmra.mrb[20].mxu1 %vm305_vm4, %v6323_v31  ;;  %v17081_v22 = vsel %vm7152_vm6, %v7199_v13, %v7203_v49  ;;  %v18559_v10 = vshrl.u32 %v16773_v60, 16  ;;  %v18560_v47 = vshll.u32 %v16773_v60, 16 }
 0x468   : > { %v7206_v25 = vrot.slane %v18558_v53, 5  ;;  %v18561_v7 = vshrl.u32 %v16827_v26, 16  ;;  %13085 = vmatprep.mubr.msk.bf16.mxu1 %vm305_vm4, %v6641_v33  ;;  %v6847_v43 = vor.u32 %v6846_v57, %v6843_v58  ;;  %v18562_v39 = vshll.u32 %v16827_v26, 16 }
 0x469   : > { %v7209_v5 = vrot.slane %v18559_v10, 4  ;;  %v7210_v32 = vrot.slane %v18560_v47, 5  ;;  %v18563_v42 = vshrl.u32 %v16820_v6, 16  ;;  %v18564_v20 = vshll.u32 %v16820_v6, 16 }
 0x46a   : > { %v7213_v1 = vrot.slane %v18561_v7, 4  ;;  %v7207_v15 = vor.u32 %v7206_v25, %v7205_v59  ;;  %v7214_v27 = vrot.slane %v18562_v39, 5  ;;  %v18565_v60 = vshrl.u32 %v16881_v11, 16 }
 0x46b   : > { %v7217_v13 = vrot.slane %v18563_v42, 4  ;;  %v7211_v28 = vor.u32 %v7210_v32, %v7209_v5  ;;  %v7218_v31 = vrot.slane %v18564_v20, 5  ;;  %v18566_v10 = vshll.u32 %v16881_v11, 16  ;;  %v17133_v20 = vld [vmem:[%s18358_s2 + $0xc] sm:$0xf] }
 0x46c   : > { %v7221_v53 = vrot.slane %v18565_v60, 4  ;;  %v17101_v33 = vsel %vm813_vm2, %v6838_v17, %v6847_v43  ;;  %v17104_v59 = vsel %vm7152_vm6, %v7203_v49, %v7207_v15  ;;  %v7215_v26 = vor.u32 %v7214_v27, %v7213_v1 }
 0x46d   : > { %v7222_v47 = vrot.slane %v18566_v10, 5  ;;  %v18567_v58 = vshrl.u32 %v16873_v29, 16  ;;  %v17109_v25 = vsel %vm7152_vm6, %v7207_v15, %v7211_v28  ;;  %v7219_v6 = vor.u32 %v7218_v31, %v7217_v13 }
 0x46e   : > { %v18568_v32 = vshll.u32 %v16873_v29, 16  ;;  %v17114_v11 = vsel %vm7152_vm6, %v7211_v28, %v7215_v26  ;;  %v18569_v17 = vshrl.u32 %v16921_v40, 16  ;;  %v18570_v49 = vshll.u32 %v16921_v40, 16 }
 0x46f   : > { %v7225_v57 = vrot.slane %v18567_v58, 4  ;;  %v7223_v5 = vor.u32 %v7222_v47, %v7221_v53  ;;  %v18571_v39 = vshrl.u32 %v16913_v55, 16  ;;  %v17123_v15 = vsel %vm7152_vm6, %v7215_v26, %v7219_v6  ;;  %13086 = vmatmul.mubr.msk.bf16.vlgmr.msra.gmra.mrb[24].mxu1 %vm305_vm4, %v16612_v50 }
 0x470   : > { %v7226_v7 = vrot.slane %v18568_v32, 5  ;;  %v7229_v43 = vrot.slane %v18569_v17, 4  ;;  %v7230_v1 = vrot.slane %v18570_v49, 5  ;;  %v18572_v13 = vshll.u32 %v16913_v55, 16  ;;  %13134 = vmatpush3.bf16.msra.mxu1 %v17003_v61  ;;  %13089 = vmatprep.mubr.msk.bf16.mxu1 %vm305_vm4, %v16624_v38 }
 0x471   : > { %v7233_v27 = vrot.slane %v18571_v39, 4  ;;  %v17126_v42 = vsel %vm7152_vm6, %v7219_v6, %v7223_v5  ;;  %v7237_v31 = vrot.slane %v17010_v16, 4  ;;  %v7238_v60 = vrot.slane %v17015_v3, 5  ;;  %14460 = vmatprep.subr.msk.bf16.mxu1 %vm6274_vm5, %v17133_v20 }
 0x472   : > { %v7227_v29 = vor.u32 %v7226_v7, %v7225_v57  ;;  %v7234_v28 = vrot.slane %v18572_v13, 5  ;;  %v7231_v40 = vor.u32 %v7230_v1, %v7229_v43  ;;  %v18573_v53 = vshrl.u32 %v16953_v14, 16 }
 0x473   : > { %v18574_v26 = vshll.u32 %v16953_v14, 16  ;;  %v18575_v57 = vshrl.u32 %v16998_v0, 16  ;;  %v7239_v7 = vor.u32 %v7238_v60, %v7237_v31  ;;  %v18576_v50 = vshll.u32 %v16998_v0, 16 }
 0x474   : > { %v7241_v10 = vrot.slane %v18573_v53, 4  ;;  %v17142_v47 = vsel %vm7152_vm6, %v7223_v5, %v7227_v29  ;;  %v7235_v55 = vor.u32 %v7234_v28, %v7233_v27  ;;  %v17152_v32 = vsel %vm7152_vm6, %v7227_v29, %v7231_v40  ;;  %v17190_v28 = vld [vmem:[#allocation2 + $0xb0] sm:$0xff] }
 0x475   : > { %v7242_v58 = vrot.slane %v18574_v26, 5  ;;  %v7245_v6 = vrot.slane %v18575_v57, 4  ;;  %v7246_v5 = vrot.slane %v18576_v50, 5  ;;  %v18577_v17 = vshrl.u32 %v16989_v36, 16 }
 0x476   : > { %v17161_v14 = vsel %vm7152_vm6, %v7231_v40, %v7235_v55  ;;  %v18578_v49 = vshll.u32 %v16989_v36, 16  ;;  %v17166_v1 = vsel %vm7152_vm6, %v7235_v55, %v7239_v7  ;;  %v17188_v36 = vld [vmem:[#allocation2 + $0xa0] sm:$0xff] }
 0x477   : > { %v7249_v43 = vrot.slane %v18577_v17, 4  ;;  %v7243_v61 = vor.u32 %v7242_v58, %v7241_v10  ;;  %v7247_v39 = vor.u32 %v7246_v5, %v7245_v6  ;;  %13090 = vmatmul.mubr.msk.bf16.gmra.mrb[28].mxu1 %vm305_vm4, %v16655_v48  ;;  %v17197_v48 = vshrl.u32 %v17188_v36, 16  ;;  %v17201_v40 = vld [vmem:[#allocation2 + $0x20] sm:$0xff] }
 0x478   : > { %v7250_v38 = vrot.slane %v18578_v49, 5  ;;  %13093 = vmatprep.mubr.msk.bf16.mxu1 %vm305_vm4, %v16666_v30  ;;  %v17199_v30 = vld [vmem:[#allocation2 + $0x18] sm:$0xff]  ;;  %v7654_v10 = vshll.u32 %v17201_v40, 16  ;;  %v7651_v6 = vshrl.u32 %v17201_v40, 16 }
 0x479   : > { %v17169_v0 = vsel %vm7152_vm6, %v7239_v7, %v7243_v61  ;;  %v17174_v29 = vsel %vm7152_vm6, %v7243_v61, %v7247_v39  ;;  %18579 = vst [vmem:[#allocation14_spill] sm:$0xff] %v17197_v48  ;;  %v18429_v31 = vrot.slane %v17197_v48, 7  ;;  %v7646_v53 = vshll.u32 %v17199_v30, 16 }
 0x47a   : > { %v17171_v27 = vor.u32 %v7250_v38, %v7249_v43  ;;  %v7643_v57 = vshrl.u32 %v17199_v30, 16  ;;  %v8545_v50 = vrot.slane %v7654_v10, 1  ;;  %v6810_v43 = vrot.slane %v17015_v3, 4 }
 0x47b   : > { %v8540_v7 = vrot.slane %v7646_v53, 1 }
 0x47c   : > { %v17178_v13 = vsel %vm7152_vm6, %v7247_v39, %v17171_v27 }
 0x47d   : > { %v8541_v5 = vor.u32 %v8540_v7, %v7643_v57 }
 0x47f   : > { %13094 = vmatmul.mubr.msk.bf16.gmra.mrb[32].mxu1 %vm305_vm4, %v16698_v19  ;;  %v7789_v19 = vrot.slane %v17010_v16, 7  ;;  %v17243_v17 = vsel %vm1512_vm3, %v8541_v5, %v8545_v50 }
 0x480   : > { %13097 = vmatprep.mubr.msk.bf16.mxu1 %vm305_vm4, %v16712_v62  ;;  %v17205_v62 = vshrl.u32 %v17190_v28, 16 }
 0x481   : > { %v7792_v60 = vor.u32 %v7789_v19, %v17015_v3  ;;  %v14795_v3 = vld [vmem:[#allocation2 + $0x8] sm:$0xf0] }
 0x482   : > { %18580 = vst [vmem:[#allocation7_spill] sm:$0xff] %v17205_v62  ;;  %v7154_v61 = vshrl.u32 %v14795_v3, 16  ;;  %v7157_v49 = vshll.u32 %v14795_v3, 16 }
 0x483   : > { %v17218_v55 = vsel %vm7637_vm7, %v18429_v31, %v7792_v60 }
 0x484   : > { %v7156_v38 = vrot.slane %v7154_v61, 4  ;;  %v7159_v39 = vrot.slane %v7157_v49, 5 }
 0x487   : > { %13098 = vmatmul.mubr.msk.bf16.gmra.mrb[36].mxu1 %vm305_vm4, %v16742_v35  ;;  %v18428_v35 = vrot.slane %v17205_v62, 7 }
 0x488   : > { %13101 = vmatprep.mubr.msk.bf16.mxu1 %vm305_vm4, %v16756_v21  ;;  %v17211_v21 = vshll.u32 %v17190_v28, 16 }
 0x48a   : > { %18581 = vst [vmem:[#allocation8_spill] sm:$0xff] %v17211_v21  ;;  %v7800_v26 = vor.u32 %v17211_v21, %v18428_v35 }
 0x48c   : > { %v17226_v58 = vsel %vm7637_vm7, %v7789_v19, %v7800_v26  ;;  %v18585_v19 = vld [vmem:[#allocation9_spill] sm:$0xff]  ;;  %v17291_v26 = vld [vmem:[%s18358_s2 + $0x10] sm:$0xf] }
 0x48f   : > { %13102 = vmatmul.mubr.msk.bf16.gmra.mrb[40].mxu1 %vm305_vm4, %v16791_v54  ;;  %v17240_v54 = vor.u32 %v8545_v50, %v7651_v6 }
 0x490   : > { %13105 = vmatprep.mubr.msk.bf16.mxu1 %vm305_vm4, %v16800_v4  ;;  %v6807_v4 = vrot.slane %v17010_v16, 3 }
 0x497   : > { %13106 = vmatmul.mubr.msk.bf16.gmra.mrb[44].mxu1 %vm305_vm4, %v16837_v51  ;;  %v8526_v51 = vld [vmem:[#allocation2 + $0xa8] sm:$0xff] }
 0x498   : > { %13109 = vmatprep.mubr.msk.bf16.mxu1 %vm305_vm4, %v16840_v56  ;;  %v17263_v56 = vshrl.u32 %v8526_v51, 16 }
 0x49a   : > { %18582 = vst [vmem:[#allocation6_spill] sm:$0xff] %v17263_v56  ;;  %v10178_v7 = vrot.slane %v17263_v56, 4 }
 0x49f   : > { %13110 = vmatmul.mubr.msk.bf16.gmra.mrb[0].mxu1 %vm305_vm4, %v16889_v37  ;;  %v6811_v37 = vor.u32 %v6810_v43, %v6807_v4 }
 0x4a0   : > { %13113 = vmatprep.mubr.msk.bf16.mxu1 %vm305_vm4, %v16898_v63  ;;  %v17265_v63 = vshll.u32 %v8526_v51, 16  ;;  %v18591_v51 = vld [vmem:[#allocation16_spill] sm:$0xff] }
 0x4a2   : > { %18583 = vst [vmem:[#allocation11_spill] sm:$0xff] %v17265_v63  ;;  %v9264_v16 = vrot.slane %v17265_v63, 4  ;;  %v10179_v50 = vrot.slane %v17265_v63, 5 }
 0x4a4   : > { %v17309_v43 = vor.u32 %v10179_v50, %v10178_v7  ;;  %v7610_v50 = vld [vmem:[#allocation2 + $0x10] sm:$0x80] }
 0x4a7   : > { %13114 = vmatmul.mubr.msk.bf16.gmra.mrb[4].mxu1 %vm305_vm4, %v16930_v12  ;;  %v9261_v12 = vrot.slane %v17263_v56, 3 }
 0x4a8   : > { %13117 = vmatprep.mubr.msk.bf16.mxu1 %vm305_vm4, %v16939_v52  ;;  %v6812_v52 = vsel %vm813_vm2, %v16967_v18, %v6811_v37  ;;  %v7160_v18 = vor.u32 %v7159_v39, %v7156_v38 }
 0x4aa   : > { %v7164_v60 = vsel %vm7152_vm6, %v7160_v18, %v18585_v19 }
 0x4af   : > { %13118 = vmatmul.mubr.msk.bf16.gmra.mrb[8].mxu1 %vm305_vm4, %v16970_v44  ;;  %v6821_v44 = vsel %vm813_vm2, %v6811_v37, %v17027_v41  ;;  %v7907_v41 = vsel %vm6274_vm5, %v17133_v20, 0  ;;  %v17303_v20 = vld [vmem:[#allocation2 + $0xd8] sm:$0xff] }
 0x4b0   : > { %13121 = vmatprep.mubr.msk.bf16.mxu1 %vm305_vm4, %v16982_v23  ;;  %v17275_v23 = vor.u32 %v9264_v16, %v9261_v12  ;;  %18589 = vst [vmem:[#allocation9_spill] sm:$0xff] %v17303_v20  ;;  %v18427_v5 = vshrl.u32 %v17303_v20, 16  ;;  %v18426_v4 = vshll.u32 %v17303_v20, 16  ;;  %v17574_v20 = vld [vmem:[#allocation2 + $0x98] sm:$0xff] }
 0x4b1   : > { %18630 = vst [vmem:[#allocation53_spill] sm:$0xff] %v17574_v20 }
 0x4b2   : > { %18584 = vst [vmem:[#allocation17_spill] sm:$0xff] %v17275_v23  ;;  %v10203_v37 = vrot.slane %v18426_v4, 5 }
 0x4b7   : > { %13122 = vmatmul.mubr.msk.bf16.gmra.mrb[12].mxu1 %vm305_vm4, %v6812_v52 }
 0x4b8   : > { %13125 = vmatprep.mubr.msk.bf16.mxu1 %vm305_vm4, %v6821_v44 }
 0x4bf   : > { %13126 = vmatmul.mubr.msk.bf16.gmra.mrb[16].mxu1 %vm305_vm4, %v17057_v24  ;;  %v18586_v24 = vld [vmem:[#allocation10_spill] sm:$0xff] }
 0x4c0   : > { %13129 = vmatprep.mubr.msk.bf16.mxu1 %vm305_vm4, %v17060_v8  ;;  %v18587_v8 = vld [vmem:[#allocation12_spill] sm:$0xff]  ;;  %18590 = vst [vmem:[#allocation10_spill] sm:$0xff] %v17309_v43 }
 0x4c7   : > { %13130 = vmatmul.mubr.msk.bf16.gmra.mrb[20].mxu1 %vm305_vm4, %v17101_v33  ;;  %v18588_v33 = vld [vmem:[#allocation13_spill] sm:$0xff] }
 0x4c8   : > { %13135 = vmatprep.mubr.msk.bf16.mxu1 %vm305_vm4, %v7164_v60 }
 0x4cf   : > { %13136 = vmatmul.mubr.msk.bf16.vlgmr.msra.gmra.mrb[24].mxu1 %vm305_vm4, %v18586_v24 }
 0x4d0   : > { %13184 = vmatpush3.bf16.msra.mxu1 %v7907_v41  ;;  %13139 = vmatprep.mubr.msk.bf16.mxu1 %vm305_vm4, %v18587_v8 }
 0x4d1   : > { %14461 = vmatprep.subr.msk.bf16.mxu1 %vm6274_vm5, %v17291_v26 }
 0x4d7   : > { %13140 = vmatmul.mubr.msk.bf16.gmra.mrb[28].mxu1 %vm305_vm4, %v16812_v2  ;;  %v10202_v2 = vrot.slane %v18427_v5, 4 }
 0x4d8   : > { %13143 = vmatprep.mubr.msk.bf16.mxu1 %vm305_vm4, %v18588_v33 }
 0x4d9   : > { %v17321_v52 = vor.u32 %v10203_v37, %v10202_v2  ;;  %v7639_v37 = vshrl.u32 %v7610_v50, 16 }
 0x4db   : > { %18593 = vst [vmem:[#allocation13_spill] sm:$0xff] %v17321_v52  ;;  %v7641_v4 = vrot.slane %v7639_v37, 7  ;;  %v17568_v52 = vld [vmem:[#allocation2 + $0x90] sm:$0xff] }
 0x4dc   : > { %18629 = vst [vmem:[#allocation52_spill] sm:$0xff] %v17568_v52  ;;  %v17594_v63 = vshll.u32 %v17568_v52, 16 }
 0x4df   : > { %13144 = vmatmul.mubr.msk.bf16.gmra.mrb[32].mxu1 %vm305_vm4, %v18591_v51  ;;  %v17319_v12 = vpop.f32.mrb[48].mxu0 }
 0x4e0   : > { %13147 = vmatprep.mubr.msk.bf16.mxu1 %vm305_vm4, %v17063_v9  ;;  %18592 = vst [vmem:[#allocation12_spill] sm:$0xff] %v17319_v12  ;;  %v17323_v16 = vpop.f32.mrb[49].mxu0 }
 0x4e1   : > { %18594 = vst [vmem:[#allocation16_spill] sm:$0xff] %v17323_v16  ;;  %v17325_v44 = vpop.f32.mrb[50].mxu0  ;;  %v17550_v16 = vld [vmem:[#allocation2 + $0x88] sm:$0xff] }
 0x4e2   : > { %18595 = vst [vmem:[#allocation18_spill] sm:$0xff] %v17325_v44  ;;  %v17327_v3 = vpop.f32.mrb[51].mxu0  ;;  %18626 = vst [vmem:[#allocation49_spill] sm:$0xff] %v17550_v16  ;;  %v17577_v23 = vshll.u32 %v17550_v16, 16 }
 0x4e3   : > { %18596 = vst [vmem:[#allocation19_spill] sm:$0xff] %v17327_v3 }
 0x4e7   : > { %13148 = vmatmul.mubr.msk.bf16.gmra.mrb[36].mxu1 %vm305_vm4, %v17066_v45  ;;  %v17333_v9 = vpop.f32.mrb[52].mxu0 }
 0x4e8   : > { %13151 = vmatprep.mubr.msk.bf16.mxu1 %vm305_vm4, %v17069_v34  ;;  %18597 = vst [vmem:[#allocation20_spill] sm:$0xff] %v17333_v9  ;;  %v17335_v61 = vpop.f32.mrb[53].mxu0 }
 0x4e9   : > { %18598 = vst [vmem:[#allocation21_spill] sm:$0xff] %v17335_v61  ;;  %v17337_v49 = vpop.f32.mrb[54].mxu0  ;;  %v17544_v61 = vld [vmem:[#allocation2 + $0x80] sm:$0xff] }
 0x4ea   : > { %18599 = vst [vmem:[#allocation22_spill] sm:$0xff] %v17337_v49  ;;  %v17339_v38 = vpop.f32.mrb[55].mxu0  ;;  %18625 = vst [vmem:[#allocation48_spill] sm:$0xff] %v17544_v61  ;;  %v17572_v43 = vshll.u32 %v17544_v61, 16 }
 0x4eb   : > { %18600 = vst [vmem:[#allocation23_spill] sm:$0xff] %v17339_v38 }
 0x4ef   : > { %13152 = vmatmul.mubr.msk.bf16.gmra.mrb[40].mxu1 %vm305_vm4, %v17072_v46  ;;  %v17345_v39 = vpop.f32.mrb[56].mxu0 }
 0x4f0   : > { %13155 = vmatprep.mubr.msk.bf16.mxu1 %vm305_vm4, %v17081_v22  ;;  %18601 = vst [vmem:[#allocation24_spill] sm:$0xff] %v17345_v39  ;;  %v17347_v45 = vpop.f32.mrb[57].mxu0 }
 0x4f1   : > { %18602 = vst [vmem:[#allocation25_spill] sm:$0xff] %v17347_v45  ;;  %v17349_v18 = vpop.f32.mrb[58].mxu0  ;;  %v17526_v45 = vld [vmem:[#allocation2 + $0x78] sm:$0xff] }
 0x4f2   : > { %18603 = vst [vmem:[#allocation26_spill] sm:$0xff] %v17349_v18  ;;  %v17351_v34 = vpop.f32.mrb[59].mxu0  ;;  %18624 = vst [vmem:[#allocation47_spill] sm:$0xff] %v17526_v45  ;;  %v17553_v12 = vshll.u32 %v17526_v45, 16 }
 0x4f3   : > { %18604 = vst [vmem:[#allocation27_spill] sm:$0xff] %v17351_v34  ;;  %v17520_v34 = vld [vmem:[#allocation2 + $0x70] sm:$0xff] }
 0x4f4   : > { %18623 = vst [vmem:[#allocation46_spill] sm:$0xff] %v17520_v34  ;;  %v17548_v9 = vshll.u32 %v17520_v34, 16 }
 0x4f7   : > { %13156 = vmatmul.mubr.msk.bf16.gmra.mrb[44].mxu1 %vm305_vm4, %v17104_v59  ;;  %v17357_v19 = vpop.f32.mrb[60].mxu0 }
 0x4f8   : > { %13159 = vmatprep.mubr.msk.bf16.mxu1 %vm305_vm4, %v17109_v25  ;;  %18605 = vst [vmem:[#allocation28_spill] sm:$0xff] %v17357_v19  ;;  %v17359_v46 = vpop.f32.mrb[61].mxu0 }
 0x4f9   : > { %18606 = vst [vmem:[#allocation29_spill] sm:$0xff] %v17359_v46  ;;  %v17361_v60 = vpop.f32.mrb[62].mxu0 }
 0x4fa   : > { %18607 = vst [vmem:[#allocation30_spill] sm:$0xff] %v17361_v60  ;;  %v17363_v22 = vpop.f32.mrb[63].mxu0 }
 0x4fb   : > { %18608 = vst [vmem:[#allocation31_spill] sm:$0xff] %v17363_v22  ;;  %v17502_v22 = vld [vmem:[#allocation2 + $0x68] sm:$0xff] }
 0x4fc   : > { %18622 = vst [vmem:[#allocation45_spill] sm:$0xff] %v17502_v22  ;;  %v17529_v39 = vshll.u32 %v17502_v22, 16 }
 0x4ff   : > { %13160 = vmatmul.mubr.msk.bf16.gmra.mrb[0].mxu1 %vm305_vm4, %v17114_v11 }
 0x500   : > { %13163 = vmatprep.mubr.msk.bf16.mxu1 %vm305_vm4, %v17123_v15  ;;  %v17369_v41 = vpop.f32.mrb[64].mxu0 }
 0x501   : > { %18609 = vst [vmem:[#allocation32_spill] sm:$0xff] %v17369_v41  ;;  %v17371_v59 = vpop.f32.mrb[65].mxu0 }
 0x502   : > { %18610 = vst [vmem:[#allocation33_spill] sm:$0xff] %v17371_v59  ;;  %v17373_v24 = vpop.f32.mrb[66].mxu0  ;;  %v17496_v59 = vld [vmem:[#allocation2 + $0x60] sm:$0xff] }
 0x503   : > { %18611 = vst [vmem:[#allocation34_spill] sm:$0xff] %v17373_v24  ;;  %v17375_v25 = vpop.f32.mrb[67].mxu0  ;;  %18621 = vst [vmem:[#allocation44_spill] sm:$0xff] %v17496_v59  ;;  %v17524_v18 = vshll.u32 %v17496_v59, 16 }
 0x504   : > { %18612 = vst [vmem:[#allocation35_spill] sm:$0xff] %v17375_v25 }
 0x507   : > { %13164 = vmatmul.mubr.msk.bf16.gmra.mrb[4].mxu1 %vm305_vm4, %v17126_v42  ;;  %v7149_v42 = vld [vmem:[#allocation2 + $0xc8] sm:$0x1f] }
 0x508   : > { %13167 = vmatprep.mubr.msk.bf16.mxu1 %vm305_vm4, %v17142_v47  ;;  %v17381_v8 = vpop.f32.mrb[68].mxu0  ;;  %v7254_v47 = vshrl.u32 %v7149_v42, 16  ;;  %v7257_v7 = vshll.u32 %v7149_v42, 16 }
 0x509   : > { %18613 = vst [vmem:[#allocation36_spill] sm:$0xff] %v17381_v8  ;;  %v17383_v11 = vpop.f32.mrb[69].mxu0 }
 0x50a   : > { %18614 = vst [vmem:[#allocation37_spill] sm:$0xff] %v17383_v11  ;;  %v17385_v33 = vpop.f32.mrb[70].mxu0  ;;  %v7256_v51 = vrot.slane %v7254_v47, 4  ;;  %v7259_v2 = vrot.slane %v7257_v7, 5  ;;  %v7653_v47 = vrot.slane %v7651_v6, 7  ;;  %v17417_v7 = vld [vmem:[#allocation2 + $0x30] sm:$0xff] }
 0x50b   : > { %18615 = vst [vmem:[#allocation38_spill] sm:$0xff] %v17385_v33  ;;  %v17387_v15 = vpop.f32.mrb[71].mxu0  ;;  %v17428_v6 = vshrl.u32 %v17417_v7, 16  ;;  %v17478_v11 = vld [vmem:[#allocation2 + $0x58] sm:$0xff] }
 0x50c   : > { %18616 = vst [vmem:[#allocation39_spill] sm:$0xff] %v17387_v15  ;;  %v17472_v15 = vld [vmem:[#allocation2 + $0x50] sm:$0xff]  ;;  %18620 = vst [vmem:[#allocation43_spill] sm:$0xff] %v17478_v11  ;;  %v17505_v60 = vshll.u32 %v17478_v11, 16 }
 0x50d   : > { %18619 = vst [vmem:[#allocation42_spill] sm:$0xff] %v17472_v15  ;;  %v17500_v41 = vshll.u32 %v17472_v15, 16 }
 0x50f   : > { %13168 = vmatmul.mubr.msk.bf16.gmra.mrb[8].mxu1 %vm305_vm4, %v17152_v32  ;;  %v7645_v32 = vrot.slane %v7643_v57, 7 }
 0x510   : > { %13171 = vmatprep.mubr.msk.bf16.mxu1 %vm305_vm4, %v17161_v14  ;;  %v17403_v14 = vld [vmem:[#allocation2 + $0x28] sm:$0xff] }
 0x511   : > { %v17408_v42 = vshrl.u32 %v17403_v14, 16  ;;  %v17423_v50 = vshll.u32 %v17403_v14, 16 }
 0x513   : > { %v7661_v57 = vrot.slane %v17408_v42, 7 }
 0x517   : > { %13172 = vmatmul.mubr.msk.bf16.gmra.mrb[12].mxu1 %vm305_vm4, %v17166_v1  ;;  %v7260_v1 = vor.u32 %v7259_v2, %v7256_v51  ;;  %v7664_v51 = vor.u32 %v17423_v50, %v7661_v57  ;;  %v8233_v2 = vsel %vm6274_vm5, %v17291_v26, 0  ;;  %v17450_v26 = vshll.u32 %v17417_v7, 16 }
 0x518   : > { %13175 = vmatprep.mubr.msk.bf16.mxu1 %vm305_vm4, %v17169_v0  ;;  %v7648_v0 = vor.u32 %v7646_v53, %v7645_v32  ;;  %v17420_v53 = vld [vmem:[#allocation2 + $0x38] sm:$0xff] }
 0x51f   : > { %13176 = vmatmul.mubr.msk.bf16.gmra.mrb[16].mxu1 %vm305_vm4, %v17174_v29  ;;  %v7261_v29 = vsel %vm7152_vm6, %v17171_v27, %v7260_v1  ;;  %v7656_v27 = vor.u32 %v7654_v10, %v7653_v47  ;;  %v7669_v1 = vrot.slane %v17428_v6, 7  ;;  %v7665_v10 = vsel %vm7637_vm7, %v7653_v47, %v7664_v51 }
 0x520   : > { %13179 = vmatprep.mubr.msk.bf16.mxu1 %vm305_vm4, %v17178_v13  ;;  %v7649_v13 = vsel %vm7637_vm7, %v7641_v4, %v7648_v0  ;;  %v17432_v4 = vshrl.u32 %v17420_v53, 16  ;;  %v17441_v0 = vld [vmem:[%s18358_s2 + $0x14] sm:$0xf] }
 0x521   : > { %v7657_v37 = vsel %vm7637_vm7, %v7645_v32, %v7656_v27  ;;  %v17452_v32 = vld [vmem:[#allocation2 + $0x48] sm:$0xff]  ;;  %v17455_v27 = vshll.u32 %v17420_v53, 16  ;;  %v7672_v47 = vor.u32 %v17450_v26, %v7669_v1 }
 0x522   : > { %18618 = vst [vmem:[#allocation41_spill] sm:$0xff] %v17452_v32  ;;  %v17481_v8 = vshll.u32 %v17452_v32, 16 }
 0x527   : > { %13180 = vmatmul.mubr.msk.bf16.gmra.mrb[20].mxu1 %vm305_vm4, %v7261_v29  ;;  %v7677_v29 = vrot.slane %v17432_v4, 7 }
 0x528   : > { %13185 = vmatprep.mubr.msk.bf16.mxu1 %vm305_vm4, %v7649_v13  ;;  %v17446_v13 = vld [vmem:[#allocation2 + $0x40] sm:$0xff] }
 0x529   : > { %18617 = vst [vmem:[#allocation40_spill] sm:$0xff] %v17446_v13  ;;  %v17461_v51 = vshrl.u32 %v17446_v13, 16  ;;  %v17476_v33 = vshll.u32 %v17446_v13, 16 }
 0x52b   : > { %v7685_v5 = vrot.slane %v17461_v51, 7 }
 0x52f   : > { %13186 = vmatmul.mubr.msk.bf16.vlgmr.msra.gmra.mrb[24].mxu1 %vm305_vm4, %v7657_v37  ;;  %v17465_v37 = vshrl.u32 %v17452_v32, 16 }
 0x530   : > { %13234 = vmatpush3.bf16.msra.mxu1 %v8233_v2  ;;  %13189 = vmatprep.mubr.msk.bf16.mxu1 %vm305_vm4, %v7665_v10  ;;  %v7680_v2 = vor.u32 %v17455_v27, %v7677_v29  ;;  %v7673_v10 = vsel %vm7637_vm7, %v7661_v57, %v7672_v47  ;;  %v7688_v57 = vor.u32 %v17476_v33, %v7685_v5  ;;  %v17485_v47 = vshrl.u32 %v17472_v15, 16 }
 0x531   : > { %14462 = vmatprep.subr.msk.bf16.mxu1 %vm6274_vm5, %v17441_v0  ;;  %v7693_v31 = vrot.slane %v17465_v37, 7 }
 0x532   : > { %v7681_v35 = vsel %vm7637_vm7, %v7669_v1, %v7680_v2  ;;  %v17489_v2 = vshrl.u32 %v17478_v11, 16 }
 0x533   : > { %v7696_v1 = vor.u32 %v17481_v8, %v7693_v31 }
 0x534   : > { %v7709_v24 = vrot.slane %v17489_v2, 7 }
 0x535   : > { %v7697_v25 = vsel %vm7637_vm7, %v7685_v5, %v7696_v1  ;;  %v17513_v1 = vshrl.u32 %v17502_v22, 16 }
 0x536   : > { %v7712_v5 = vor.u32 %v17505_v60, %v7709_v24 }
 0x537   : > { %13190 = vmatmul.mubr.msk.bf16.gmra.mrb[28].mxu1 %vm305_vm4, %v7673_v10  ;;  %v7701_v10 = vrot.slane %v17485_v47, 7  ;;  %v7725_v19 = vrot.slane %v17513_v1, 7 }
 0x538   : > { %13193 = vmatprep.mubr.msk.bf16.mxu1 %vm305_vm4, %v7681_v35  ;;  %v7689_v35 = vsel %vm7637_vm7, %v7677_v29, %v7688_v57  ;;  %v17509_v57 = vshrl.u32 %v17496_v59, 16 }
 0x539   : > { %v7704_v29 = vor.u32 %v17500_v41, %v7701_v10  ;;  %v7713_v46 = vsel %vm7637_vm7, %v7701_v10, %v7712_v5  ;;  %v7728_v10 = vor.u32 %v17529_v39, %v7725_v19  ;;  %v17537_v5 = vshrl.u32 %v17526_v45, 16 }
 0x53b   : > { %v7741_v49 = vrot.slane %v17537_v5, 7 }
 0x53f   : > { %13194 = vmatmul.mubr.msk.bf16.gmra.mrb[32].mxu1 %vm305_vm4, %v7689_v35  ;;  %v7717_v35 = vrot.slane %v17509_v57, 7 }
 0x540   : > { %13197 = vmatprep.mubr.msk.bf16.mxu1 %vm305_vm4, %v7697_v25  ;;  %v7705_v25 = vsel %vm7637_vm7, %v7693_v31, %v7704_v29  ;;  %v17533_v29 = vshrl.u32 %v17520_v34, 16 }
 0x541   : > { %v7720_v31 = vor.u32 %v17524_v18, %v7717_v35  ;;  %v7729_v38 = vsel %vm7637_vm7, %v7717_v35, %v7728_v10  ;;  %v7744_v35 = vor.u32 %v17553_v12, %v7741_v49  ;;  %v17561_v10 = vshrl.u32 %v17550_v16, 16 }
 0x543   : > { %18628 = vst [vmem:[#allocation51_spill] sm:$0xff] %v17561_v10  ;;  %v7757_v44 = vrot.slane %v17561_v10, 7 }
 0x547   : > { %13198 = vmatmul.mubr.msk.bf16.gmra.mrb[36].mxu1 %vm305_vm4, %v7705_v25  ;;  %v7733_v25 = vrot.slane %v17533_v29, 7 }
 0x548   : > { %13201 = vmatprep.mubr.msk.bf16.mxu1 %vm305_vm4, %v7713_v46  ;;  %v7721_v46 = vsel %vm7637_vm7, %v7709_v24, %v7720_v31  ;;  %v17557_v31 = vshrl.u32 %v17544_v61, 16 }
 0x549   : > { %v7736_v24 = vor.u32 %v17548_v9, %v7733_v25  ;;  %v7745_v3 = vsel %vm7637_vm7, %v7733_v25, %v7744_v35  ;;  %v7760_v25 = vor.u32 %v17577_v23, %v7757_v44  ;;  %v17585_v35 = vshrl.u32 %v17574_v20, 16 }
 0x54a   : > { %18627 = vst [vmem:[#allocation50_spill] sm:$0xff] %v17557_v31 }
 0x54b   : > { %18632 = vst [vmem:[#allocation55_spill] sm:$0xff] %v17585_v35  ;;  %v7773_v56 = vrot.slane %v17585_v35, 7 }
 0x54f   : > { %13202 = vmatmul.mubr.msk.bf16.gmra.mrb[40].mxu1 %vm305_vm4, %v7721_v46  ;;  %v7749_v46 = vrot.slane %v17557_v31, 7  ;;  %v17597_v31 = vshll.u32 %v17574_v20, 16 }
 0x550   : > { %13205 = vmatprep.mubr.msk.bf16.mxu1 %vm305_vm4, %v7729_v38  ;;  %v7737_v38 = vsel %vm7637_vm7, %v7725_v19, %v7736_v24  ;;  %v17581_v24 = vshrl.u32 %v17568_v52, 16 }
 0x551   : > { %v7752_v19 = vor.u32 %v17572_v43, %v7749_v46  ;;  %v7761_v21 = vsel %vm7637_vm7, %v7749_v46, %v7760_v25  ;;  %18633 = vst [vmem:[#allocation56_spill] sm:$0xff] %v17597_v31  ;;  %v17608_v25 = vld [vmem:[#allocation2 + $0xb8] sm:$0xff] }
 0x552   : > { %18631 = vst [vmem:[#allocation54_spill] sm:$0xff] %v17581_v24  ;;  %18635 = vst [vmem:[#allocation58_spill] sm:$0xff] %v17608_v25  ;;  %v17614_v35 = vshrl.u32 %v17608_v25, 16 }
 0x554   : > { %18637 = vst [vmem:[#allocation59_spill] sm:$0xff] %v17614_v35 }
 0x557   : > { %13206 = vmatmul.mubr.msk.bf16.gmra.mrb[44].mxu1 %vm305_vm4, %v7737_v38  ;;  %v7765_v38 = vrot.slane %v17581_v24, 7 }
 0x558   : > { %13209 = vmatprep.mubr.msk.bf16.mxu1 %vm305_vm4, %v7745_v3  ;;  %v7753_v3 = vsel %vm7637_vm7, %v7741_v49, %v7752_v19  ;;  %v7776_v49 = vor.u32 %v17597_v31, %v7773_v56 }
 0x559   : > { %v7768_v10 = vor.u32 %v17594_v63, %v7765_v38 }
 0x55a   : > { %v7777_v46 = vsel %vm7637_vm7, %v7765_v38, %v7776_v49  ;;  %v17619_v38 = vld [vmem:[#allocation2 + $0xc0] sm:$0xff]  ;;  %v17623_v49 = vld [vmem:[#allocation2 + $0xc8] sm:$0xff] }
 0x55b   : > { %v7769_v19 = vsel %vm7637_vm7, %v7757_v44, %v7768_v10  ;;  %v7805_v10 = vrot.slane %v17614_v35, 7  ;;  %18638 = vst [vmem:[#allocation60_spill] sm:$0xff] %v17619_v38  ;;  %18639 = vst [vmem:[#allocation61_spill] sm:$0xff] %v17623_v49 }
 0x55f   : > { %13210 = vmatmul.mubr.msk.bf16.gmra.mrb[0].mxu1 %vm305_vm4, %v7753_v3  ;;  %v18636_v3 = vrot.slane %v17197_v48, 7  ;;  %v17642_v48 = vld [vmem:[#allocation2 + $0xd0] sm:$0xff] }
 0x560   : > { %13213 = vmatprep.mubr.msk.bf16.mxu1 %vm305_vm4, %v7761_v21  ;;  %v17606_v21 = vshll.u32 %v17188_v36, 16  ;;  %18644 = vst [vmem:[#allocation65_spill] sm:$0xff] %v17642_v48 }
 0x562   : > { %18634 = vst [vmem:[#allocation57_spill] sm:$0xff] %v17606_v21  ;;  %v7784_v24 = vor.u32 %v17606_v21, %v18636_v3  ;;  %v17649_v21 = vshll.u32 %v17623_v49, 16 }
 0x564   : > { %v7785_v44 = vsel %vm7637_vm7, %v7773_v56, %v7784_v24  ;;  %v17633_v56 = vshrl.u32 %v17623_v49, 16 }
 0x566   : > { %18642 = vst [vmem:[#allocation64_spill] sm:$0xff] %v17633_v56  ;;  %v7821_v35 = vrot.slane %v17633_v56, 7  ;;  %v17662_v56 = vshll.u32 %v17642_v48, 16 }
 0x567   : > { %13214 = vmatmul.mubr.msk.bf16.gmra.mrb[4].mxu1 %vm305_vm4, %v7769_v19  ;;  %v17626_v19 = vshll.u32 %v17608_v25, 16 }
 0x568   : > { %13217 = vmatprep.mubr.msk.bf16.mxu1 %vm305_vm4, %v7777_v46  ;;  %v17629_v46 = vshrl.u32 %v17619_v38, 16 }
 0x569   : > { %18640 = vst [vmem:[#allocation62_spill] sm:$0xff] %v17626_v19  ;;  %v7808_v3 = vor.u32 %v17626_v19, %v7805_v10  ;;  %v17646_v19 = vshll.u32 %v17619_v38, 16 }
 0x56a   : > { %18641 = vst [vmem:[#allocation63_spill] sm:$0xff] %v17629_v46  ;;  %v7813_v24 = vrot.slane %v17629_v46, 7 }
 0x56b   : > { %18645 = vst [vmem:[#allocation66_spill] sm:$0xff] %v17646_v19 }
 0x56c   : > { %v7816_v46 = vor.u32 %v17646_v19, %v7813_v24 }
 0x56f   : > { %13218 = vmatmul.mubr.msk.bf16.gmra.mrb[8].mxu1 %vm305_vm4, %v7785_v44 }
 0x570   : > { %13221 = vmatprep.mubr.msk.bf16.mxu1 %vm305_vm4, %v17218_v55  ;;  %v18643_v55 = vrot.slane %v17205_v62, 7  ;;  %v7824_v62 = vor.u32 %v17649_v21, %v7821_v35 }
 0x572   : > { %v7809_v44 = vsel %vm7637_vm7, %v18643_v55, %v7808_v3  ;;  %v7817_v3 = vsel %vm7637_vm7, %v7805_v10, %v7816_v46  ;;  %v8804_v10 = vsel %vm6274_vm5, %v17441_v0, 0  ;;  %v8561_v0 = vrot.slane %v17450_v26, 1 }
 0x577   : > { %13222 = vmatmul.mubr.msk.bf16.gmra.mrb[12].mxu1 %vm305_vm4, %v17226_v58  ;;  %v17653_v58 = vshrl.u32 %v17642_v48, 16 }
 0x578   : > { %13225 = vmatprep.mubr.msk.bf16.mxu1 %vm305_vm4, %v7809_v44  ;;  %v7825_v44 = vsel %vm7637_vm7, %v7813_v24, %v7824_v62  ;;  %v11976_v62 = vld [vmem:[%s18358_s2 + $0x18] sm:$0xf]  ;;  %v8577_v24 = vrot.slane %v17476_v33, 1 }
 0x579   : > { %v7829_v55 = vrot.slane %v17653_v58, 7 }
 0x57b   : > { %v7832_v19 = vor.u32 %v17662_v56, %v7829_v55 }
 0x57d   : > { %v7833_v31 = vsel %vm7637_vm7, %v7821_v35, %v7832_v19  ;;  %v17732_v35 = vld [vmem:[%s18358_s2 + $0x1c] sm:$0xf] }
 0x57f   : > { %13226 = vmatmul.mubr.msk.bf16.gmra.mrb[16].mxu1 %vm305_vm4, %v7817_v3 }
 0x580   : > { %13229 = vmatprep.mubr.msk.bf16.mxu1 %vm305_vm4, %v7825_v44  ;;  %v8585_v44 = vrot.slane %v17481_v8, 1 }
 0x587   : > { %13230 = vmatmul.mubr.msk.bf16.gmra.mrb[20].mxu1 %vm305_vm4, %v7833_v31 }
 0x588   : > { %13235 = vmatprep.mubr.msk.bf16.mxu1 %vm305_vm4, %v17199_v30  ;;  %v18646_v30 = vld [vmem:[#allocation15_spill] sm:$0xff] }
 0x58f   : > { %13236 = vmatmul.mubr.msk.bf16.vlgmr.msra.gmra.mrb[24].mxu1 %vm305_vm4, %v17201_v40 }
 0x590   : > { %13284 = vmatpush3.bf16.msra.mxu1 %v8804_v10  ;;  %13239 = vmatprep.mubr.msk.bf16.mxu1 %vm305_vm4, %v17403_v14  ;;  %v8589_v10 = vor.u32 %v8585_v44, %v17465_v37 }
 0x591   : > { %14463 = vmatprep.subr.msk.bf16.mxu1 %vm6274_vm5, %v11976_v62 }
 0x597   : > { %13240 = vmatmul.mubr.msk.bf16.gmra.mrb[28].mxu1 %vm305_vm4, %v17417_v7 }
 0x598   : > { %13243 = vmatprep.mubr.msk.bf16.mxu1 %vm305_vm4, %v17420_v53 }
 0x59f   : > { %13244 = vmatmul.mubr.msk.bf16.gmra.mrb[32].mxu1 %vm305_vm4, %v17446_v13 }
 0x5a0   : > { %13247 = vmatprep.mubr.msk.bf16.mxu1 %vm305_vm4, %v17452_v32 }
 0x5a7   : > { %13248 = vmatmul.mubr.msk.bf16.gmra.mrb[36].mxu1 %vm305_vm4, %v17472_v15 }
 0x5a8   : > { %13251 = vmatprep.mubr.msk.bf16.mxu1 %vm305_vm4, %v17478_v11 }
 0x5af   : > { %13252 = vmatmul.mubr.msk.bf16.gmra.mrb[40].mxu1 %vm305_vm4, %v17496_v59 }
 0x5b0   : > { %13255 = vmatprep.mubr.msk.bf16.mxu1 %vm305_vm4, %v17502_v22 }
 0x5b7   : > { %13256 = vmatmul.mubr.msk.bf16.gmra.mrb[44].mxu1 %vm305_vm4, %v17520_v34 }
 0x5b8   : > { %13259 = vmatprep.mubr.msk.bf16.mxu1 %vm305_vm4, %v17526_v45  ;;  %v18662_v45 = vld [vmem:[#allocation63_spill] sm:$0xff] }
 0x5bf   : > { %13260 = vmatmul.mubr.msk.bf16.gmra.mrb[0].mxu1 %vm305_vm4, %v17544_v61 }
 0x5c0   : > { %13263 = vmatprep.mubr.msk.bf16.mxu1 %vm305_vm4, %v17550_v16  ;;  %v18660_v16 = vld [vmem:[#allocation66_spill] sm:$0xff] }
 0x5c7   : > { %13264 = vmatmul.mubr.msk.bf16.gmra.mrb[4].mxu1 %vm305_vm4, %v17568_v52  ;;  %v18659_v52 = vld [vmem:[#allocation7_spill] sm:$0xff] }
 0x5c8   : > { %13267 = vmatprep.mubr.msk.bf16.mxu1 %vm305_vm4, %v17574_v20 }
 0x5cf   : > { %13268 = vmatmul.mubr.msk.bf16.gmra.mrb[8].mxu1 %vm305_vm4, %v17188_v36  ;;  %v8553_v36 = vrot.slane %v17423_v50, 1 }
 0x5d0   : > { %13271 = vmatprep.mubr.msk.bf16.mxu1 %vm305_vm4, %v18646_v30  ;;  %v8593_v30 = vrot.slane %v17500_v41, 1 }
 0x5d1   : > { %v8557_v40 = vor.u32 %v8553_v36, %v17408_v42  ;;  %v8554_v31 = vsel %vm1512_vm3, %v17240_v54, %v8553_v36  ;;  %v8565_v54 = vor.u32 %v8561_v0, %v17428_v6 }
 0x5d3   : > { %v8562_v19 = vsel %vm1512_vm3, %v8557_v40, %v8561_v0  ;;  %v8594_v40 = vsel %vm1512_vm3, %v8589_v10, %v8593_v30 }
 0x5d7   : > { %13272 = vmatmul.mubr.msk.bf16.gmra.mrb[12].mxu1 %vm305_vm4, %v17190_v28  ;;  %v9403_v28 = vsel %vm6274_vm5, %v11976_v62, 0  ;;  %v8581_v62 = vor.u32 %v8577_v24, %v17461_v51 }
 0x5d8   : > { %13275 = vmatprep.mubr.msk.bf16.mxu1 %vm305_vm4, %v17608_v25  ;;  %v18656_v25 = vld [vmem:[#allocation8_spill] sm:$0xff] }
 0x5d9   : > { %v8586_v36 = vsel %vm1512_vm3, %v8581_v62, %v8585_v44  ;;  %v8633_v62 = vrot.slane %v17553_v12, 1  ;;  %v8689_v20 = vrot.slane %v18656_v25, 1 }
 0x5df   : > { %13276 = vmatmul.mubr.msk.bf16.gmra.mrb[16].mxu1 %vm305_vm4, %v17619_v38  ;;  %v18655_v38 = vld [vmem:[#allocation14_spill] sm:$0xff] }
 0x5e0   : > { %13279 = vmatprep.mubr.msk.bf16.mxu1 %vm305_vm4, %v17623_v49 }
 0x5e7   : > { %13280 = vmatmul.mubr.msk.bf16.gmra.mrb[20].mxu1 %vm305_vm4, %v17642_v48 }
 0x5e8   : > { %13285 = vmatprep.mubr.msk.bf16.mxu1 %vm305_vm4, %v17243_v17  ;;  %v8569_v17 = vrot.slane %v17455_v27, 1 }
 0x5ea   : > { %v8573_v46 = vor.u32 %v8569_v17, %v17432_v4  ;;  %v8570_v3 = vsel %vm1512_vm3, %v8565_v54, %v8569_v17  ;;  %v8617_v54 = vrot.slane %v17529_v39, 1 }
 0x5ec   : > { %v8578_v55 = vsel %vm1512_vm3, %v8573_v46, %v8577_v24  ;;  %v8621_v24 = vor.u32 %v8617_v54, %v17513_v1 }
 0x5ef   : > { %13286 = vmatmul.mubr.msk.bf16.vlgmr.msra.gmra.mrb[24].mxu1 %vm305_vm4, %v8554_v31  ;;  %v8597_v31 = vor.u32 %v8593_v30, %v17485_v47  ;;  %v8637_v30 = vor.u32 %v8633_v62, %v17537_v5 }
 0x5f0   : > { %13334 = vmatpush3.bf16.msra.mxu1 %v9403_v28  ;;  %13289 = vmatprep.mubr.msk.bf16.mxu1 %vm305_vm4, %v8562_v19  ;;  %v8601_v28 = vrot.slane %v17505_v60, 1  ;;  %v8609_v19 = vrot.slane %v17524_v18, 1 }
 0x5f1   : > { %14464 = vmatprep.subr.msk.bf16.mxu1 %vm6274_vm5, %v17732_v35 }
 0x5f2   : > { %v8605_v0 = vor.u32 %v8601_v28, %v17489_v2  ;;  %v8602_v17 = vsel %vm1512_vm3, %v8597_v31, %v8601_v28  ;;  %v8649_v31 = vrot.slane %v17577_v23, 1 }
 0x5f4   : > { %v8610_v46 = vsel %vm1512_vm3, %v8605_v0, %v8609_v19 }
 0x5f7   : > { %13290 = vmatmul.mubr.msk.bf16.gmra.mrb[28].mxu1 %vm305_vm4, %v8570_v3  ;;  %v8613_v3 = vor.u32 %v8609_v19, %v17509_v57  ;;  %v18647_v19 = vld [vmem:[#allocation51_spill] sm:$0xff] }
 0x5f8   : > { %13293 = vmatprep.mubr.msk.bf16.mxu1 %vm305_vm4, %v8578_v55  ;;  %v8625_v55 = vrot.slane %v17548_v9, 1 }
 0x5f9   : > { %v8618_v44 = vsel %vm1512_vm3, %v8613_v3, %v8617_v54 }
 0x5fa   : > { %v8626_v10 = vsel %vm1512_vm3, %v8621_v24, %v8625_v55  ;;  %v8657_v24 = vrot.slane %v17594_v63, 1 }
 0x5ff   : > { %13294 = vmatmul.mubr.msk.bf16.gmra.mrb[32].mxu1 %vm305_vm4, %v8586_v36  ;;  %v8629_v36 = vor.u32 %v8625_v55, %v17533_v29 }
 0x600   : > { %13297 = vmatprep.mubr.msk.bf16.mxu1 %vm305_vm4, %v8594_v40  ;;  %v8641_v40 = vrot.slane %v17572_v43, 1 }
 0x601   : > { %v8634_v28 = vsel %vm1512_vm3, %v8629_v36, %v8633_v62  ;;  %v18650_v62 = vld [vmem:[#allocation55_spill] sm:$0xff]  ;;  %v18651_v36 = vld [vmem:[#allocation54_spill] sm:$0xff] }
 0x602   : > { %v8642_v0 = vsel %vm1512_vm3, %v8637_v30, %v8641_v40 }
 0x607   : > { %13298 = vmatmul.mubr.msk.bf16.gmra.mrb[36].mxu1 %vm305_vm4, %v8602_v17  ;;  %v8653_v17 = vor.u32 %v8649_v31, %v18647_v19 }
 0x608   : > { %13301 = vmatprep.mubr.msk.bf16.mxu1 %vm305_vm4, %v8610_v46  ;;  %v18648_v46 = vld [vmem:[#allocation50_spill] sm:$0xff] }
 0x609   : > { %v8645_v54 = vor.u32 %v8641_v40, %v18648_v46  ;;  %v8658_v55 = vsel %vm1512_vm3, %v8653_v17, %v8657_v24  ;;  %v18654_v17 = vld [vmem:[#allocation6_spill] sm:$0xff] }
 0x60b   : > { %v8650_v3 = vsel %vm1512_vm3, %v8645_v54, %v8649_v31  ;;  %v18653_v54 = vld [vmem:[#allocation11_spill] sm:$0xff] }
 0x60f   : > { %13302 = vmatmul.mubr.msk.bf16.gmra.mrb[40].mxu1 %vm305_vm4, %v8618_v44  ;;  %v18649_v44 = vld [vmem:[#allocation56_spill] sm:$0xff] }
 0x610   : > { %13305 = vmatprep.mubr.msk.bf16.mxu1 %vm305_vm4, %v8626_v10  ;;  %v8665_v10 = vrot.slane %v18649_v44, 1 }
 0x612   : > { %v8669_v30 = vor.u32 %v8665_v10, %v18650_v62 }
 0x617   : > { %13306 = vmatmul.mubr.msk.bf16.gmra.mrb[44].mxu1 %vm305_vm4, %v8634_v28  ;;  %v8661_v28 = vor.u32 %v8657_v24, %v18651_v36 }
 0x618   : > { %13309 = vmatprep.mubr.msk.bf16.mxu1 %vm305_vm4, %v8642_v0  ;;  %v18652_v0 = vld [vmem:[#allocation57_spill] sm:$0xff] }
 0x619   : > { %v8673_v48 = vrot.slane %v18652_v0, 1  ;;  %v8666_v40 = vsel %vm1512_vm3, %v8661_v28, %v8665_v10  ;;  %v18657_v28 = vld [vmem:[#allocation62_spill] sm:$0xff] }
 0x61b   : > { %v8674_v31 = vsel %vm1512_vm3, %v8669_v30, %v8673_v48  ;;  %v18658_v30 = vld [vmem:[#allocation59_spill] sm:$0xff] }
 0x61f   : > { %13310 = vmatmul.mubr.msk.bf16.gmra.mrb[0].mxu1 %vm305_vm4, %v8650_v3  ;;  %v8681_v3 = vrot.slane %v18653_v54, 1 }
 0x620   : > { %13313 = vmatprep.mubr.msk.bf16.mxu1 %vm305_vm4, %v8658_v55  ;;  %v8677_v55 = vor.u32 %v8673_v48, %v18655_v38 }
 0x621   : > { %v8685_v49 = vor.u32 %v18654_v17, %v8681_v3  ;;  %v8705_v17 = vrot.slane %v18660_v16, 1 }
 0x622   : > { %v8682_v24 = vsel %vm1512_vm3, %v8677_v55, %v8681_v3  ;;  %v8713_v55 = vrot.slane %v17649_v21, 1 }
 0x623   : > { %v8690_v10 = vsel %vm1512_vm3, %v8685_v49, %v8689_v20  ;;  %v9079_v49 = vld [vmem:[#allocation2 + $0x20] sm:$0xf8]  ;;  %v8709_v34 = vor.u32 %v8705_v17, %v18662_v45 }
 0x624   : > { %v9107_v22 = vshrl.u32 %v9079_v49, 16  ;;  %v9110_v59 = vshll.u32 %v9079_v49, 16 }
 0x626   : > { %v9109_v11 = vrot.slane %v9107_v22, 3  ;;  %v9112_v15 = vrot.slane %v9110_v59, 4  ;;  %v9138_v22 = vrot.slane %v17455_v27, 4 }
 0x627   : > { %13314 = vmatmul.mubr.msk.bf16.gmra.mrb[4].mxu1 %vm305_vm4, %v8666_v40  ;;  %v8697_v40 = vrot.slane %v18657_v28, 1 }
 0x628   : > { %13317 = vmatprep.mubr.msk.bf16.mxu1 %vm305_vm4, %v8674_v31  ;;  %v8693_v31 = vor.u32 %v8689_v20, %v18659_v52  ;;  %v8721_v20 = vrot.slane %v17662_v56, 1  ;;  %v9113_v49 = vor.u32 %v9112_v15, %v9109_v11  ;;  %v9828_v11 = vsel %vm6274_vm5, %v17732_v35, 0 }
 0x629   : > { %v8701_v54 = vor.u32 %v8697_v40, %v18658_v30 }
 0x62a   : > { %v8698_v48 = vsel %vm1512_vm3, %v8693_v31, %v8697_v40  ;;  %v8714_v40 = vsel %vm1512_vm3, %v8709_v34, %v8713_v55 }
 0x62b   : > { %v8706_v3 = vsel %vm1512_vm3, %v8701_v54, %v8705_v17  ;;  %v8725_v17 = vor.u32 %v8721_v20, %v17653_v58 }
 0x62f   : > { %13318 = vmatmul.mubr.msk.bf16.gmra.mrb[8].mxu1 %vm305_vm4, %v8682_v24  ;;  %v18661_v24 = vld [vmem:[#allocation64_spill] sm:$0xff] }
 0x630   : > { %13321 = vmatprep.mubr.msk.bf16.mxu1 %vm305_vm4, %v8690_v10  ;;  %v8717_v61 = vor.u32 %v8713_v55, %v18661_v24  ;;  %v8532_v10 = vld [vmem:[#allocation2 + $0xd8] sm:$0x1]  ;;  %v9126_v55 = vrot.slane %v17428_v6, 3 }
 0x631   : > { %v8727_v31 = vshll.u32 %v8532_v10, 16  ;;  %v9129_v10 = vrot.slane %v17450_v26, 4 }
 0x632   : > { %v8722_v54 = vsel %vm1512_vm3, %v8717_v61, %v8721_v20 }
 0x633   : > { %v8729_v32 = vrot.slane %v8727_v31, 1  ;;  %v9130_v59 = vor.u32 %v9129_v10, %v9126_v55  ;;  %v9147_v31 = vrot.slane %v17476_v33, 4  ;;  %v9165_v55 = vrot.slane %v17500_v41, 4 }
 0x635   : > { %v8730_v34 = vsel %vm1512_vm3, %v8725_v17, %v8729_v32  ;;  %v9144_v32 = vrot.slane %v17461_v51, 3  ;;  %v9156_v17 = vrot.slane %v17481_v8, 4 }
 0x637   : > { %13322 = vmatmul.mubr.msk.bf16.gmra.mrb[12].mxu1 %vm305_vm4, %v8698_v48  ;;  %v9117_v48 = vrot.slane %v17408_v42, 3 }
 0x638   : > { %13325 = vmatprep.mubr.msk.bf16.mxu1 %vm305_vm4, %v8706_v3  ;;  %v9120_v3 = vrot.slane %v17423_v50, 4 }
 0x63a   : > { %v9121_v13 = vor.u32 %v9120_v3, %v9117_v48  ;;  %v9153_v3 = vrot.slane %v17465_v37, 3 }
 0x63c   : > { %v9122_v61 = vsel %vm813_vm2, %v9113_v49, %v9121_v13  ;;  %v9131_v15 = vsel %vm813_vm2, %v9121_v13, %v9130_v59  ;;  %v9148_v13 = vor.u32 %v9147_v31, %v9144_v32  ;;  %v9157_v35 = vor.u32 %v9156_v17, %v9153_v3 }
 0x63d   : > { %v9189_v31 = vrot.slane %v17513_v1, 3 }
 0x63e   : > { %v9158_v10 = vsel %vm813_vm2, %v9148_v13, %v9157_v35 }
 0x63f   : > { %13326 = vmatmul.mubr.msk.bf16.gmra.mrb[16].mxu1 %vm305_vm4, %v8714_v40  ;;  %v9135_v40 = vrot.slane %v17432_v4, 3 }
 0x640   : > { %13329 = vmatprep.mubr.msk.bf16.mxu1 %vm305_vm4, %v8722_v54  ;;  %v17838_v54 = vld [vmem:[%s18358_s2 + $0x20] sm:$0xf] }
 0x641   : > { %v9139_v20 = vor.u32 %v9138_v22, %v9135_v40  ;;  %v9174_v40 = vrot.slane %v17505_v60, 4 }
 0x643   : > { %v9140_v48 = vsel %vm813_vm2, %v9130_v59, %v9139_v20  ;;  %v9149_v49 = vsel %vm813_vm2, %v9139_v20, %v9148_v13  ;;  %v9180_v20 = vrot.slane %v17509_v57, 3 }
 0x647   : > { %13330 = vmatmul.mubr.msk.bf16.gmra.mrb[20].mxu1 %vm305_vm4, %v8730_v34  ;;  %v9162_v34 = vrot.slane %v17485_v47, 3 }
 0x648   : > { %13335 = vmatprep.mubr.msk.bf16.mxu1 %vm305_vm4, %v9122_v61  ;;  %v9171_v61 = vrot.slane %v17489_v2, 3 }
 0x649   : > { %v9166_v22 = vor.u32 %v9165_v55, %v9162_v34  ;;  %v9207_v55 = vrot.slane %v17537_v5, 3 }
 0x64a   : > { %v9175_v59 = vor.u32 %v9174_v40, %v9171_v61 }
 0x64c   : > { %v9176_v32 = vsel %vm813_vm2, %v9166_v22, %v9175_v59 }
 0x64f   : > { %13336 = vmatmul.mubr.msk.bf16.vlgmr.msra.gmra.mrb[24].mxu1 %vm305_vm4, %v9131_v15  ;;  %v9183_v15 = vrot.slane %v17524_v18, 4 }
 0x650   : > { %13384 = vmatpush3.bf16.msra.mxu1 %v9828_v11  ;;  %13339 = vmatprep.mubr.msk.bf16.mxu1 %vm305_vm4, %v9140_v48  ;;  %v9167_v11 = vsel %vm813_vm2, %v9157_v35, %v9166_v22  ;;  %v9192_v48 = vrot.slane %v17529_v39, 4  ;;  %v9198_v35 = vrot.slane %v17533_v29, 3 }
 0x651   : > { %14465 = vmatprep.subr.msk.bf16.mxu1 %vm6274_vm5, %v17838_v54  ;;  %v9184_v3 = vor.u32 %v9183_v15, %v9180_v20  ;;  %v9225_v15 = vrot.slane %v18647_v19, 3 }
 0x652   : > { %v9193_v17 = vor.u32 %v9192_v48, %v9189_v31 }
 0x653   : > { %v9185_v13 = vsel %vm813_vm2, %v9175_v59, %v9184_v3  ;;  %v9216_v59 = vrot.slane %v18648_v46, 3 }
 0x654   : > { %v9194_v34 = vsel %vm813_vm2, %v9184_v3, %v9193_v17 }
 0x657   : > { %13340 = vmatmul.mubr.msk.bf16.gmra.mrb[28].mxu1 %vm305_vm4, %v9149_v49  ;;  %v9201_v49 = vrot.slane %v17548_v9, 4 }
 0x658   : > { %13343 = vmatprep.mubr.msk.bf16.mxu1 %vm305_vm4, %v9158_v10  ;;  %v9210_v10 = vrot.slane %v17553_v12, 4 }
 0x659   : > { %v9202_v61 = vor.u32 %v9201_v49, %v9198_v35  ;;  %v9243_v49 = vrot.slane %v18650_v62, 3 }
 0x65a   : > { %v9211_v40 = vor.u32 %v9210_v10, %v9207_v55 }
 0x65b   : > { %v9203_v22 = vsel %vm813_vm2, %v9193_v17, %v9202_v61  ;;  %v9234_v17 = vrot.slane %v18651_v36, 3 }
 0x65c   : > { %v9212_v20 = vsel %vm813_vm2, %v9202_v61, %v9211_v40 }
 0x65f   : > { %13344 = vmatmul.mubr.msk.bf16.gmra.mrb[32].mxu1 %vm305_vm4, %v9167_v11  ;;  %v9219_v11 = vrot.slane %v17572_v43, 4 }
 0x660   : > { %13347 = vmatprep.mubr.msk.bf16.mxu1 %vm305_vm4, %v9176_v32  ;;  %v9228_v32 = vrot.slane %v17577_v23, 4 }
 0x661   : > { %v9220_v31 = vor.u32 %v9219_v11, %v9216_v59 }
 0x662   : > { %v9229_v48 = vor.u32 %v9228_v32, %v9225_v15  ;;  %v9270_v15 = vrot.slane %v18659_v52, 3  ;;  %v9273_v32 = vrot.slane %v18656_v25, 4 }
 0x663   : > { %v9221_v3 = vsel %vm813_vm2, %v9211_v40, %v9220_v31  ;;  %v9252_v40 = vrot.slane %v18655_v38, 3 }
 0x664   : > { %v9230_v35 = vsel %vm813_vm2, %v9220_v31, %v9229_v48  ;;  %v18663_v31 = vld [vmem:[#allocation17_spill] sm:$0xff] }
 0x667   : > { %13348 = vmatmul.mubr.msk.bf16.gmra.mrb[36].mxu1 %vm305_vm4, %v9185_v13  ;;  %v9237_v13 = vrot.slane %v17594_v63, 4 }
 0x668   : > { %13351 = vmatprep.mubr.msk.bf16.mxu1 %vm305_vm4, %v9194_v34  ;;  %v9246_v34 = vrot.slane %v18649_v44, 4 }
 0x669   : > { %v9238_v55 = vor.u32 %v9237_v13, %v9234_v17  ;;  %v9282_v17 = vrot.slane %v18657_v28, 4  ;;  %v9274_v13 = vor.u32 %v9273_v32, %v9270_v15  ;;  %v9306_v15 = vrot.slane %v17653_v58, 3 }
 0x66a   : > { %v9247_v10 = vor.u32 %v9246_v34, %v9243_v49  ;;  %v9288_v34 = vrot.slane %v18662_v45, 3  ;;  %v9309_v32 = vrot.slane %v17662_v56, 4 }
 0x66b   : > { %v9239_v61 = vsel %vm813_vm2, %v9229_v48, %v9238_v55  ;;  %v9275_v49 = vsel %vm813_vm2, %v18663_v31, %v9274_v13 }
 0x66c   : > { %v9248_v59 = vsel %vm813_vm2, %v9238_v55, %v9247_v10  ;;  %v9291_v55 = vrot.slane %v18660_v16, 4 }
 0x66f   : > { %13352 = vmatmul.mubr.msk.bf16.gmra.mrb[40].mxu1 %vm305_vm4, %v9203_v22  ;;  %v9255_v22 = vrot.slane %v18652_v0, 4 }
 0x670   : > { %13355 = vmatprep.mubr.msk.bf16.mxu1 %vm305_vm4, %v9212_v20 }
 0x671   : > { %v9256_v11 = vor.u32 %v9255_v22, %v9252_v40  ;;  %v9300_v40 = vrot.slane %v17649_v21, 4  ;;  %v9292_v22 = vor.u32 %v9291_v55, %v9288_v34  ;;  %v9310_v55 = vor.u32 %v9309_v32, %v9306_v15 }
 0x673   : > { %v9257_v20 = vsel %vm813_vm2, %v9247_v10, %v9256_v11  ;;  %v9266_v48 = vsel %vm813_vm2, %v9256_v11, %v18663_v31  ;;  %v17911_v11 = vld [vmem:[#allocation2 + $0xe0] sm:$0xf] }
 0x674   : > { %v9322_v34 = vshrl.u32 %v17911_v11, 16 }
 0x677   : > { %13356 = vmatmul.mubr.msk.bf16.gmra.mrb[44].mxu1 %vm305_vm4, %v9221_v3  ;;  %v9279_v3 = vrot.slane %v18658_v30, 3 }
 0x678   : > { %13359 = vmatprep.mubr.msk.bf16.mxu1 %vm305_vm4, %v9230_v35 }
 0x679   : > { %v9283_v35 = vor.u32 %v9282_v17, %v9279_v3 }
 0x67b   : > { %v9284_v10 = vsel %vm813_vm2, %v9274_v13, %v9283_v35 }
 0x67f   : > { %13360 = vmatmul.mubr.msk.bf16.gmra.mrb[0].mxu1 %vm305_vm4, %v9239_v61  ;;  %v9297_v61 = vrot.slane %v18661_v24, 3 }
 0x680   : > { %13363 = vmatprep.mubr.msk.bf16.mxu1 %vm305_vm4, %v9248_v59 }
 0x681   : > { %v9301_v59 = vor.u32 %v9300_v40, %v9297_v61  ;;  %v9324_v61 = vrot.slane %v9322_v34, 3 }
 0x683   : > { %v9302_v31 = vsel %vm813_vm2, %v9292_v22, %v9301_v59 }
 0x687   : > { %13364 = vmatmul.mubr.msk.bf16.gmra.mrb[4].mxu1 %vm305_vm4, %v9257_v20  ;;  %v9293_v20 = vsel %vm813_vm2, %v9283_v35, %v9292_v22  ;;  %v9325_v35 = vshll.u32 %v17911_v11, 16 }
 0x688   : > { %13367 = vmatprep.mubr.msk.bf16.mxu1 %vm305_vm4, %v9266_v48  ;;  %v18664_v48 = vld [vmem:[#allocation9_spill] sm:$0xff] }
 0x689   : > { %v18665_v3 = vshrl.u32 %v18664_v48, 16  ;;  %v18666_v13 = vshll.u32 %v18664_v48, 16  ;;  %v9327_v40 = vrot.slane %v9325_v35, 4 }
 0x68b   : > { %v9315_v17 = vrot.slane %v18665_v3, 3  ;;  %v9328_v48 = vor.u32 %v9327_v40, %v9324_v61  ;;  %v17929_v3 = vld [vmem:[#allocation2 + $0x20] sm:$0xf0]  ;;  %v18669_v40 = vld [vmem:[#allocation42_spill] sm:$0xff] }
 0x68c   : > { %v9706_v15 = vrot.slane %v17929_v3, 4 }
 0x68f   : > { %13368 = vmatmul.mubr.msk.bf16.gmra.mrb[8].mxu1 %vm305_vm4, %v9275_v49  ;;  %v9318_v49 = vrot.slane %v18666_v13, 4 }
 0x690   : > { %13371 = vmatprep.mubr.msk.bf16.mxu1 %vm305_vm4, %v9284_v10 }
 0x691   : > { %v9319_v10 = vor.u32 %v9318_v49, %v9315_v17  ;;  %v9711_v17 = vrot.slane %v17420_v53, 4  ;;  %v10288_v49 = vsel %vm6274_vm5, %v17838_v54, 0  ;;  %v18668_v54 = vld [vmem:[#allocation41_spill] sm:$0xff] }
 0x693   : > { %v9320_v22 = vsel %vm813_vm2, %v9310_v55, %v9319_v10  ;;  %v9329_v13 = vsel %vm813_vm2, %v9319_v10, %v9328_v48 }
 0x697   : > { %13372 = vmatmul.mubr.msk.bf16.gmra.mrb[12].mxu1 %vm305_vm4, %v9293_v20  ;;  %v9311_v20 = vsel %vm813_vm2, %v9301_v59, %v9310_v55  ;;  %v9709_v59 = vrot.slane %v17417_v7, 4  ;;  %v18667_v7 = vld [vmem:[#allocation40_spill] sm:$0xff]  ;;  %v9715_v55 = vrot.slane %v18668_v54, 4 }
 0x698   : > { %13375 = vmatprep.mubr.msk.bf16.mxu1 %vm305_vm4, %v9302_v31  ;;  %v9707_v31 = vrot.slane %v17403_v14, 4  ;;  %v17945_v14 = vld [vmem:[%s18362_s6] sm:$0x3]  ;;  %v9713_v53 = vrot.slane %v18667_v7, 4 }
 0x699   : > { %v9712_v35 = vsel %vm6274_vm5, %v9709_v59, %v9711_v17 }
 0x69a   : > { %v9708_v32 = vsel %vm6274_vm5, %v9706_v15, %v9707_v31  ;;  %v9710_v34 = vsel %vm6274_vm5, %v9707_v31, %v9709_v59  ;;  %v9714_v10 = vsel %vm6274_vm5, %v9711_v17, %v9713_v53  ;;  %v9716_v61 = vsel %vm6274_vm5, %v9713_v53, %v9715_v55  ;;  %v18671_v15 = vld [vmem:[#allocation44_spill] sm:$0xff]  ;;  %v18672_v59 = vld [vmem:[#allocation45_spill] sm:$0xff]  ;;  %v18674_v53 = vld [vmem:[#allocation47_spill] sm:$0xff] }
 0x69b   : > { %v9723_v17 = vrot.slane %v18672_v59, 4  ;;  %v9727_v54 = vrot.slane %v18674_v53, 4 }
 0x69f   : > { %13376 = vmatmul.mubr.msk.bf16.gmra.mrb[16].mxu1 %vm305_vm4, %v9311_v20  ;;  %v9717_v20 = vrot.slane %v18669_v40, 4 }
 0x6a0   : > { %13379 = vmatprep.mubr.msk.bf16.mxu1 %vm305_vm4, %v9320_v22  ;;  %v18670_v22 = vld [vmem:[#allocation43_spill] sm:$0xff] }
 0x6a1   : > { %v9719_v48 = vrot.slane %v18670_v22, 4  ;;  %v9718_v31 = vsel %vm6274_vm5, %v9715_v55, %v9717_v20 }
 0x6a7   : > { %13380 = vmatmul.mubr.msk.bf16.gmra.mrb[20].mxu1 %vm305_vm4, %v9329_v13  ;;  %v9720_v13 = vsel %vm6274_vm5, %v9717_v20, %v9719_v48  ;;  %v18676_v20 = vld [vmem:[#allocation49_spill] sm:$0xff] }
 0x6a8   : > { %13385 = vmatprep.mubr.msk.bf16.mxu1 %vm305_vm4, %v9708_v32  ;;  %v9721_v32 = vrot.slane %v18671_v15, 4  ;;  %v9731_v22 = vrot.slane %v18676_v20, 4 }
 0x6af   : > { %13386 = vmatmul.mubr.msk.bf16.vlgmr.msra.gmra.mrb[24].mxu1 %vm305_vm4, %v9710_v34  ;;  %v9724_v34 = vsel %vm6274_vm5, %v9721_v32, %v9723_v17 }
 0x6b0   : > { %13434 = vmatpush3.bf16.msra.mxu1 %v10288_v49  ;;  %13389 = vmatprep.mubr.msk.bf16.mxu1 %vm305_vm4, %v9712_v35  ;;  %v9722_v49 = vsel %vm6274_vm5, %v9719_v48, %v9721_v32  ;;  %v18673_v35 = vld [vmem:[#allocation46_spill] sm:$0xff]  ;;  %v18678_v32 = vld [vmem:[#allocation53_spill] sm:$0xff] }
 0x6b1   : > { %14466 = vmatprep.subr.msk.bf16.mxu1 %vm557_vm0, %v17945_v14  ;;  %v9725_v7 = vrot.slane %v18673_v35, 4  ;;  %v9735_v59 = vrot.slane %v18678_v32, 4 }
 0x6b3   : > { %v9726_v55 = vsel %vm6274_vm5, %v9723_v17, %v9725_v7 }
 0x6b7   : > { %13390 = vmatmul.mubr.msk.bf16.gmra.mrb[28].mxu1 %vm305_vm4, %v9714_v10  ;;  %v9728_v10 = vsel %vm6274_vm5, %v9725_v7, %v9727_v54  ;;  %v14797_v7 = vld [vmem:[#allocation2 + $0xa8] sm:$0xff] }
 0x6b8   : > { %13393 = vmatprep.mubr.msk.bf16.mxu1 %vm305_vm4, %v9716_v61  ;;  %v18675_v61 = vld [vmem:[#allocation48_spill] sm:$0xff]  ;;  %v9739_v53 = vrot.slane %v14797_v7, 4 }
 0x6b9   : > { %v9729_v40 = vrot.slane %v18675_v61, 4 }
 0x6bb   : > { %v9730_v48 = vsel %vm6274_vm5, %v9727_v54, %v9729_v40 }
 0x6bf   : > { %13394 = vmatmul.mubr.msk.bf16.gmra.mrb[32].mxu1 %vm305_vm4, %v9718_v31  ;;  %v9732_v31 = vsel %vm6274_vm5, %v9729_v40, %v9731_v22  ;;  %v18679_v40 = vld [vmem:[#allocation58_spill] sm:$0xff] }
 0x6c0   : > { %13397 = vmatprep.mubr.msk.bf16.mxu1 %vm305_vm4, %v9720_v13  ;;  %v18677_v13 = vld [vmem:[#allocation52_spill] sm:$0xff]  ;;  %v9743_v20 = vrot.slane %v18679_v40, 4  ;;  %v10115_v40 = vrot.slane %v17423_v50, 5  ;;  %v10122_v50 = vrot.slane %v17432_v4, 4  ;;  %v10130_v4 = vrot.slane %v17465_v37, 4 }
 0x6c1   : > { %v9733_v15 = vrot.slane %v18677_v13, 4  ;;  %v10139_v37 = vrot.slane %v17505_v60, 5 }
 0x6c3   : > { %v9734_v17 = vsel %vm6274_vm5, %v9731_v22, %v9733_v15 }
 0x6c7   : > { %13398 = vmatmul.mubr.msk.bf16.gmra.mrb[36].mxu1 %vm305_vm4, %v9722_v49  ;;  %v9736_v49 = vsel %vm6274_vm5, %v9733_v15, %v9735_v59  ;;  %v18681_v15 = vld [vmem:[#allocation61_spill] sm:$0xff] }
 0x6c8   : > { %13401 = vmatprep.mubr.msk.bf16.mxu1 %vm305_vm4, %v9724_v34  ;;  %v14796_v34 = vld [vmem:[#allocation2 + $0xa0] sm:$0xff]  ;;  %v9747_v32 = vrot.slane %v18681_v15, 4  ;;  %v10118_v15 = vrot.slane %v17428_v6, 4  ;;  %v10126_v6 = vrot.slane %v17461_v51, 4  ;;  %v10135_v51 = vrot.slane %v17500_v41, 5 }
 0x6c9   : > { %v9737_v35 = vrot.slane %v14796_v34, 4 }
 0x6cb   : > { %v9738_v54 = vsel %vm6274_vm5, %v9735_v59, %v9737_v35 }
 0x6cf   : > { %13402 = vmatmul.mubr.msk.bf16.gmra.mrb[40].mxu1 %vm305_vm4, %v9726_v55  ;;  %v9740_v55 = vsel %vm6274_vm5, %v9737_v35, %v9739_v53  ;;  %v14799_v35 = vld [vmem:[#allocation2 + $0xd8] sm:$0xff] }
 0x6d0   : > { %13405 = vmatprep.mubr.msk.bf16.mxu1 %vm305_vm4, %v9728_v10  ;;  %v14798_v10 = vld [vmem:[#allocation2 + $0xb0] sm:$0xff]  ;;  %v9751_v7 = vrot.slane %v14799_v35, 4 }
 0x6d1   : > { %v9741_v61 = vrot.slane %v14798_v10, 4 }
 0x6d3   : > { %v9742_v22 = vsel %vm6274_vm5, %v9739_v53, %v9741_v61  ;;  %v10107_v53 = vshrl.u32 %v17929_v3, 16 }
 0x6d7   : > { %13406 = vmatmul.mubr.msk.bf16.gmra.mrb[44].mxu1 %vm305_vm4, %v9730_v48  ;;  %v9744_v48 = vsel %vm6274_vm5, %v9741_v61, %v9743_v20  ;;  %v10114_v61 = vrot.slane %v17408_v42, 4 }
 0x6d8   : > { %13409 = vmatprep.mubr.msk.bf16.mxu1 %vm305_vm4, %v9732_v31  ;;  %v18680_v31 = vld [vmem:[#allocation60_spill] sm:$0xff] }
 0x6d9   : > { %v9745_v13 = vrot.slane %v18680_v31, 4  ;;  %v10116_v31 = vor.u32 %v10115_v40, %v10114_v61  ;;  %v10142_v40 = vrot.slane %v17509_v57, 4  ;;  %v10151_v57 = vrot.slane %v17548_v9, 5 }
 0x6db   : > { %v9746_v59 = vsel %vm6274_vm5, %v9743_v20, %v9745_v13  ;;  %v9753_v20 = vrot.slane %v17911_v11, 4 }
 0x6df   : > { %13410 = vmatmul.mubr.msk.bf16.gmra.mrb[0].mxu1 %vm305_vm4, %v9734_v17  ;;  %v9748_v17 = vsel %vm6274_vm5, %v9745_v13, %v9747_v32  ;;  %v9754_v13 = vsel %vm6274_vm5, %v9751_v7, %v9753_v20  ;;  %v10146_v20 = vrot.slane %v17513_v1, 4  ;;  %v10155_v1 = vrot.slane %v17553_v12, 5 }
 0x6e0   : > { %13413 = vmatprep.mubr.msk.bf16.mxu1 %vm305_vm4, %v9736_v49  ;;  %v18682_v49 = vld [vmem:[#allocation65_spill] sm:$0xff] }
 0x6e1   : > { %v9749_v34 = vrot.slane %v18682_v49, 4  ;;  %v10867_v49 = vsel %vm557_vm0, %v17945_v14, 0 }
 0x6e3   : > { %v9752_v10 = vsel %vm6274_vm5, %v9749_v34, %v9751_v7 }
 0x6e7   : > { %13414 = vmatmul.mubr.msk.bf16.gmra.mrb[4].mxu1 %vm305_vm4, %v9738_v54  ;;  %v10110_v54 = vshll.u32 %v17929_v3, 16 }
 0x6e8   : > { %13417 = vmatprep.mubr.msk.bf16.mxu1 %vm305_vm4, %v9740_v55  ;;  %v9750_v55 = vsel %vm6274_vm5, %v9747_v32, %v9749_v34  ;;  %v10119_v32 = vrot.slane %v17450_v26, 5  ;;  %v10127_v26 = vrot.slane %v17476_v33, 5 }
 0x6ea   : > { %v10120_v11 = vor.u32 %v10119_v32, %v10118_v15  ;;  %v10128_v7 = vor.u32 %v10127_v26, %v10126_v6  ;;  %v10158_v32 = vrot.slane %v18648_v46, 4  ;;  %v10167_v46 = vrot.slane %v17594_v63, 5 }
 0x6eb   : > { %v10174_v6 = vrot.slane %v18655_v38, 4 }
 0x6ec   : > { %v10121_v34 = vsel %vm7152_vm6, %v10116_v31, %v10120_v11 }
 0x6ef   : > { %13418 = vmatmul.mubr.msk.bf16.gmra.mrb[8].mxu1 %vm305_vm4, %v9742_v22  ;;  %v10109_v22 = vrot.slane %v10107_v53, 4 }
 0x6f0   : > { %13421 = vmatprep.mubr.msk.bf16.mxu1 %vm305_vm4, %v9744_v48  ;;  %v10112_v48 = vrot.slane %v10110_v54, 5  ;;  %v10134_v54 = vrot.slane %v17485_v47, 4  ;;  %v10143_v47 = vrot.slane %v17524_v18, 5 }
 0x6f2   : > { %v10113_v3 = vor.u32 %v10112_v48, %v10109_v22  ;;  %v10144_v60 = vor.u32 %v10143_v47, %v10142_v40 }
 0x6f4   : > { %v10117_v42 = vsel %vm7152_vm6, %v10113_v3, %v10116_v31  ;;  %v10150_v31 = vrot.slane %v17533_v29, 4  ;;  %v10159_v29 = vrot.slane %v17572_v43, 5 }
 0x6f6   : > { %v10160_v12 = vor.u32 %v10159_v29, %v10158_v32  ;;  %v14783_v32 = vld [vmem:[%s14973_s25 + $0x78] sm:$0xff]   ;;  %v14784_v29 = vld [vmem:[%s14973_s25 + $0x80] sm:$0xff]  }
 0x6f7   : > { %13422 = vmatmul.mubr.msk.bf16.gmra.mrb[12].mxu1 %vm305_vm4, %v9746_v59  ;;  %v10123_v59 = vrot.slane %v17455_v27, 5  ;;  %v10131_v27 = vrot.slane %v17481_v8, 5  ;;  %v10136_v8 = vor.u32 %v10135_v51, %v10134_v54  ;;  %v10194_v51 = vrot.slane %v18661_v24, 4 }
 0x6f8   : > { %13425 = vmatprep.mubr.msk.bf16.mxu1 %vm305_vm4, %v9748_v17 }
 0x6f9   : > { %v10124_v17 = vor.u32 %v10123_v59, %v10122_v50  ;;  %v10132_v53 = vor.u32 %v10131_v27, %v10130_v4  ;;  %v18683_v4 = vld [vmem:[#allocation10_spill] sm:$0xff]  ;;  %v10187_v27 = vrot.slane %v18657_v28, 5 }
 0x6fb   : > { %v10125_v35 = vsel %vm7152_vm6, %v10120_v11, %v10124_v17  ;;  %v10129_v14 = vsel %vm7152_vm6, %v10124_v17, %v10128_v7  ;;  %v10133_v33 = vsel %vm7152_vm6, %v10128_v7, %v10132_v53  ;;  %v10137_v61 = vsel %vm7152_vm6, %v10132_v53, %v10136_v8 }
 0x6fc   : > { %v10166_v11 = vrot.slane %v18651_v36, 4  ;;  %v10170_v17 = vrot.slane %v18650_v62, 4  ;;  %v10175_v36 = vrot.slane %v18652_v0, 5  ;;  %v10186_v0 = vrot.slane %v18658_v30, 4 }
 0x6fd   : > { %v10195_v30 = vrot.slane %v17649_v21, 5 }
 0x6fe   : > { %v10176_v26 = vor.u32 %v10175_v36, %v10174_v6  ;;  %v10188_v53 = vor.u32 %v10187_v27, %v10186_v0  ;;  %v18169_v36 = vld [vmem:[%s18363_s7] ss:$0 sm:$0xff] }
 0x6ff   : > { %13426 = vmatmul.mubr.msk.bf16.gmra.mrb[16].mxu1 %vm305_vm4, %v9750_v55  ;;  %v10138_v55 = vrot.slane %v17489_v2, 4  ;;  %v10147_v2 = vrot.slane %v17529_v39, 5  ;;  %v10152_v39 = vor.u32 %v10151_v57, %v10150_v31  ;;  %v14775_v31 = vld [vmem:[%s14973_s25 + $0x38] sm:$0xff]   ;;  %v14776_v57 = vld [vmem:[%s14973_s25 + $0x40] sm:$0xff]  }
 0x700   : > { %13429 = vmatprep.mubr.msk.bf16.mxu1 %vm305_vm4, %v9752_v10  ;;  %v10181_v38 = vsel %vm7152_vm6, %v10176_v26, %v18683_v4 }
 0x701   : > { %v10140_v10 = vor.u32 %v10139_v37, %v10138_v55  ;;  %v10148_v22 = vor.u32 %v10147_v2, %v10146_v20  ;;  %v10103_v55 = vld [vmem:[#allocation2 + $0xe0] sm:$0x1f]  ;;  %v14771_v2 = vld [vmem:[%s14973_s25 + $0x18] sm:$0xff]  }
 0x702   : > { %v10207_v21 = vshrl.u32 %v10103_v55, 16  ;;  %v10210_v24 = vshll.u32 %v10103_v55, 16 }
 0x703   : > { %v10141_v41 = vsel %vm7152_vm6, %v10136_v8, %v10140_v10  ;;  %v10145_v48 = vsel %vm7152_vm6, %v10140_v10, %v10144_v60  ;;  %v10149_v18 = vsel %vm7152_vm6, %v10144_v60, %v10148_v22  ;;  %v10153_v15 = vsel %vm7152_vm6, %v10148_v22, %v10152_v39  ;;  %v14772_v60 = vld [vmem:[%s14973_s25 + $0x20] sm:$0xff]   ;;  %v14773_v22 = vld [vmem:[%s14973_s25 + $0x28] sm:$0xff]  }
 0x704   : > { %v10198_v8 = vrot.slane %v17653_v58, 4  ;;  %v10212_v40 = vrot.slane %v10210_v24, 5 }
 0x707   : > { %13430 = vmatmul.mubr.msk.bf16.gmra.mrb[20].mxu1 %vm305_vm4, %v9754_v13  ;;  %v10154_v13 = vrot.slane %v17537_v5, 4  ;;  %v10163_v5 = vrot.slane %v17577_v23, 5  ;;  %v10168_v23 = vor.u32 %v10167_v46, %v10166_v11  ;;  %v14791_v11 = vld [vmem:[%s14973_s25 + $0xb8] sm:$0xff]   ;;  %v14792_v46 = vld [vmem:[%s14973_s25 + $0xc0] sm:$0xff]  }
 0x708   : > { %13435 = vmatprep.mubr.msk.bf16.mxu1 %vm305_vm4, %v10117_v42  ;;  %v10162_v42 = vrot.slane %v18647_v19, 4  ;;  %v10171_v19 = vrot.slane %v18649_v44, 5  ;;  %v10182_v44 = vrot.slane %v18659_v52, 4  ;;  %v10190_v52 = vrot.slane %v18662_v45, 4 }
 0x709   : > { %v10156_v3 = vor.u32 %v10155_v1, %v10154_v13  ;;  %v14778_v13 = vld [vmem:[%s14973_s25 + $0x50] sm:$0xff]   ;;  %v14779_v1 = vld [vmem:[%s14973_s25 + $0x58] sm:$0xff]  }
 0x70a   : > { %v10164_v50 = vor.u32 %v10163_v5, %v10162_v42  ;;  %v14786_v42 = vld [vmem:[%s14973_s25 + $0x90] sm:$0xff]   ;;  %v14787_v5 = vld [vmem:[%s14973_s25 + $0x98] sm:$0xff]  }
 0x70b   : > { %v10157_v9 = vsel %vm7152_vm6, %v10152_v39, %v10156_v3  ;;  %v10161_v59 = vsel %vm7152_vm6, %v10156_v3, %v10160_v12  ;;  %v14780_v39 = vld [vmem:[%s14973_s25 + $0x60] sm:$0xff]   ;;  %v14781_v3 = vld [vmem:[%s14973_s25 + $0x68] sm:$0xff]  }
 0x70c   : > { %v10165_v43 = vsel %vm7152_vm6, %v10160_v12, %v10164_v50  ;;  %v14788_v12 = vld [vmem:[%s14973_s25 + $0xa0] sm:$0xff]  }
 0x70f   : > { %13436 = vmatmul.mubr.msk.bf16.vlgmr.msra.gmra.mrb[24].mxu1 %vm305_vm4, %v10121_v34  ;;  %v10169_v34 = vsel %vm7152_vm6, %v10164_v50, %v10168_v23  ;;  %v14789_v50 = vld [vmem:[%s14973_s25 + $0xa8] sm:$0xff]  }
 0x710   : > { %13484 = vmatpush3.bf16.msra.mxu1 %v10867_v49  ;;  %13439 = vmatprep.mubr.msk.bf16.mxu1 %vm305_vm4, %v10125_v35  ;;  %v10172_v49 = vor.u32 %v10171_v19, %v10170_v17  ;;  %v10183_v35 = vrot.slane %v18656_v25, 5  ;;  %v10191_v25 = vrot.slane %v18660_v16, 5  ;;  %v10199_v16 = vrot.slane %v17662_v56, 5  ;;  %v18684_v56 = vld [vmem:[#allocation13_spill] sm:$0xff]  ;;  %v14794_v17 = vld [vmem:[%s14973_s25 + $0xd0] sm:$0xff]  }
 0x711   : > { %v18160_v19 = vld [vmem:[%s18360_s4] ss:$0 sm:$0xff] }
 0x712   : > { %v10173_v63 = vsel %vm7152_vm6, %v10168_v23, %v10172_v49  ;;  %v10177_v62 = vsel %vm7152_vm6, %v10172_v49, %v10176_v26  ;;  %v10184_v7 = vor.u32 %v10183_v35, %v10182_v44  ;;  %v10192_v28 = vor.u32 %v10191_v25, %v10190_v52  ;;  %v18685_v23 = vld [vmem:[#allocation18_spill] sm:$0xff] }
 0x713   : > { %v10200_v10 = vor.u32 %v10199_v16, %v10198_v8  ;;  %v13541_v49 = vadd.f32 %v18685_v23, %v18160_v19  ;;  %v18699_v23 = vld [vmem:[#allocation30_spill] sm:$0xff] }
 0x714   : > { %v10189_v54 = vsel %vm7152_vm6, %v10184_v7, %v10188_v53  ;;  %v10193_v37 = vsel %vm7152_vm6, %v10188_v53, %v10192_v28 }
 0x715   : > { %v10205_v47 = vsel %vm7152_vm6, %v10200_v10, %v18684_v56  ;;  %v13542_v0 = vadd.f32 %v13541_v49, %v18169_v36  ;;  %v13577_v49 = vadd.f32 %v18699_v23, %v18160_v19 }
 0x717   : > { %13440 = vmatmul.mubr.msk.bf16.gmra.mrb[28].mxu1 %vm305_vm4, %v10129_v14  ;;  %v10185_v14 = vsel %vm7152_vm6, %v18683_v4, %v10184_v7 }
 0x718   : > { %13443 = vmatprep.mubr.msk.bf16.mxu1 %vm305_vm4, %v10133_v33  ;;  %v10196_v33 = vor.u32 %v10195_v30, %v10194_v51  ;;  %v18690_v51 = vld [vmem:[#allocation21_spill] sm:$0xff] }
 0x719   : > { %v13550_v30 = vadd.f32 %v18160_v19, %v18690_v51 }
 0x71a   : > { %v10197_v45 = vsel %vm7152_vm6, %v10192_v28, %v10196_v33  ;;  %v10201_v58 = vsel %vm7152_vm6, %v10196_v33, %v10200_v10  ;;  %v18691_v33 = vld [vmem:[#allocation22_spill] sm:$0xff] }
 0x71b   : > { %v13553_v55 = vadd.f32 %v18691_v33, %v18160_v19 }
 0x71f   : > { %13444 = vmatmul.mubr.msk.bf16.gmra.mrb[32].mxu1 %vm305_vm4, %v10137_v61  ;;  %v10209_v61 = vrot.slane %v10207_v21, 4  ;;  %v13551_v21 = vadd.f32 %v13550_v30, %v18169_v36  ;;  %v18702_v30 = vld [vmem:[#allocation33_spill] sm:$0xff] }
 0x720   : > { %13447 = vmatprep.mubr.msk.bf16.mxu1 %vm305_vm4, %v10141_v41  ;;  %v13586_v33 = vadd.f32 %v18160_v19, %v18702_v30 }
 0x721   : > { %v10213_v41 = vor.u32 %v10212_v40, %v10209_v61  ;;  %v13554_v61 = vadd.f32 %v13553_v55, %v18169_v36 }
 0x723   : > { %v10214_v20 = vsel %vm7152_vm6, %v18684_v56, %v10213_v41 }
 0x727   : > { %13448 = vmatmul.mubr.msk.bf16.gmra.mrb[36].mxu1 %vm305_vm4, %v10145_v48  ;;  %v14774_v48 = vld [vmem:[%s14973_s25 + $0x30] sm:$0xff]  }
 0x728   : > { %13451 = vmatprep.mubr.msk.bf16.mxu1 %vm305_vm4, %v10149_v18  ;;  %v14777_v18 = vld [vmem:[%s14973_s25 + $0x48] sm:$0xff]  }
 0x72f   : > { %13452 = vmatmul.mubr.msk.bf16.gmra.mrb[40].mxu1 %vm305_vm4, %v10153_v15  ;;  %v14782_v15 = vld [vmem:[%s14973_s25 + $0x70] sm:$0xff]  }
 0x730   : > { %13455 = vmatprep.mubr.msk.bf16.mxu1 %vm305_vm4, %v10157_v9  ;;  %v14785_v9 = vld [vmem:[%s14973_s25 + $0x88] sm:$0xff]  }
 0x737   : > { %13456 = vmatmul.mubr.msk.bf16.gmra.mrb[44].mxu1 %vm305_vm4, %v10161_v59  ;;  %v14790_v59 = vld [vmem:[%s14973_s25 + $0xb0] sm:$0xff]  }
 0x738   : > { %13459 = vmatprep.mubr.msk.bf16.mxu1 %vm305_vm4, %v10165_v43  ;;  %v14793_v43 = vld [vmem:[%s14973_s25 + $0xc8] sm:$0xff]   ;;  %s296_s25 = sand.u32 1, %s14854_s28  }
 0x739   : > { %s14467_s17 = smul.u32 12, %s296_s25  ;;  %s11302_s24 = scalar_lea.sflag [#allocation4], %s296_s25 }
 0x73b   : > { %s298_s18 = scalar_lea.vmem [#allocation3], %s14467_s17 }
 0x73c   : > { %s11316_s20 = sshll.u32 %s298_s18, 4  ;;  %s18316_s20 = int_to_ptr.vmem [resolvable:$true] %s11316_s20 }
 0x73d   : > { %s14800_s26 = scalar_lea.vmem %s18316_s20, 192  ;;  %p14807_p0 = scmp.lt.s32.totalorder %s18316_s20, %s14805_s10 }
 0x73e   : > { %p14801_p11 = scmp.ne.s32.totalorder %s18316_s20, %s14800_s26  ;;  %p14808_p1 = scmp.lt.s32.totalorder %s14806_s12, %s14800_s26 }
 0x73f   : > { %13460 = vmatmul.mubr.msk.bf16.gmra.mrb[0].mxu1 %vm305_vm4, %v10169_v34  ;;  %v18686_v34 = vld [vmem:[#allocation19_spill] sm:$0xff] }
 0x740   : > { %13463 = vmatprep.mubr.msk.bf16.mxu1 %vm305_vm4, %v10173_v63  ;;  %v13544_v6 = vadd.f32 %v18160_v19, %v18686_v34  ;;  %v18687_v63 = vld [vmem:[#allocation12_spill] sm:$0xff]  ;;  %v18700_v34 = vld [vmem:[#allocation31_spill] sm:$0xff]  ;;  %p14802_p12 = pnand %p14801_p11, %p14949_p5  ;;  %p14809_p2 = por %p14808_p1, %p14807_p0 }
 0x741   : > { %v13535_v26 = vadd.f32 %v18687_v63, %v18160_v19 }
 0x742   : > { %v13545_v53 = vadd.f32 %v13544_v6, %v18169_v36  ;;  %v13580_v6 = vadd.f32 %v18160_v19, %v18700_v34  ;;  %p14803_p13 = pneg %p14802_p12 }
 0x744   : > { %p14810_p3 = pnand %p14809_p2, %p14803_p13 }
 0x747   : > { %13464 = vmatmul.mubr.msk.bf16.gmra.mrb[4].mxu1 %vm305_vm4, %v10177_v62  ;;  %v18688_v62 = vld [vmem:[#allocation16_spill] sm:$0xff] }
 0x748   : > { %13467 = vmatprep.mubr.msk.bf16.mxu1 %vm305_vm4, %v10181_v38  ;;  %v13538_v44 = vadd.f32 %v18160_v19, %v18688_v62 }
 0x74f   : > { %13468 = vmatmul.mubr.msk.bf16.gmra.mrb[8].mxu1 %vm305_vm4, %v10185_v14  ;;  %v18689_v14 = vld [vmem:[#allocation20_spill] sm:$0xff] }
 0x750   : > { %13471 = vmatprep.mubr.msk.bf16.mxu1 %vm305_vm4, %v10189_v54  ;;  %v13547_v52 = vadd.f32 %v18689_v14, %v18160_v19  ;;  %v18701_v14 = vld [vmem:[#allocation32_spill] sm:$0xff] }
 0x752   : > { %v13548_v16 = vadd.f32 %v13547_v52, %v18169_v36  ;;  %v13583_v52 = vadd.f32 %v18701_v14, %v18160_v19 }
 0x757   : > { %13472 = vmatmul.mubr.msk.bf16.gmra.mrb[12].mxu1 %vm305_vm4, %v10193_v37  ;;  %v18692_v37 = vld [vmem:[#allocation23_spill] sm:$0xff] }
 0x758   : > { %13475 = vmatprep.mubr.msk.bf16.mxu1 %vm305_vm4, %v10197_v45  ;;  %v13556_v8 = vadd.f32 %v18160_v19, %v18692_v37  ;;  %v18703_v37 = vld [vmem:[#allocation34_spill] sm:$0xff] }
 0x75a   : > { %v13557_v56 = vadd.f32 %v13556_v8, %v18169_v36  ;;  %v13589_v8 = vadd.f32 %v18703_v37, %v18160_v19 }
 0x75f   : > { %13476 = vmatmul.mubr.msk.bf16.gmra.mrb[16].mxu1 %vm305_vm4, %v10201_v58 }
 0x760   : > { %13479 = vmatprep.mubr.msk.bf16.mxu1 %vm305_vm4, %v10205_v47  ;;  %v18693_v47 = vld [vmem:[#allocation24_spill] sm:$0xff] }
 0x761   : > { %v13559_v41 = vadd.f32 %v18693_v47, %v18160_v19 }
 0x767   : > { %13480 = vmatmul.mubr.msk.bf16.gmra.mrb[20].mxu1 %vm305_vm4, %v10214_v20 }
 0x768   : > { %13485 = vmatprep.mubr.msk.bf16.mxu1 %vm484_vm1, %v14771_v2 }
 0x76f   : > { %13486 = vmatmul.mubr.msk.bf16.vlgmr.msra.gmra.mrb[24].mxu1 %vm484_vm1, %v14772_v60  ;;  %v18694_v60 = vld [vmem:[#allocation25_spill] sm:$0xff] }
 0x770   : > { %13489 = vmatprep.mubr.msk.bf16.mxu1 %vm484_vm1, %v14773_v22  ;;  %v13562_v22 = vadd.f32 %v18160_v19, %v18694_v60 }
 0x777   : > { %13490 = vmatmul.mubr.msk.bf16.gmra.mrb[28].mxu1 %vm484_vm1, %v14774_v48 }
 0x778   : > { %13493 = vmatprep.mubr.msk.bf16.mxu1 %vm484_vm1, %v14775_v31  ;;  %v18695_v31 = vld [vmem:[#allocation26_spill] sm:$0xff] }
 0x77f   : > { %13494 = vmatmul.mubr.msk.bf16.gmra.mrb[32].mxu1 %vm484_vm1, %v14776_v57  ;;  %v13565_v57 = vadd.f32 %v18695_v31, %v18160_v19 }
 0x780   : > { %13497 = vmatprep.mubr.msk.bf16.mxu1 %vm484_vm1, %v14777_v18  ;;  %v18696_v18 = vld [vmem:[#allocation27_spill] sm:$0xff] }
 0x787   : > { %13498 = vmatmul.mubr.msk.bf16.gmra.mrb[36].mxu1 %vm484_vm1, %v14778_v13  ;;  %v13568_v13 = vadd.f32 %v18160_v19, %v18696_v18 }
 0x788   : > { %13501 = vmatprep.mubr.msk.bf16.mxu1 %vm484_vm1, %v14779_v1  ;;  %v13560_v1 = vadd.f32 %v13559_v41, %v18169_v36 }
 0x78f   : > { %13502 = vmatmul.mubr.msk.bf16.gmra.mrb[40].mxu1 %vm484_vm1, %v14780_v39 }
 0x790   : > { %13505 = vmatprep.mubr.msk.bf16.mxu1 %vm484_vm1, %v14781_v3  ;;  %v13563_v3 = vadd.f32 %v13562_v22, %v18169_v36 }
 0x797   : > { %13506 = vmatmul.mubr.msk.bf16.gmra.mrb[44].mxu1 %vm484_vm1, %v14782_v15 }
 0x798   : > { %13509 = vmatprep.mubr.msk.bf16.mxu1 %vm484_vm1, %v14783_v32 }
 0x79f   : > { %13510 = vmatmul.mubr.msk.bf16.gmra.mrb[0].mxu1 %vm484_vm1, %v14784_v29  ;;  %v13566_v29 = vadd.f32 %v13565_v57, %v18169_v36  ;;  %v18705_v57 = vld [vmem:[#allocation36_spill] sm:$0xff] }
 0x7a0   : > { %13513 = vmatprep.mubr.msk.bf16.mxu1 %vm484_vm1, %v14785_v9  ;;  %v13595_v18 = vadd.f32 %v18705_v57, %v18160_v19 }
 0x7a7   : > { %13514 = vmatmul.mubr.msk.bf16.gmra.mrb[4].mxu1 %vm484_vm1, %v14786_v42 }
 0x7a8   : > { %13517 = vmatprep.mubr.msk.bf16.mxu1 %vm484_vm1, %v14787_v5  ;;  %v13569_v5 = vadd.f32 %v13568_v13, %v18169_v36 }
 0x7af   : > { %13518 = vmatmul.mubr.msk.bf16.gmra.mrb[8].mxu1 %vm484_vm1, %v14788_v12  ;;  %v18697_v12 = vld [vmem:[#allocation28_spill] sm:$0xff] }
 0x7b0   : > { %13521 = vmatprep.mubr.msk.bf16.mxu1 %vm484_vm1, %v14789_v50  ;;  %v13571_v50 = vadd.f32 %v18697_v12, %v18160_v19 }
 0x7b2   : > { %v13572_v63 = vadd.f32 %v13571_v50, %v18169_v36 }
 0x7b7   : > { %13522 = vmatmul.mubr.msk.bf16.gmra.mrb[12].mxu1 %vm484_vm1, %v14790_v59 }
 0x7b8   : > { %13525 = vmatprep.mubr.msk.bf16.mxu1 %vm484_vm1, %v14791_v11 }
 0x7bf   : > { %13526 = vmatmul.mubr.msk.bf16.gmra.mrb[16].mxu1 %vm484_vm1, %v14792_v46  ;;  %v18698_v46 = vld [vmem:[#allocation29_spill] sm:$0xff] }
 0x7c0   : > { %13529 = vmatprep.mubr.msk.bf16.mxu1 %vm484_vm1, %v14793_v43  ;;  %v13574_v43 = vadd.f32 %v18160_v19, %v18698_v46 }
 0x7c2   : > { %v13575_v62 = vadd.f32 %v13574_v43, %v18169_v36  ;;  %v18708_v43 = vld [vmem:[#allocation39_spill] sm:$0xff] }
 0x7c3   : > { %v13604_v23 = vadd.f32 %v18160_v19, %v18708_v43 }
 0x7c7   : > { %13530 = vmatmul.mubr.msk.bf16.gmra.mrb[20].mxu1 %vm484_vm1, %v14794_v17 }
 0x842   : > { %v13487_v35 = vpop.f32.mrb[24].mxu1 }
 0x843   : > { %v13536_v4 = vadd.f32 %v13535_v26, %v13487_v35  ;;  %v10903_v38 = vpop.f32.mrb[25].mxu1 }
 0x844   : > { %v13539_v27 = vadd.f32 %v13538_v44, %v10903_v38  ;;  %v13488_v7 = vpop.f32.mrb[26].mxu1  ;;  %v13578_v38 = vadd.f32 %v13577_v49, %v18169_v36 }
 0x845   : > { %v18179_v25 = vadd.f32 %v13542_v0, %v13488_v7  ;;  %v10906_v54 = vpop.f32.mrb[27].mxu1 }
 0x846   : > { %v18183_v28 = vadd.f32 %v13545_v53, %v10906_v54  ;;  %v13581_v53 = vadd.f32 %v13580_v6, %v18169_v36 }
 0x847   : > { %v11145_v50 = vmax.f32 %v18179_v25, 0.0 }
 0x848   : > { %v11143_v49 = vmax.f32 %v18183_v28, 0.0 }
 0x84a   : > { %v13491_v45 = vpop.f32.mrb[28].mxu1 }
 0x84b   : > { %v18191_v24 = vadd.f32 %v13548_v16, %v13491_v45  ;;  %v10919_v10 = vpop.f32.mrb[29].mxu1  ;;  %v18704_v16 = vld [vmem:[#allocation35_spill] sm:$0xff] }
 0x84c   : > { %v18194_v40 = vadd.f32 %v13551_v21, %v10919_v10  ;;  %v13492_v58 = vpop.f32.mrb[30].mxu1  ;;  %v13592_v45 = vadd.f32 %v18160_v19, %v18704_v16  ;;  %v13537_v21 = vadd.f32 %v13536_v4, %v18169_v36  ;;  %v13584_v10 = vadd.f32 %v13583_v52, %v18169_v36 }
 0x84d   : > { %v18199_v20 = vadd.f32 %v13554_v61, %v13492_v58  ;;  %v10922_v2 = vpop.f32.mrb[31].mxu1  ;;  %v13540_v61 = vadd.f32 %v13539_v27, %v18169_v36  ;;  %v11148_v28 = vmax.f32 %v18191_v24, 0.0 }
 0x84e   : > { %v18203_v48 = vadd.f32 %v13557_v56, %v10922_v2  ;;  %v13587_v56 = vadd.f32 %v13586_v33, %v18169_v36  ;;  %v13590_v2 = vadd.f32 %v13589_v8, %v18169_v36  ;;  %v13593_v31 = vadd.f32 %v13592_v45, %v18169_v36 }
 0x84f   : > { %v11144_v13 = vmax.f32 %v13537_v21, 0.0  ;;  %v11146_v8 = vmax.f32 %v18194_v40, 0.0  ;;  %v11149_v21 = vmax.f32 %v18199_v20, 0.0 }
 0x852   : > { %v13495_v39 = vpop.f32.mrb[32].mxu1 }
 0x853   : > { %v18211_v15 = vadd.f32 %v13560_v1, %v13495_v39  ;;  %v10935_v32 = vpop.f32.mrb[33].mxu1 }
 0x854   : > { %v18214_v9 = vadd.f32 %v13563_v3, %v10935_v32  ;;  %v13496_v42 = vpop.f32.mrb[34].mxu1  ;;  %v18706_v3 = vld [vmem:[#allocation37_spill] sm:$0xff]  ;;  %v11142_v32 = vmax.f32 %v13540_v61, 0.0 }
 0x855   : > { %v18219_v59 = vadd.f32 %v13566_v29, %v13496_v42  ;;  %v10938_v11 = vpop.f32.mrb[35].mxu1  ;;  %v13598_v27 = vadd.f32 %v18160_v19, %v18706_v3  ;;  %v11152_v57 = vmax.f32 %v18211_v15, 0.0 }
 0x856   : > { %v18223_v17 = vadd.f32 %v13569_v5, %v10938_v11  ;;  %v18707_v5 = vld [vmem:[#allocation38_spill] sm:$0xff] }
 0x857   : > { %v13601_v12 = vadd.f32 %v18707_v5, %v18160_v19 }
 0x859   : > { %v13602_v25 = vadd.f32 %v13601_v12, %v18169_v36 }
 0x85a   : > { %v13499_v26 = vpop.f32.mrb[36].mxu1 }
 0x85b   : > { %v18231_v44 = vadd.f32 %v13572_v63, %v13499_v26  ;;  %v10951_v35 = vpop.f32.mrb[37].mxu1  ;;  %v13596_v26 = vadd.f32 %v13595_v18, %v18169_v36 }
 0x85c   : > { %v18234_v0 = vadd.f32 %v13575_v62, %v10951_v35  ;;  %v13500_v7 = vpop.f32.mrb[38].mxu1 }
 0x85d   : > { %v18239_v54 = vadd.f32 %v13578_v38, %v13500_v7  ;;  %v10954_v51 = vpop.f32.mrb[39].mxu1  ;;  %v13599_v38 = vadd.f32 %v13598_v27, %v18169_v36  ;;  %v11151_v27 = vmax.f32 %v18223_v17, 0.0 }
 0x85e   : > { %v18243_v55 = vadd.f32 %v13581_v53, %v10954_v51  ;;  %v13605_v51 = vadd.f32 %v13604_v23, %v18169_v36  ;;  %v11154_v17 = vmax.f32 %v18234_v0, 0.0 }
 0x862   : > { %v13503_v58 = vpop.f32.mrb[40].mxu1 }
 0x863   : > { %v13585_v47 = vadd.f32 %v13584_v10, %v13503_v58  ;;  %v10967_v41 = vpop.f32.mrb[41].mxu1  ;;  %v18274_v58 = vadd.f32 %v18169_v36, %v18160_v19 }
 0x864   : > { %v13588_v60 = vadd.f32 %v13587_v56, %v10967_v41  ;;  %v13504_v22 = vpop.f32.mrb[42].mxu1  ;;  %v11147_v56 = vmax.f32 %v18203_v48, 0.0  ;;  %v11150_v48 = vmax.f32 %v18214_v9, 0.0 }
 0x865   : > { %v11160_v4 = vmax.f32 %v13585_v47, 0.0  ;;  %v13591_v1 = vadd.f32 %v13590_v2, %v13504_v22  ;;  %v10970_v39 = vpop.f32.mrb[43].mxu1 }
 0x866   : > { %v11158_v29 = vmax.f32 %v13588_v60, 0.0  ;;  %v13594_v42 = vadd.f32 %v13593_v31, %v10970_v39 }
 0x867   : > { %v14516_v11 = vpack.i.bf16 %v11160_v4, %v11144_v13  ;;  %v11161_v46 = vmax.f32 %v13591_v1, 0.0  ;;  %v11153_v1 = vmax.f32 %v18219_v59, 0.0 }
 0x868   : > { %v14512_v34 = vpack.i.bf16 %v11158_v29, %v11142_v32  ;;  %v11159_v6 = vmax.f32 %v13594_v42, 0.0 }
 0x869   : > { %v14518_v63 = vpack.i.bf16 %v11161_v46, %v11145_v50  ;;  %v11156_v46 = vmax.f32 %v18231_v44, 0.0 }
 0x86a   : > { %v14514_v62 = vpack.i.bf16 %v11159_v6, %v11143_v49  ;;  %14513 = vxpose.xlu0.b32.start [1/16] (narrow) %v14512_v34, 8  ;;  %v13507_v35 = vpop.f32.mrb[44].mxu1  ;;  %v11157_v6 = vmax.f32 %v18239_v54, 0.0 }
 0x86b   : > { %v13597_v7 = vadd.f32 %v13596_v26, %v13507_v35  ;;  %v10983_v53 = vpop.f32.mrb[45].mxu1 }
 0x86c   : > { %v13600_v14 = vadd.f32 %v13599_v38, %v10983_v53  ;;  %v13508_v52 = vpop.f32.mrb[46].mxu1 }
 0x86d   : > { %v11164_v30 = vmax.f32 %v13597_v7, 0.0  ;;  %v13603_v33 = vadd.f32 %v13602_v25, %v13508_v52  ;;  %v10986_v37 = vpop.f32.mrb[47].mxu1 }
 0x86e   : > { %v11162_v16 = vmax.f32 %v13600_v14, 0.0  ;;  %v13606_v45 = vadd.f32 %v13605_v51, %v10986_v37  ;;  %14515 = vxpose.xlu0.b32.cont [2/16] (narrow) %v14514_v62, 8  ;;  %v11155_v62 = vmax.f32 %v18243_v55, 0.0 }
 0x86f   : > { %v14524_v10 = vpack.i.bf16 %v11164_v30, %v11148_v28  ;;  %v11165_v61 = vmax.f32 %v13603_v33, 0.0 }
 0x870   : > { %v14520_v47 = vpack.i.bf16 %v11162_v16, %v11146_v8  ;;  %v11163_v24 = vmax.f32 %v13606_v45, 0.0 }
 0x871   : > { %v14526_v41 = vpack.i.bf16 %v11165_v61, %v11149_v21 }
 0x872   : > { %v14522_v2 = vpack.i.bf16 %v11163_v24, %v11147_v56  ;;  %14517 = vxpose.xlu0.b32.cont [3/16] (narrow) %v14516_v11, 8  ;;  %v13511_v60 = vpop.f32.mrb[0].mxu1 }
 0x873   : > { %v13608_v40 = vadd.f32 %v18274_v58, %v13511_v60  ;;  %v10999_v22 = vpop.f32.mrb[1].mxu1 }
 0x874   : > { %v13610_v31 = vadd.f32 %v18274_v58, %v10999_v22  ;;  %v13512_v20 = vpop.f32.mrb[2].mxu1 }
 0x875   : > { %v11168_v18 = vmax.f32 %v13608_v40, 0.0  ;;  %v13612_v19 = vadd.f32 %v18274_v58, %v13512_v20  ;;  %v11002_v36 = vpop.f32.mrb[3].mxu1 }
 0x876   : > { %v11166_v13 = vmax.f32 %v13610_v31, 0.0  ;;  %v13614_v4 = vadd.f32 %v18274_v58, %v11002_v36  ;;  %14519 = vxpose.xlu0.b32.cont [4/16] (narrow) %v14518_v63, 8 }
 0x877   : > { %v14532_v39 = vpack.i.bf16 %v11168_v18, %v11152_v57  ;;  %v11169_v3 = vmax.f32 %v13612_v19, 0.0 }
 0x878   : > { %v14528_v32 = vpack.i.bf16 %v11166_v13, %v11150_v48  ;;  %v11167_v29 = vmax.f32 %v13614_v4, 0.0 }
 0x879   : > { %v14534_v42 = vpack.i.bf16 %v11169_v3, %v11153_v1 }
 0x87a   : > { %v14530_v15 = vpack.i.bf16 %v11167_v29, %v11151_v27  ;;  %14521 = vxpose.xlu0.b32.cont [5/16] (narrow) %v14520_v47, 8  ;;  %v13515_v5 = vpop.f32.mrb[4].mxu1 }
 0x87b   : > { %v13616_v12 = vadd.f32 %v18274_v58, %v13515_v5  ;;  %v11015_v50 = vpop.f32.mrb[5].mxu1 }
 0x87c   : > { %v13618_v9 = vadd.f32 %v18274_v58, %v11015_v50  ;;  %v13516_v11 = vpop.f32.mrb[6].mxu1 }
 0x87d   : > { %v11172_v43 = vmax.f32 %v13616_v12, 0.0  ;;  %v13620_v59 = vadd.f32 %v18274_v58, %v13516_v11  ;;  %v11018_v23 = vpop.f32.mrb[7].mxu1 }
 0x87e   : > { %v11170_v49 = vmax.f32 %v13618_v9, 0.0  ;;  %v13622_v34 = vadd.f32 %v18274_v58, %v11018_v23  ;;  %14523 = vxpose.xlu0.b32.cont [6/16] (narrow) %v14522_v2, 8 }
 0x87f   : > { %v14540_v63 = vpack.i.bf16 %v11172_v43, %v11156_v46  ;;  %v11173_v26 = vmax.f32 %v13620_v59, 0.0 }
 0x880   : > { %v14536_v35 = vpack.i.bf16 %v11170_v49, %v11154_v17  ;;  %v11171_v38 = vmax.f32 %v13622_v34, 0.0 }
 0x881   : > { %v14542_v7 = vpack.i.bf16 %v11173_v26, %v11157_v6 }
 0x882   : > { %v14538_v44 = vpack.i.bf16 %v11171_v38, %v11155_v62  ;;  %14525 = vxpose.xlu0.b32.cont [7/16] (narrow) %v14524_v10, 8  ;;  %v13519_v53 = vpop.f32.mrb[8].mxu1 }
 0x883   : > { %v11031_v25 = vpop.f32.mrb[9].mxu1  ;;  %v13624_v54 = vadd.f32 %v18274_v58, %v13519_v53 }
 0x884   : > { %v13626_v14 = vadd.f32 %v18274_v58, %v11031_v25  ;;  %v13520_v0 = vpop.f32.mrb[10].mxu1 }
 0x885   : > { %v11034_v52 = vpop.f32.mrb[11].mxu1  ;;  %v11176_v16 = vmax.f32 %v13624_v54, 0.0  ;;  %v13628_v45 = vadd.f32 %v18274_v58, %v13520_v0 }
 0x886   : > { %v11174_v51 = vmax.f32 %v13626_v14, 0.0  ;;  %v13630_v28 = vadd.f32 %v18274_v58, %v11034_v52  ;;  %14527 = vxpose.xlu0.b32.cont [8/16] (narrow) %v14526_v41, 8 }
 0x887   : > { %v11177_v21 = vmax.f32 %v13628_v45, 0.0 }
 0x888   : > { %11254 = vxpose.xlu1.b32.start [1/16] (narrow) %v11174_v51, 8  ;;  %v11175_v30 = vmax.f32 %v13630_v28, 0.0 }
 0x88a   : > { %14529 = vxpose.xlu0.b32.cont [9/16] (narrow) %v14528_v32, 8  ;;  %v13523_v55 = vpop.f32.mrb[12].mxu1 }
 0x88b   : > { %v11047_v33 = vpop.f32.mrb[13].mxu1  ;;  %v13632_v60 = vadd.f32 %v18274_v58, %v13523_v55 }
 0x88c   : > { %11255 = vxpose.xlu1.b32.cont [2/16] (narrow) %v11175_v30, 8  ;;  %v13524_v37 = vpop.f32.mrb[14].mxu1  ;;  %v13634_v10 = vadd.f32 %v18274_v58, %v11047_v33 }
 0x88d   : > { %v11050_v8 = vpop.f32.mrb[15].mxu1  ;;  %v11180_v18 = vmax.f32 %v13632_v60, 0.0  ;;  %v13636_v19 = vadd.f32 %v18274_v58, %v13524_v37 }
 0x88e   : > { %14531 = vxpose.xlu0.b32.cont [10/16] (narrow) %v14530_v15, 8  ;;  %v11178_v41 = vmax.f32 %v13634_v10, 0.0  ;;  %v13638_v2 = vadd.f32 %v18274_v58, %v11050_v8 }
 0x88f   : > { %v11181_v36 = vmax.f32 %v13636_v19, 0.0 }
 0x890   : > { %11256 = vxpose.xlu1.b32.cont [3/16] (narrow) %v11176_v16, 8  ;;  %v11179_v40 = vmax.f32 %v13638_v2, 0.0 }
 0x892   : > { %14533 = vxpose.xlu0.b32.cont [11/16] (narrow) %v14532_v39, 8  ;;  %v13527_v61 = vpop.f32.mrb[16].mxu1 }
 0x893   : > { %v11063_v56 = vpop.f32.mrb[17].mxu1  ;;  %v13640_v1 = vadd.f32 %v18274_v58, %v13527_v61 }
 0x894   : > { %11257 = vxpose.xlu1.b32.cont [4/16] (narrow) %v11177_v21, 8  ;;  %v13528_v47 = vpop.f32.mrb[18].mxu1  ;;  %v13642_v48 = vadd.f32 %v18274_v58, %v11063_v56 }
 0x895   : > { %v11066_v24 = vpop.f32.mrb[19].mxu1  ;;  %v11184_v3 = vmax.f32 %v13640_v1, 0.0  ;;  %v13644_v27 = vadd.f32 %v18274_v58, %v13528_v47 }
 0x896   : > { %14535 = vxpose.xlu0.b32.cont [12/16] (narrow) %v14534_v42, 8  ;;  %v11182_v13 = vmax.f32 %v13642_v48, 0.0  ;;  %v13646_v4 = vadd.f32 %v18274_v58, %v11066_v24 }
 0x897   : > { %v11185_v32 = vmax.f32 %v13644_v27, 0.0 }
 0x898   : > { %11258 = vxpose.xlu1.b32.cont [5/16] (narrow) %v11178_v41, 8  ;;  %v11183_v39 = vmax.f32 %v13646_v4, 0.0 }
 0x89a   : > { %14537 = vxpose.xlu0.b32.cont [13/16] (narrow) %v14536_v35, 8  ;;  %v13531_v22 = vpop.f32.mrb[20].mxu1 }
 0x89b   : > { %v11079_v31 = vpop.f32.mrb[21].mxu1  ;;  %v13648_v5 = vadd.f32 %v18274_v58, %v13531_v22 }
 0x89c   : > { %11259 = vxpose.xlu1.b32.cont [6/16] (narrow) %v11179_v40, 8  ;;  %v13532_v20 = vpop.f32.mrb[22].mxu1  ;;  %v13650_v29 = vadd.f32 %v18274_v58, %v11079_v31 }
 0x89d   : > { %v11082_v57 = vpop.f32.mrb[23].mxu1  ;;  %v11188_v50 = vmax.f32 %v13648_v5, 0.0  ;;  %v13652_v9 = vadd.f32 %v18274_v58, %v13532_v20 }
 0x89e   : > { %14539 = vxpose.xlu0.b32.cont [14/16] (narrow) %v14538_v44, 8  ;;  %v11186_v42 = vmax.f32 %v13650_v29, 0.0  ;;  %v13654_v15 = vadd.f32 %v18274_v58, %v11082_v57 }
 0x89f   : > { %v11189_v11 = vmax.f32 %v13652_v9, 0.0 }
 0x8a0   : > { %11260 = vxpose.xlu1.b32.cont [7/16] (narrow) %v11180_v18, 8  ;;  %v11187_v12 = vmax.f32 %v13654_v15, 0.0 }
 0x8a2   : > { %14541 = vxpose.xlu0.b32.cont [15/16] (narrow) %v14540_v63, 8 }
 0x8a4   : > { %11261 = vxpose.xlu1.b32.cont [8/16] (narrow) %v11181_v36, 8 }
 0x8a6   : > { %14543 = vxpose.xlu0.b32.end [16/16] (narrow) %v14542_v7, 8 }
 0x8a8   : > { %11262 = vxpose.xlu1.b32.cont [9/16] (narrow) %v11182_v13, 8 }
 0x8ac   : > { %11263 = vxpose.xlu1.b32.cont [10/16] (narrow) %v11183_v39, 8 }
 0x8b0   : > { %11264 = vxpose.xlu1.b32.cont [11/16] (narrow) %v11184_v3, 8 }
 0x8b4   : > { %11265 = vxpose.xlu1.b32.cont [12/16] (narrow) %v11185_v32, 8 }
 0x8b8   : > { %11266 = vxpose.xlu1.b32.cont [13/16] (narrow) %v11186_v42, 8 }
 0x8bc   : > { %11267 = vxpose.xlu1.b32.cont [14/16] (narrow) %v11187_v12, 8 }
 0x8c0   : > { %11268 = vxpose.xlu1.b32.cont [15/16] (narrow) %v11188_v50, 8 }
 0x8c4   : > { %11269 = vxpose.xlu1.b32.end [16/16] (narrow) %v11189_v11, 8 }
 0x8ea   : > { %v14544_v46 = vpop.trf.xlu0 }
 0x8eb   : > { %v14548_v43 = vunpack.i.h.bf16 %v14544_v46  ;;  %v14545_v59 = vunpack.i.l.bf16 %v14544_v46 }
 0x8ed   : > { %v12106_v23 = vpack.c.bf16 %v14548_v43, %v14545_v59 }
 0x8ef   : > { %11299 = vst [vmem:[%s298_s18] sm:$0xff] %v12106_v23 }
 0x908   : > { %v11270_v17 = vpop.trf.xlu1 }
 0x909   : > { %v12107_v49 = vpack.c.bf16 %v11270_v17, %v11270_v17 }
 0x90b   : > { %11300 = vst [vmem:[%s298_s18 + $0x8] sm:$0xf] %v12107_v49 }
 0x90c   : > { %14813 = shalt.err (!%p14810_p3)
}
 0x90d   : > { %s14814_s13 = scalar_lea.hbm %s18314_s23, 192  ;;  %s14818_s18 = scalar_lea.hbm %s18364_s8, 384 }
 0x90e   : > { %p14815_p4 = scmp.ne.s32.totalorder %s18314_s23, %s14814_s13  ;;  %p14819_p9 = scmp.lt.u32.totalorder %s18314_s23, %s18364_s8 }
 0x90f   : > { %p14820_p10 = scmp.lt.u32.totalorder %s14818_s18, %s14814_s13  ;;  %p14822_p12 = scmp.lt.u32.totalorder %s14814_s13, %s18314_s23 }
 0x910   : > { %p14816_p7 = pnand %p14815_p4, %p14949_p5 }
 0x911   : > { %p14821_p11 = por %p14820_p10, %p14819_p9 }
 0x912   : > { %p14817_p8 = pneg %p14816_p7 }
 0x913   : > { %p14823_p13 = por %p14822_p12, %p14821_p11 }
 0x915   : > { %p14824_p0 = pnand %p14823_p13, %p14817_p8 }
 0x917   : > { %14827 = shalt.err (!%p14824_p0)
}
 0x918   : > { %14470 = dma.vmem_to_hbm [thread:$0]  (%p14949_p5), %s18316_s20, 192, %s18314_s23, %s11302_s24  }
 0x919 PF: > { %p14476_p1 = scmp.ge.s32.totalorder %s14862_s30, 2  ;;  %s11328_s22 = sand.u32 1, %s14850_s27  }
 0x91a   : > { %s11329_s26 = scalar_lea.sflag [#allocation4], %s11328_s22 }
 0x91b   : > { %p14473_p2 = pnand %p14476_p1, %p14953_p6 }
 0x91d   : > { %14845 = dma.done.wait (!%p14473_p2), %s11329_s26, 192  }
 0x91e   : > { %14847 = vsyncadd (!%p14473_p2), %s11329_s26, 4294967104  ;;  %p18_p3 = scmp.ge.s32.totalorder %s14936_s11, 4   ;;  %s18709_s27 = smov %s14854_s28 }
 0x91f   : > { %s18710_s28 = smov %s14858_s29  ;;  %s18711_s29 = smov %s14947_s14 }
 0x920   : > { %s18712_s30 = smov %s14936_s11  ;;  %20 = sbr.rel (!%p18_p3) target bundleno = 3 (0x3), region = 103 }
 0x927   :  { %11334 = vsyncpa [#allocation4], 1 }
 0x928   :  { %11336 = vsyncpa [#allocation4 + $0x1], 1 }

</bundles_post_ra>
